<compile_context>
chip_gen: v5e
topology: v5e:2x2
jax: 0.10.0
libtpu: 0.0.40
codegen_flags: <defaults>
</compile_context>

<pallas_src>
import numpy as np
import jax
import jax.numpy as jnp
from jax.experimental import pallas as pl
from jax.experimental.pallas import tpu as pltpu


# ---------------------------------------------------------------------------
# Host-side construction of the separable AvgPool2d(3, 2, 1) operators
# (count_include_pad=True, so every window divides by 9).
# ---------------------------------------------------------------------------
def _pool_axis_matrix(n_in: int):
    """0/1 operator A (n_out, n_in) for one spatial axis of AvgPool2d(k=3, s=2, p=1)."""
    n_out = (n_in - 1) // 2 + 1
    i = np.arange(n_out)[:, None]
    h = np.arange(n_in)[None, :]
    a = ((h >= 2 * i - 1) & (h <= 2 * i + 1)).astype(np.float32)
    return a, n_out


# ---------------------------------------------------------------------------
# Single fused kernel: t1..t5 computed entirely in VMEM.
#   Stage 1: separable pool-1, per input channel (2 tiny 2-D matmuls each).
#   Stage 2: folded 1x1 convs: one (147, 6) @ (6, Wo) matmul per pooled row.
#   Stage 3: separable pool-2 on the 3-channel head, per channel.
# ---------------------------------------------------------------------------
def _make_fused_kernel(C, H, W, Ho, Wo, Ho2, Wo2, C2):
    def kernel(x_ref, aw1_ref, ah1_ref, w_ref, b_ref, aw2_ref, ah2_ref,
               t1_ref, t2_ref, t34_ref, t5_ref):
        f32 = jnp.float32

        # ---- Stage 1: AvgPool2d(3,2,1) on x, separable, per channel ----
        aw1 = aw1_ref[...]                       # (W, Wo)   0/1
        ah1 = ah1_ref[...]                       # (Ho, H)   0/1 * (1/9)
        for c in range(C):
            pw = jnp.dot(x_ref[c], aw1, preferred_element_type=f32)      # (H, Wo)
            t1c = jnp.dot(ah1, pw, preferred_element_type=f32)           # (Ho, Wo)
            t1_ref[c] = t1c.astype(t1_ref.dtype)

        # ---- Stage 2: host-folded 1x1 convs (t2 + merged t3/t4 head) ----
        wmat = w_ref[...]                        # (147, C)
        bvec = b_ref[...]                        # (147, 1)
        for ho in range(Ho):
            blk = t1_ref[:, ho, :]                                        # (C, Wo)
            row = jnp.dot(wmat, blk, preferred_element_type=f32) + bvec  # (147, Wo)
            t2_ref[ho] = row[:C2, :].astype(t2_ref.dtype)                 # (128, Wo)
            t34_ref[ho] = row[C2:, :].astype(t34_ref.dtype)               # (19, Wo)

        # ---- Stage 3: AvgPool2d(3,2,1) on t4 (= last 3 rows of merged head) ----
        aw2 = aw2_ref[...]                       # (Wo, Wo2)
        ah2 = ah2_ref[...]                       # (Ho2, Ho)
        n3 = t34_ref.shape[1] - 3                # 16 (t3 channels)
        for c in range(3):
            t4c = t34_ref[:, n3 + c, :]                                   # (Ho, Wo)
            pw2 = jnp.dot(t4c, aw2, preferred_element_type=f32)           # (Ho, Wo2)
            t5c = jnp.dot(ah2, pw2, preferred_element_type=f32)           # (Ho2, Wo2)
            t5_ref[c] = t5c.astype(t5_ref.dtype)

    return kernel


def model_forward(x_nchw, params):
    N, Cin, H, W = x_nchw.shape
    assert N == 1 and Cin == 6

    ah1_np, Ho = _pool_axis_matrix(H)
    aw1_np, Wo = _pool_axis_matrix(W)
    ah2_np, Ho2 = _pool_axis_matrix(Ho)
    aw2_np, Wo2 = _pool_axis_matrix(Wo)

    w1, b1 = params["conv2d"]        # (128, 6), (128,)
    w2, b2 = params["conv2d_1"]      # (16, 128), (16,)
    w3, b3 = params["conv2d_2"]      # (3, 128), (3,)
    C2 = w1.shape[0]                 # 128
    C3 = w2.shape[0]                 # 16

    # Host-fold the conv heads onto conv2d: one (147, 6) weight and (147, 1) bias.
    wstack = jnp.concatenate([w1, w2 @ w1, w3 @ w1], axis=0)                          # (147, 6)
    bstack = jnp.concatenate([b1, w2 @ b1 + b2, w3 @ b1 + b3], axis=0)[:, None]       # (147, 1)
    CH = wstack.shape[0]             # 147
    C34 = CH - C2                    # 19

    # Tiny separable pool operators (0/1; the 1/9 is folded into the H-side operator).
    aw1T = jnp.asarray(aw1_np.T)                                   # (W, Wo)
    ah1s = jnp.asarray(ah1_np * np.float32(1.0 / 9.0))             # (Ho, H)
    aw2T = jnp.asarray(aw2_np.T)                                   # (Wo, Wo2)
    ah2s = jnp.asarray(ah2_np * np.float32(1.0 / 9.0))             # (Ho2, Ho)

    x3 = x_nchw.reshape(Cin, H, W)   # N == 1, free reshape
    dt = x_nchw.dtype

    def full_spec(shape):
        zeros = (0,) * len(shape)
        return pl.BlockSpec(shape, lambda i, z=zeros: z)

    kernel = _make_fused_kernel(Cin, H, W, Ho, Wo, Ho2, Wo2, C2)
    t1, t2h, t34h, t5 = pl.pallas_call(
        kernel,
        grid=(1,),
        in_specs=[
            full_spec((Cin, H, W)),   # x
            full_spec((W, Wo)),       # pool1 W operator (transposed)
            full_spec((Ho, H)),       # pool1 H operator (1/9 folded)
            full_spec((CH, Cin)),     # folded/stacked conv weight
            full_spec((CH, 1)),       # folded/stacked conv bias
            full_spec((Wo, Wo2)),     # pool2 W operator (transposed)
            full_spec((Ho2, Ho)),     # pool2 H operator (1/9 folded)
        ],
        out_specs=[
            full_spec((Cin, Ho, Wo)),
            full_spec((Ho, C2, Wo)),   # t2, row-major by pooled row (host transposes back)
            full_spec((Ho, C34, Wo)),  # merged t3/t4 head
            full_spec((3, Ho2, Wo2)),  # t5
        ],
        out_shape=[
            jax.ShapeDtypeStruct((Cin, Ho, Wo), dt),
            jax.ShapeDtypeStruct((Ho, C2, Wo), dt),
            jax.ShapeDtypeStruct((Ho, C34, Wo), dt),
            jax.ShapeDtypeStruct((3, Ho2, Wo2), dt),
        ],
        compiler_params=pltpu.CompilerParams(dimension_semantics=("arbitrary",)),
    )(x3, aw1T, ah1s, wstack, bstack, aw2T, ah2s)

    # Host-side layout plumbing on tiny arrays (outside the kernel).
    t2 = jnp.transpose(t2h, (1, 0, 2))        # (128, Ho, Wo)
    t34 = jnp.transpose(t34h, (1, 0, 2))      # (19, Ho, Wo)
    t3, t4 = t34[:C3], t34[C3:]

    # TODO(synk): t6..t30 of the original forward are not executable even in PyTorch
    # (conv2d_1(t5) channel mismatch 3 vs 128; t30 used before assignment; float(t2) on a
    # multi-element tensor), so the pipeline is faithfully reproduced only through t5.
    return {
        "t1": t1[None],
        "t2": t2[None],
        "t3": t3[None],
        "t4": t4[None],
        "t5": t5[None],
    }


# ---------------------------------------------------------------------------
# Deterministic parameter init (mimics PyTorch's fan-in uniform init for 1x1 convs)
# ---------------------------------------------------------------------------
def init_params(key):
    def conv_init(k, cout, cin):
        kw, kb = jax.random.split(k)
        bound = 1.0 / np.sqrt(cin)
        w = jax.random.uniform(kw, (cout, cin), jnp.float32, -bound, bound)
        b = jax.random.uniform(kb, (cout,), jnp.float32, -bound, bound)
        return w, b

    k1, k2, k3 = jax.random.split(key, 3)
    return {
        "conv2d": conv_init(k1, 128, 6),
        "conv2d_1": conv_init(k2, 16, 128),
        "conv2d_2": conv_init(k3, 3, 128),
    }


if __name__ == "__main__":
    key = jax.random.PRNGKey(0)
    kx, kp = jax.random.split(key)
    # Small shape consistent with the module: N=1, C=6 (required by conv2d), spatial 32.
    x = jax.random.normal(kx, (1, 6, 32, 32), dtype=jnp.float32)
    params = init_params(kp)

    forward = jax.jit(model_forward)
    outs = forward(x, params)
    jax.block_until_ready(outs)

    # Pure-JAX reference of the computable part of the forward (t1..t5).
    def ref_pool(z):  # z: (C, H, W)
        s = jax.lax.reduce_window(z, 0.0, jax.lax.add, (1, 3, 3), (1, 2, 2),
                                  [(0, 0), (1, 1), (1, 1)])
        return s / 9.0

    def ref_c1x1(z, w, b):
        return jnp.einsum("oc,chw->ohw", w, z) + b[:, None, None]

    r1 = ref_pool(x[0])
    r2 = ref_c1x1(r1, *params["conv2d"])
    r3 = ref_c1x1(r2, *params["conv2d_1"])
    r4 = ref_c1x1(r2, *params["conv2d_2"])
    r5 = ref_pool(r4)

    checks = [("t1", outs["t1"][0], r1), ("t2", outs["t2"][0], r2),
              ("t3", outs["t3"][0], r3), ("t4", outs["t4"][0], r4),
              ("t5", outs["t5"][0], r5)]
    for name, got, want in checks:
        assert got.shape == want.shape, f"shape mismatch in {name}"
        assert jnp.allclose(got, want, atol=1e-3, rtol=1e-3), f"mismatch vs reference in {name}"

    print("KERNEL_OK")
</pallas_src>

<mosaic_0001>
module attributes {stable_mosaic.version = 11 : i64} {
  func.func @kernel(%arg0: i32, %arg1: memref<6x32x32xf32, #tpu.memory_space<vmem>>, %arg2: memref<32x16xf32, #tpu.memory_space<vmem>>, %arg3: memref<16x32xf32, #tpu.memory_space<vmem>>, %arg4: memref<147x6xf32, #tpu.memory_space<vmem>>, %arg5: memref<147x1xf32, #tpu.memory_space<vmem>>, %arg6: memref<16x8xf32, #tpu.memory_space<vmem>>, %arg7: memref<8x16xf32, #tpu.memory_space<vmem>>, %arg8: memref<6x16x16xf32, #tpu.memory_space<vmem>>, %arg9: memref<16x128x16xf32, #tpu.memory_space<vmem>>, %arg10: memref<16x19x16xf32, #tpu.memory_space<vmem>>, %arg11: memref<3x8x8xf32, #tpu.memory_space<vmem>>) attributes {dimension_semantics = [#tpu.dimension_semantics<arbitrary>], iteration_bounds = array<i64: 1>, scalar_prefetch = 0 : i64, scratch_operands = 0 : i64, tpu.core_type = #tpu.core_type<tc>, window_params = [{pipeline_mode = #tpu.pipeline_mode<synchronous>, transform_indices = @transform_0, window_bounds = array<i64: 6, 32, 32>}, {pipeline_mode = #tpu.pipeline_mode<synchronous>, transform_indices = @transform_1, window_bounds = array<i64: 32, 16>}, {pipeline_mode = #tpu.pipeline_mode<synchronous>, transform_indices = @transform_2, window_bounds = array<i64: 16, 32>}, {pipeline_mode = #tpu.pipeline_mode<synchronous>, transform_indices = @transform_3, window_bounds = array<i64: 147, 6>}, {pipeline_mode = #tpu.pipeline_mode<synchronous>, transform_indices = @transform_4, window_bounds = array<i64: 147, 1>}, {pipeline_mode = #tpu.pipeline_mode<synchronous>, transform_indices = @transform_5, window_bounds = array<i64: 16, 8>}, {pipeline_mode = #tpu.pipeline_mode<synchronous>, transform_indices = @transform_6, window_bounds = array<i64: 8, 16>}, {pipeline_mode = #tpu.pipeline_mode<synchronous>, transform_indices = @transform_7, window_bounds = array<i64: 6, 16, 16>}, {pipeline_mode = #tpu.pipeline_mode<synchronous>, transform_indices = @transform_8, window_bounds = array<i64: 16, 128, 16>}, {pipeline_mode = #tpu.pipeline_mode<synchronous>, transform_indices = @transform_9, window_bounds = array<i64: 16, 19, 16>}, {pipeline_mode = #tpu.pipeline_mode<synchronous>, transform_indices = @transform_10, window_bounds = array<i64: 3, 8, 8>}]} {
    %c0 = arith.constant 0 : index
    %c0_0 = arith.constant 0 : index
    %0 = vector.load %arg2[%c0, %c0_0] : memref<32x16xf32, #tpu.memory_space<vmem>>, vector<32x16xf32>
    %c0_1 = arith.constant 0 : index
    %c0_2 = arith.constant 0 : index
    %1 = vector.load %arg3[%c0_1, %c0_2] : memref<16x32xf32, #tpu.memory_space<vmem>>, vector<16x32xf32>
    %c0_3 = arith.constant 0 : index
    %c0_4 = arith.constant 0 : index
    %c0_5 = arith.constant 0 : index
    %2 = vector.load %arg1[%c0_3, %c0_4, %c0_5] : memref<6x32x32xf32, #tpu.memory_space<vmem>>, vector<1x32x32xf32>
    %3 = vector.shape_cast %2 : vector<1x32x32xf32> to vector<32x32xf32>
    %cst = arith.constant dense<0.000000e+00> : vector<32x16xf32>
    %4 = tpu.matmul %3, %0, %cst {dimension_numbers = #tpu.dot_dimension_numbers<[1], [0], [0], [1], [0, 0, 1, 1], [], []>} : vector<32x32xf32>, vector<32x16xf32>, vector<32x16xf32> -> vector<32x16xf32>
    %cst_6 = arith.constant dense<0.000000e+00> : vector<16x16xf32>
    %5 = tpu.matmul %1, %4, %cst_6 {dimension_numbers = #tpu.dot_dimension_numbers<[1], [0], [0], [1], [0, 0, 1, 1], [], []>} : vector<16x32xf32>, vector<32x16xf32>, vector<16x16xf32> -> vector<16x16xf32>
    %c0_7 = arith.constant 0 : index
    %c0_8 = arith.constant 0 : index
    %c0_9 = arith.constant 0 : index
    %6 = vector.load %arg8[%c0_7, %c0_8, %c0_9] : memref<6x16x16xf32, #tpu.memory_space<vmem>>, vector<1x16x16xf32>
    %7 = vector.shape_cast %6 : vector<1x16x16xf32> to vector<16x16xf32>
    %8 = vector.shape_cast %5 : vector<16x16xf32> to vector<1x16x16xf32>
    tpu.vector_store %arg8[%c0_7, %c0_8, %c0_9], %8 {strides = array<i32>} : memref<6x16x16xf32, #tpu.memory_space<vmem>>, vector<1x16x16xf32>,
    %c1 = arith.constant 1 : index
    %c0_10 = arith.constant 0 : index
    %c0_11 = arith.constant 0 : index
    %9 = vector.load %arg1[%c1, %c0_10, %c0_11] : memref<6x32x32xf32, #tpu.memory_space<vmem>>, vector<1x32x32xf32>
    %10 = vector.shape_cast %9 : vector<1x32x32xf32> to vector<32x32xf32>
    %cst_12 = arith.constant dense<0.000000e+00> : vector<32x16xf32>
    %11 = tpu.matmul %10, %0, %cst_12 {dimension_numbers = #tpu.dot_dimension_numbers<[1], [0], [0], [1], [0, 0, 1, 1], [], []>} : vector<32x32xf32>, vector<32x16xf32>, vector<32x16xf32> -> vector<32x16xf32>
    %cst_13 = arith.constant dense<0.000000e+00> : vector<16x16xf32>
    %12 = tpu.matmul %1, %11, %cst_13 {dimension_numbers = #tpu.dot_dimension_numbers<[1], [0], [0], [1], [0, 0, 1, 1], [], []>} : vector<16x32xf32>, vector<32x16xf32>, vector<16x16xf32> -> vector<16x16xf32>
    %c1_14 = arith.constant 1 : index
    %c0_15 = arith.constant 0 : index
    %c0_16 = arith.constant 0 : index
    %13 = vector.load %arg8[%c1_14, %c0_15, %c0_16] : memref<6x16x16xf32, #tpu.memory_space<vmem>>, vector<1x16x16xf32>
    %14 = vector.shape_cast %13 : vector<1x16x16xf32> to vector<16x16xf32>
    %15 = vector.shape_cast %12 : vector<16x16xf32> to vector<1x16x16xf32>
    tpu.vector_store %arg8[%c1_14, %c0_15, %c0_16], %15 {strides = array<i32>} : memref<6x16x16xf32, #tpu.memory_space<vmem>>, vector<1x16x16xf32>,
    %c2 = arith.constant 2 : index
    %c0_17 = arith.constant 0 : index
    %c0_18 = arith.constant 0 : index
    %16 = vector.load %arg1[%c2, %c0_17, %c0_18] : memref<6x32x32xf32, #tpu.memory_space<vmem>>, vector<1x32x32xf32>
    %17 = vector.shape_cast %16 : vector<1x32x32xf32> to vector<32x32xf32>
    %cst_19 = arith.constant dense<0.000000e+00> : vector<32x16xf32>
    %18 = tpu.matmul %17, %0, %cst_19 {dimension_numbers = #tpu.dot_dimension_numbers<[1], [0], [0], [1], [0, 0, 1, 1], [], []>} : vector<32x32xf32>, vector<32x16xf32>, vector<32x16xf32> -> vector<32x16xf32>
    %cst_20 = arith.constant dense<0.000000e+00> : vector<16x16xf32>
    %19 = tpu.matmul %1, %18, %cst_20 {dimension_numbers = #tpu.dot_dimension_numbers<[1], [0], [0], [1], [0, 0, 1, 1], [], []>} : vector<16x32xf32>, vector<32x16xf32>, vector<16x16xf32> -> vector<16x16xf32>
    %c2_21 = arith.constant 2 : index
    %c0_22 = arith.constant 0 : index
    %c0_23 = arith.constant 0 : index
    %20 = vector.load %arg8[%c2_21, %c0_22, %c0_23] : memref<6x16x16xf32, #tpu.memory_space<vmem>>, vector<1x16x16xf32>
    %21 = vector.shape_cast %20 : vector<1x16x16xf32> to vector<16x16xf32>
    %22 = vector.shape_cast %19 : vector<16x16xf32> to vector<1x16x16xf32>
    tpu.vector_store %arg8[%c2_21, %c0_22, %c0_23], %22 {strides = array<i32>} : memref<6x16x16xf32, #tpu.memory_space<vmem>>, vector<1x16x16xf32>,
    %c3 = arith.constant 3 : index
    %c0_24 = arith.constant 0 : index
    %c0_25 = arith.constant 0 : index
    %23 = vector.load %arg1[%c3, %c0_24, %c0_25] : memref<6x32x32xf32, #tpu.memory_space<vmem>>, vector<1x32x32xf32>
    %24 = vector.shape_cast %23 : vector<1x32x32xf32> to vector<32x32xf32>
    %cst_26 = arith.constant dense<0.000000e+00> : vector<32x16xf32>
    %25 = tpu.matmul %24, %0, %cst_26 {dimension_numbers = #tpu.dot_dimension_numbers<[1], [0], [0], [1], [0, 0, 1, 1], [], []>} : vector<32x32xf32>, vector<32x16xf32>, vector<32x16xf32> -> vector<32x16xf32>
    %cst_27 = arith.constant dense<0.000000e+00> : vector<16x16xf32>
    %26 = tpu.matmul %1, %25, %cst_27 {dimension_numbers = #tpu.dot_dimension_numbers<[1], [0], [0], [1], [0, 0, 1, 1], [], []>} : vector<16x32xf32>, vector<32x16xf32>, vector<16x16xf32> -> vector<16x16xf32>
    %c3_28 = arith.constant 3 : index
    %c0_29 = arith.constant 0 : index
    %c0_30 = arith.constant 0 : index
    %27 = vector.load %arg8[%c3_28, %c0_29, %c0_30] : memref<6x16x16xf32, #tpu.memory_space<vmem>>, vector<1x16x16xf32>
    %28 = vector.shape_cast %27 : vector<1x16x16xf32> to vector<16x16xf32>
    %29 = vector.shape_cast %26 : vector<16x16xf32> to vector<1x16x16xf32>
    tpu.vector_store %arg8[%c3_28, %c0_29, %c0_30], %29 {strides = array<i32>} : memref<6x16x16xf32, #tpu.memory_space<vmem>>, vector<1x16x16xf32>,
    %c4 = arith.constant 4 : index
    %c0_31 = arith.constant 0 : index
    %c0_32 = arith.constant 0 : index
    %30 = vector.load %arg1[%c4, %c0_31, %c0_32] : memref<6x32x32xf32, #tpu.memory_space<vmem>>, vector<1x32x32xf32>
    %31 = vector.shape_cast %30 : vector<1x32x32xf32> to vector<32x32xf32>
    %cst_33 = arith.constant dense<0.000000e+00> : vector<32x16xf32>
    %32 = tpu.matmul %31, %0, %cst_33 {dimension_numbers = #tpu.dot_dimension_numbers<[1], [0], [0], [1], [0, 0, 1, 1], [], []>} : vector<32x32xf32>, vector<32x16xf32>, vector<32x16xf32> -> vector<32x16xf32>
    %cst_34 = arith.constant dense<0.000000e+00> : vector<16x16xf32>
    %33 = tpu.matmul %1, %32, %cst_34 {dimension_numbers = #tpu.dot_dimension_numbers<[1], [0], [0], [1], [0, 0, 1, 1], [], []>} : vector<16x32xf32>, vector<32x16xf32>, vector<16x16xf32> -> vector<16x16xf32>
    %c4_35 = arith.constant 4 : index
    %c0_36 = arith.constant 0 : index
    %c0_37 = arith.constant 0 : index
    %34 = vector.load %arg8[%c4_35, %c0_36, %c0_37] : memref<6x16x16xf32, #tpu.memory_space<vmem>>, vector<1x16x16xf32>
    %35 = vector.shape_cast %34 : vector<1x16x16xf32> to vector<16x16xf32>
    %36 = vector.shape_cast %33 : vector<16x16xf32> to vector<1x16x16xf32>
    tpu.vector_store %arg8[%c4_35, %c0_36, %c0_37], %36 {strides = array<i32>} : memref<6x16x16xf32, #tpu.memory_space<vmem>>, vector<1x16x16xf32>,
    %c5 = arith.constant 5 : index
    %c0_38 = arith.constant 0 : index
    %c0_39 = arith.constant 0 : index
    %37 = vector.load %arg1[%c5, %c0_38, %c0_39] : memref<6x32x32xf32, #tpu.memory_space<vmem>>, vector<1x32x32xf32>
    %38 = vector.shape_cast %37 : vector<1x32x32xf32> to vector<32x32xf32>
    %cst_40 = arith.constant dense<0.000000e+00> : vector<32x16xf32>
    %39 = tpu.matmul %38, %0, %cst_40 {dimension_numbers = #tpu.dot_dimension_numbers<[1], [0], [0], [1], [0, 0, 1, 1], [], []>} : vector<32x32xf32>, vector<32x16xf32>, vector<32x16xf32> -> vector<32x16xf32>
    %cst_41 = arith.constant dense<0.000000e+00> : vector<16x16xf32>
    %40 = tpu.matmul %1, %39, %cst_41 {dimension_numbers = #tpu.dot_dimension_numbers<[1], [0], [0], [1], [0, 0, 1, 1], [], []>} : vector<16x32xf32>, vector<32x16xf32>, vector<16x16xf32> -> vector<16x16xf32>
    %c5_42 = arith.constant 5 : index
    %c0_43 = arith.constant 0 : index
    %c0_44 = arith.constant 0 : index
    %41 = vector.load %arg8[%c5_42, %c0_43, %c0_44] : memref<6x16x16xf32, #tpu.memory_space<vmem>>, vector<1x16x16xf32>
    %42 = vector.shape_cast %41 : vector<1x16x16xf32> to vector<16x16xf32>
    %43 = vector.shape_cast %40 : vector<16x16xf32> to vector<1x16x16xf32>
    tpu.vector_store %arg8[%c5_42, %c0_43, %c0_44], %43 {strides = array<i32>} : memref<6x16x16xf32, #tpu.memory_space<vmem>>, vector<1x16x16xf32>,
    %c0_45 = arith.constant 0 : index
    %c0_46 = arith.constant 0 : index
    %44 = vector.load %arg4[%c0_45, %c0_46] : memref<147x6xf32, #tpu.memory_space<vmem>>, vector<147x6xf32>
    %c0_47 = arith.constant 0 : index
    %c0_48 = arith.constant 0 : index
    %45 = vector.load %arg5[%c0_47, %c0_48] : memref<147x1xf32, #tpu.memory_space<vmem>>, vector<147x1xf32>
    %c0_49 = arith.constant 0 : index
    %c0_50 = arith.constant 0 : index
    %c0_51 = arith.constant 0 : index
    %46 = vector.load %arg8[%c0_49, %c0_50, %c0_51] : memref<6x16x16xf32, #tpu.memory_space<vmem>>, vector<6x1x16xf32>
    %47 = vector.shape_cast %46 : vector<6x1x16xf32> to vector<6x16xf32>
    %cst_52 = arith.constant dense<0.000000e+00> : vector<147x16xf32>
    %48 = tpu.matmul %44, %47, %cst_52 {dimension_numbers = #tpu.dot_dimension_numbers<[1], [0], [0], [1], [0, 0, 1, 1], [], []>} : vector<147x6xf32>, vector<6x16xf32>, vector<147x16xf32> -> vector<147x16xf32>
    %49 = vector.broadcast %45 : vector<147x1xf32> to vector<147x16xf32>
    %50 = arith.addf %48, %49 : vector<147x16xf32>
    %51 = vector.extract_strided_slice %50 {offsets = [0, 0], sizes = [128, 16], strides = [1, 1]} : vector<147x16xf32> to vector<128x16xf32>
    %c0_53 = arith.constant 0 : index
    %c0_54 = arith.constant 0 : index
    %c0_55 = arith.constant 0 : index
    %52 = vector.load %arg9[%c0_53, %c0_54, %c0_55] : memref<16x128x16xf32, #tpu.memory_space<vmem>>, vector<1x128x16xf32>
    %53 = vector.shape_cast %52 : vector<1x128x16xf32> to vector<128x16xf32>
    %54 = vector.shape_cast %51 : vector<128x16xf32> to vector<1x128x16xf32>
    tpu.vector_store %arg9[%c0_53, %c0_54, %c0_55], %54 {strides = array<i32>} : memref<16x128x16xf32, #tpu.memory_space<vmem>>, vector<1x128x16xf32>,
    %55 = vector.extract_strided_slice %50 {offsets = [128, 0], sizes = [19, 16], strides = [1, 1]} : vector<147x16xf32> to vector<19x16xf32>
    %c0_56 = arith.constant 0 : index
    %c0_57 = arith.constant 0 : index
    %c0_58 = arith.constant 0 : index
    %56 = vector.load %arg10[%c0_56, %c0_57, %c0_58] : memref<16x19x16xf32, #tpu.memory_space<vmem>>, vector<1x19x16xf32>
    %57 = vector.shape_cast %56 : vector<1x19x16xf32> to vector<19x16xf32>
    %58 = vector.shape_cast %55 : vector<19x16xf32> to vector<1x19x16xf32>
    tpu.vector_store %arg10[%c0_56, %c0_57, %c0_58], %58 {strides = array<i32>} : memref<16x19x16xf32, #tpu.memory_space<vmem>>, vector<1x19x16xf32>,
    %c0_59 = arith.constant 0 : index
    %c1_60 = arith.constant 1 : index
    %c0_61 = arith.constant 0 : index
    %59 = vector.load %arg8[%c0_59, %c1_60, %c0_61] : memref<6x16x16xf32, #tpu.memory_space<vmem>>, vector<6x1x16xf32>
    %60 = vector.shape_cast %59 : vector<6x1x16xf32> to vector<6x16xf32>
    %cst_62 = arith.constant dense<0.000000e+00> : vector<147x16xf32>
    %61 = tpu.matmul %44, %60, %cst_62 {dimension_numbers = #tpu.dot_dimension_numbers<[1], [0], [0], [1], [0, 0, 1, 1], [], []>} : vector<147x6xf32>, vector<6x16xf32>, vector<147x16xf32> -> vector<147x16xf32>
    %62 = vector.broadcast %45 : vector<147x1xf32> to vector<147x16xf32>
    %63 = arith.addf %61, %62 : vector<147x16xf32>
    %64 = vector.extract_strided_slice %63 {offsets = [0, 0], sizes = [128, 16], strides = [1, 1]} : vector<147x16xf32> to vector<128x16xf32>
    %c1_63 = arith.constant 1 : index
    %c0_64 = arith.constant 0 : index
    %c0_65 = arith.constant 0 : index
    %65 = vector.load %arg9[%c1_63, %c0_64, %c0_65] : memref<16x128x16xf32, #tpu.memory_space<vmem>>, vector<1x128x16xf32>
    %66 = vector.shape_cast %65 : vector<1x128x16xf32> to vector<128x16xf32>
    %67 = vector.shape_cast %64 : vector<128x16xf32> to vector<1x128x16xf32>
    tpu.vector_store %arg9[%c1_63, %c0_64, %c0_65], %67 {strides = array<i32>} : memref<16x128x16xf32, #tpu.memory_space<vmem>>, vector<1x128x16xf32>,
    %68 = vector.extract_strided_slice %63 {offsets = [128, 0], sizes = [19, 16], strides = [1, 1]} : vector<147x16xf32> to vector<19x16xf32>
    %c1_66 = arith.constant 1 : index
    %c0_67 = arith.constant 0 : index
    %c0_68 = arith.constant 0 : index
    %69 = vector.load %arg10[%c1_66, %c0_67, %c0_68] : memref<16x19x16xf32, #tpu.memory_space<vmem>>, vector<1x19x16xf32>
    %70 = vector.shape_cast %69 : vector<1x19x16xf32> to vector<19x16xf32>
    %71 = vector.shape_cast %68 : vector<19x16xf32> to vector<1x19x16xf32>
    tpu.vector_store %arg10[%c1_66, %c0_67, %c0_68], %71 {strides = array<i32>} : memref<16x19x16xf32, #tpu.memory_space<vmem>>, vector<1x19x16xf32>,
    %c0_69 = arith.constant 0 : index
    %c2_70 = arith.constant 2 : index
    %c0_71 = arith.constant 0 : index
    %72 = vector.load %arg8[%c0_69, %c2_70, %c0_71] : memref<6x16x16xf32, #tpu.memory_space<vmem>>, vector<6x1x16xf32>
    %73 = vector.shape_cast %72 : vector<6x1x16xf32> to vector<6x16xf32>
    %cst_72 = arith.constant dense<0.000000e+00> : vector<147x16xf32>
    %74 = tpu.matmul %44, %73, %cst_72 {dimension_numbers = #tpu.dot_dimension_numbers<[1], [0], [0], [1], [0, 0, 1, 1], [], []>} : vector<147x6xf32>, vector<6x16xf32>, vector<147x16xf32> -> vector<147x16xf32>
    %75 = vector.broadcast %45 : vector<147x1xf32> to vector<147x16xf32>
    %76 = arith.addf %74, %75 : vector<147x16xf32>
    %77 = vector.extract_strided_slice %76 {offsets = [0, 0], sizes = [128, 16], strides = [1, 1]} : vector<147x16xf32> to vector<128x16xf32>
    %c2_73 = arith.constant 2 : index
    %c0_74 = arith.constant 0 : index
    %c0_75 = arith.constant 0 : index
    %78 = vector.load %arg9[%c2_73, %c0_74, %c0_75] : memref<16x128x16xf32, #tpu.memory_space<vmem>>, vector<1x128x16xf32>
    %79 = vector.shape_cast %78 : vector<1x128x16xf32> to vector<128x16xf32>
    %80 = vector.shape_cast %77 : vector<128x16xf32> to vector<1x128x16xf32>
    tpu.vector_store %arg9[%c2_73, %c0_74, %c0_75], %80 {strides = array<i32>} : memref<16x128x16xf32, #tpu.memory_space<vmem>>, vector<1x128x16xf32>,
    %81 = vector.extract_strided_slice %76 {offsets = [128, 0], sizes = [19, 16], strides = [1, 1]} : vector<147x16xf32> to vector<19x16xf32>
    %c2_76 = arith.constant 2 : index
    %c0_77 = arith.constant 0 : index
    %c0_78 = arith.constant 0 : index
    %82 = vector.load %arg10[%c2_76, %c0_77, %c0_78] : memref<16x19x16xf32, #tpu.memory_space<vmem>>, vector<1x19x16xf32>
    %83 = vector.shape_cast %82 : vector<1x19x16xf32> to vector<19x16xf32>
    %84 = vector.shape_cast %81 : vector<19x16xf32> to vector<1x19x16xf32>
    tpu.vector_store %arg10[%c2_76, %c0_77, %c0_78], %84 {strides = array<i32>} : memref<16x19x16xf32, #tpu.memory_space<vmem>>, vector<1x19x16xf32>,
    %c0_79 = arith.constant 0 : index
    %c3_80 = arith.constant 3 : index
    %c0_81 = arith.constant 0 : index
    %85 = vector.load %arg8[%c0_79, %c3_80, %c0_81] : memref<6x16x16xf32, #tpu.memory_space<vmem>>, vector<6x1x16xf32>
    %86 = vector.shape_cast %85 : vector<6x1x16xf32> to vector<6x16xf32>
    %cst_82 = arith.constant dense<0.000000e+00> : vector<147x16xf32>
    %87 = tpu.matmul %44, %86, %cst_82 {dimension_numbers = #tpu.dot_dimension_numbers<[1], [0], [0], [1], [0, 0, 1, 1], [], []>} : vector<147x6xf32>, vector<6x16xf32>, vector<147x16xf32> -> vector<147x16xf32>
    %88 = vector.broadcast %45 : vector<147x1xf32> to vector<147x16xf32>
    %89 = arith.addf %87, %88 : vector<147x16xf32>
    %90 = vector.extract_strided_slice %89 {offsets = [0, 0], sizes = [128, 16], strides = [1, 1]} : vector<147x16xf32> to vector<128x16xf32>
    %c3_83 = arith.constant 3 : index
    %c0_84 = arith.constant 0 : index
    %c0_85 = arith.constant 0 : index
    %91 = vector.load %arg9[%c3_83, %c0_84, %c0_85] : memref<16x128x16xf32, #tpu.memory_space<vmem>>, vector<1x128x16xf32>
    %92 = vector.shape_cast %91 : vector<1x128x16xf32> to vector<128x16xf32>
    %93 = vector.shape_cast %90 : vector<128x16xf32> to vector<1x128x16xf32>
    tpu.vector_store %arg9[%c3_83, %c0_84, %c0_85], %93 {strides = array<i32>} : memref<16x128x16xf32, #tpu.memory_space<vmem>>, vector<1x128x16xf32>,
    %94 = vector.extract_strided_slice %89 {offsets = [128, 0], sizes = [19, 16], strides = [1, 1]} : vector<147x16xf32> to vector<19x16xf32>
    %c3_86 = arith.constant 3 : index
    %c0_87 = arith.constant 0 : index
    %c0_88 = arith.constant 0 : index
    %95 = vector.load %arg10[%c3_86, %c0_87, %c0_88] : memref<16x19x16xf32, #tpu.memory_space<vmem>>, vector<1x19x16xf32>
    %96 = vector.shape_cast %95 : vector<1x19x16xf32> to vector<19x16xf32>
    %97 = vector.shape_cast %94 : vector<19x16xf32> to vector<1x19x16xf32>
    tpu.vector_store %arg10[%c3_86, %c0_87, %c0_88], %97 {strides = array<i32>} : memref<16x19x16xf32, #tpu.memory_space<vmem>>, vector<1x19x16xf32>,
    %c0_89 = arith.constant 0 : index
    %c4_90 = arith.constant 4 : index
    %c0_91 = arith.constant 0 : index
    %98 = vector.load %arg8[%c0_89, %c4_90, %c0_91] : memref<6x16x16xf32, #tpu.memory_space<vmem>>, vector<6x1x16xf32>
    %99 = vector.shape_cast %98 : vector<6x1x16xf32> to vector<6x16xf32>
    %cst_92 = arith.constant dense<0.000000e+00> : vector<147x16xf32>
    %100 = tpu.matmul %44, %99, %cst_92 {dimension_numbers = #tpu.dot_dimension_numbers<[1], [0], [0], [1], [0, 0, 1, 1], [], []>} : vector<147x6xf32>, vector<6x16xf32>, vector<147x16xf32> -> vector<147x16xf32>
    %101 = vector.broadcast %45 : vector<147x1xf32> to vector<147x16xf32>
    %102 = arith.addf %100, %101 : vector<147x16xf32>
    %103 = vector.extract_strided_slice %102 {offsets = [0, 0], sizes = [128, 16], strides = [1, 1]} : vector<147x16xf32> to vector<128x16xf32>
    %c4_93 = arith.constant 4 : index
    %c0_94 = arith.constant 0 : index
    %c0_95 = arith.constant 0 : index
    %104 = vector.load %arg9[%c4_93, %c0_94, %c0_95] : memref<16x128x16xf32, #tpu.memory_space<vmem>>, vector<1x128x16xf32>
    %105 = vector.shape_cast %104 : vector<1x128x16xf32> to vector<128x16xf32>
    %106 = vector.shape_cast %103 : vector<128x16xf32> to vector<1x128x16xf32>
    tpu.vector_store %arg9[%c4_93, %c0_94, %c0_95], %106 {strides = array<i32>} : memref<16x128x16xf32, #tpu.memory_space<vmem>>, vector<1x128x16xf32>,
    %107 = vector.extract_strided_slice %102 {offsets = [128, 0], sizes = [19, 16], strides = [1, 1]} : vector<147x16xf32> to vector<19x16xf32>
    %c4_96 = arith.constant 4 : index
    %c0_97 = arith.constant 0 : index
    %c0_98 = arith.constant 0 : index
    %108 = vector.load %arg10[%c4_96, %c0_97, %c0_98] : memref<16x19x16xf32, #tpu.memory_space<vmem>>, vector<1x19x16xf32>
    %109 = vector.shape_cast %108 : vector<1x19x16xf32> to vector<19x16xf32>
    %110 = vector.shape_cast %107 : vector<19x16xf32> to vector<1x19x16xf32>
    tpu.vector_store %arg10[%c4_96, %c0_97, %c0_98], %110 {strides = array<i32>} : memref<16x19x16xf32, #tpu.memory_space<vmem>>, vector<1x19x16xf32>,
    %c0_99 = arith.constant 0 : index
    %c5_100 = arith.constant 5 : index
    %c0_101 = arith.constant 0 : index
    %111 = vector.load %arg8[%c0_99, %c5_100, %c0_101] : memref<6x16x16xf32, #tpu.memory_space<vmem>>, vector<6x1x16xf32>
    %112 = vector.shape_cast %111 : vector<6x1x16xf32> to vector<6x16xf32>
    %cst_102 = arith.constant dense<0.000000e+00> : vector<147x16xf32>
    %113 = tpu.matmul %44, %112, %cst_102 {dimension_numbers = #tpu.dot_dimension_numbers<[1], [0], [0], [1], [0, 0, 1, 1], [], []>} : vector<147x6xf32>, vector<6x16xf32>, vector<147x16xf32> -> vector<147x16xf32>
    %114 = vector.broadcast %45 : vector<147x1xf32> to vector<147x16xf32>
    %115 = arith.addf %113, %114 : vector<147x16xf32>
    %116 = vector.extract_strided_slice %115 {offsets = [0, 0], sizes = [128, 16], strides = [1, 1]} : vector<147x16xf32> to vector<128x16xf32>
    %c5_103 = arith.constant 5 : index
    %c0_104 = arith.constant 0 : index
    %c0_105 = arith.constant 0 : index
    %117 = vector.load %arg9[%c5_103, %c0_104, %c0_105] : memref<16x128x16xf32, #tpu.memory_space<vmem>>, vector<1x128x16xf32>
    %118 = vector.shape_cast %117 : vector<1x128x16xf32> to vector<128x16xf32>
    %119 = vector.shape_cast %116 : vector<128x16xf32> to vector<1x128x16xf32>
    tpu.vector_store %arg9[%c5_103, %c0_104, %c0_105], %119 {strides = array<i32>} : memref<16x128x16xf32, #tpu.memory_space<vmem>>, vector<1x128x16xf32>,
    %120 = vector.extract_strided_slice %115 {offsets = [128, 0], sizes = [19, 16], strides = [1, 1]} : vector<147x16xf32> to vector<19x16xf32>
    %c5_106 = arith.constant 5 : index
    %c0_107 = arith.constant 0 : index
    %c0_108 = arith.constant 0 : index
    %121 = vector.load %arg10[%c5_106, %c0_107, %c0_108] : memref<16x19x16xf32, #tpu.memory_space<vmem>>, vector<1x19x16xf32>
    %122 = vector.shape_cast %121 : vector<1x19x16xf32> to vector<19x16xf32>
    %123 = vector.shape_cast %120 : vector<19x16xf32> to vector<1x19x16xf32>
    tpu.vector_store %arg10[%c5_106, %c0_107, %c0_108], %123 {strides = array<i32>} : memref<16x19x16xf32, #tpu.memory_space<vmem>>, vector<1x19x16xf32>,
    %c0_109 = arith.constant 0 : index
    %c6 = arith.constant 6 : index
    %c0_110 = arith.constant 0 : index
    %124 = vector.load %arg8[%c0_109, %c6, %c0_110] : memref<6x16x16xf32, #tpu.memory_space<vmem>>, vector<6x1x16xf32>
    %125 = vector.shape_cast %124 : vector<6x1x16xf32> to vector<6x16xf32>
    %cst_111 = arith.constant dense<0.000000e+00> : vector<147x16xf32>
    %126 = tpu.matmul %44, %125, %cst_111 {dimension_numbers = #tpu.dot_dimension_numbers<[1], [0], [0], [1], [0, 0, 1, 1], [], []>} : vector<147x6xf32>, vector<6x16xf32>, vector<147x16xf32> -> vector<147x16xf32>
    %127 = vector.broadcast %45 : vector<147x1xf32> to vector<147x16xf32>
    %128 = arith.addf %126, %127 : vector<147x16xf32>
    %129 = vector.extract_strided_slice %128 {offsets = [0, 0], sizes = [128, 16], strides = [1, 1]} : vector<147x16xf32> to vector<128x16xf32>
    %c6_112 = arith.constant 6 : index
    %c0_113 = arith.constant 0 : index
    %c0_114 = arith.constant 0 : index
    %130 = vector.load %arg9[%c6_112, %c0_113, %c0_114] : memref<16x128x16xf32, #tpu.memory_space<vmem>>, vector<1x128x16xf32>
    %131 = vector.shape_cast %130 : vector<1x128x16xf32> to vector<128x16xf32>
    %132 = vector.shape_cast %129 : vector<128x16xf32> to vector<1x128x16xf32>
    tpu.vector_store %arg9[%c6_112, %c0_113, %c0_114], %132 {strides = array<i32>} : memref<16x128x16xf32, #tpu.memory_space<vmem>>, vector<1x128x16xf32>,
    %133 = vector.extract_strided_slice %128 {offsets = [128, 0], sizes = [19, 16], strides = [1, 1]} : vector<147x16xf32> to vector<19x16xf32>
    %c6_115 = arith.constant 6 : index
    %c0_116 = arith.constant 0 : index
    %c0_117 = arith.constant 0 : index
    %134 = vector.load %arg10[%c6_115, %c0_116, %c0_117] : memref<16x19x16xf32, #tpu.memory_space<vmem>>, vector<1x19x16xf32>
    %135 = vector.shape_cast %134 : vector<1x19x16xf32> to vector<19x16xf32>
    %136 = vector.shape_cast %133 : vector<19x16xf32> to vector<1x19x16xf32>
    tpu.vector_store %arg10[%c6_115, %c0_116, %c0_117], %136 {strides = array<i32>} : memref<16x19x16xf32, #tpu.memory_space<vmem>>, vector<1x19x16xf32>,
    %c0_118 = arith.constant 0 : index
    %c7 = arith.constant 7 : index
    %c0_119 = arith.constant 0 : index
    %137 = vector.load %arg8[%c0_118, %c7, %c0_119] : memref<6x16x16xf32, #tpu.memory_space<vmem>>, vector<6x1x16xf32>
    %138 = vector.shape_cast %137 : vector<6x1x16xf32> to vector<6x16xf32>
    %cst_120 = arith.constant dense<0.000000e+00> : vector<147x16xf32>
    %139 = tpu.matmul %44, %138, %cst_120 {dimension_numbers = #tpu.dot_dimension_numbers<[1], [0], [0], [1], [0, 0, 1, 1], [], []>} : vector<147x6xf32>, vector<6x16xf32>, vector<147x16xf32> -> vector<147x16xf32>
    %140 = vector.broadcast %45 : vector<147x1xf32> to vector<147x16xf32>
    %141 = arith.addf %139, %140 : vector<147x16xf32>
    %142 = vector.extract_strided_slice %141 {offsets = [0, 0], sizes = [128, 16], strides = [1, 1]} : vector<147x16xf32> to vector<128x16xf32>
    %c7_121 = arith.constant 7 : index
    %c0_122 = arith.constant 0 : index
    %c0_123 = arith.constant 0 : index
    %143 = vector.load %arg9[%c7_121, %c0_122, %c0_123] : memref<16x128x16xf32, #tpu.memory_space<vmem>>, vector<1x128x16xf32>
    %144 = vector.shape_cast %143 : vector<1x128x16xf32> to vector<128x16xf32>
    %145 = vector.shape_cast %142 : vector<128x16xf32> to vector<1x128x16xf32>
    tpu.vector_store %arg9[%c7_121, %c0_122, %c0_123], %145 {strides = array<i32>} : memref<16x128x16xf32, #tpu.memory_space<vmem>>, vector<1x128x16xf32>,
    %146 = vector.extract_strided_slice %141 {offsets = [128, 0], sizes = [19, 16], strides = [1, 1]} : vector<147x16xf32> to vector<19x16xf32>
    %c7_124 = arith.constant 7 : index
    %c0_125 = arith.constant 0 : index
    %c0_126 = arith.constant 0 : index
    %147 = vector.load %arg10[%c7_124, %c0_125, %c0_126] : memref<16x19x16xf32, #tpu.memory_space<vmem>>, vector<1x19x16xf32>
    %148 = vector.shape_cast %147 : vector<1x19x16xf32> to vector<19x16xf32>
    %149 = vector.shape_cast %146 : vector<19x16xf32> to vector<1x19x16xf32>
    tpu.vector_store %arg10[%c7_124, %c0_125, %c0_126], %149 {strides = array<i32>} : memref<16x19x16xf32, #tpu.memory_space<vmem>>, vector<1x19x16xf32>,
    %c0_127 = arith.constant 0 : index
    %c8 = arith.constant 8 : index
    %c0_128 = arith.constant 0 : index
    %150 = vector.load %arg8[%c0_127, %c8, %c0_128] : memref<6x16x16xf32, #tpu.memory_space<vmem>>, vector<6x1x16xf32>
    %151 = vector.shape_cast %150 : vector<6x1x16xf32> to vector<6x16xf32>
    %cst_129 = arith.constant dense<0.000000e+00> : vector<147x16xf32>
    %152 = tpu.matmul %44, %151, %cst_129 {dimension_numbers = #tpu.dot_dimension_numbers<[1], [0], [0], [1], [0, 0, 1, 1], [], []>} : vector<147x6xf32>, vector<6x16xf32>, vector<147x16xf32> -> vector<147x16xf32>
    %153 = vector.broadcast %45 : vector<147x1xf32> to vector<147x16xf32>
    %154 = arith.addf %152, %153 : vector<147x16xf32>
    %155 = vector.extract_strided_slice %154 {offsets = [0, 0], sizes = [128, 16], strides = [1, 1]} : vector<147x16xf32> to vector<128x16xf32>
    %c8_130 = arith.constant 8 : index
    %c0_131 = arith.constant 0 : index
    %c0_132 = arith.constant 0 : index
    %156 = vector.load %arg9[%c8_130, %c0_131, %c0_132] : memref<16x128x16xf32, #tpu.memory_space<vmem>>, vector<1x128x16xf32>
    %157 = vector.shape_cast %156 : vector<1x128x16xf32> to vector<128x16xf32>
    %158 = vector.shape_cast %155 : vector<128x16xf32> to vector<1x128x16xf32>
    tpu.vector_store %arg9[%c8_130, %c0_131, %c0_132], %158 {strides = array<i32>} : memref<16x128x16xf32, #tpu.memory_space<vmem>>, vector<1x128x16xf32>,
    %159 = vector.extract_strided_slice %154 {offsets = [128, 0], sizes = [19, 16], strides = [1, 1]} : vector<147x16xf32> to vector<19x16xf32>
    %c8_133 = arith.constant 8 : index
    %c0_134 = arith.constant 0 : index
    %c0_135 = arith.constant 0 : index
    %160 = vector.load %arg10[%c8_133, %c0_134, %c0_135] : memref<16x19x16xf32, #tpu.memory_space<vmem>>, vector<1x19x16xf32>
    %161 = vector.shape_cast %160 : vector<1x19x16xf32> to vector<19x16xf32>
    %162 = vector.shape_cast %159 : vector<19x16xf32> to vector<1x19x16xf32>
    tpu.vector_store %arg10[%c8_133, %c0_134, %c0_135], %162 {strides = array<i32>} : memref<16x19x16xf32, #tpu.memory_space<vmem>>, vector<1x19x16xf32>,
    %c0_136 = arith.constant 0 : index
    %c9 = arith.constant 9 : index
    %c0_137 = arith.constant 0 : index
    %163 = vector.load %arg8[%c0_136, %c9, %c0_137] : memref<6x16x16xf32, #tpu.memory_space<vmem>>, vector<6x1x16xf32>
    %164 = vector.shape_cast %163 : vector<6x1x16xf32> to vector<6x16xf32>
    %cst_138 = arith.constant dense<0.000000e+00> : vector<147x16xf32>
    %165 = tpu.matmul %44, %164, %cst_138 {dimension_numbers = #tpu.dot_dimension_numbers<[1], [0], [0], [1], [0, 0, 1, 1], [], []>} : vector<147x6xf32>, vector<6x16xf32>, vector<147x16xf32> -> vector<147x16xf32>
    %166 = vector.broadcast %45 : vector<147x1xf32> to vector<147x16xf32>
    %167 = arith.addf %165, %166 : vector<147x16xf32>
    %168 = vector.extract_strided_slice %167 {offsets = [0, 0], sizes = [128, 16], strides = [1, 1]} : vector<147x16xf32> to vector<128x16xf32>
    %c9_139 = arith.constant 9 : index
    %c0_140 = arith.constant 0 : index
    %c0_141 = arith.constant 0 : index
    %169 = vector.load %arg9[%c9_139, %c0_140, %c0_141] : memref<16x128x16xf32, #tpu.memory_space<vmem>>, vector<1x128x16xf32>
    %170 = vector.shape_cast %169 : vector<1x128x16xf32> to vector<128x16xf32>
    %171 = vector.shape_cast %168 : vector<128x16xf32> to vector<1x128x16xf32>
    tpu.vector_store %arg9[%c9_139, %c0_140, %c0_141], %171 {strides = array<i32>} : memref<16x128x16xf32, #tpu.memory_space<vmem>>, vector<1x128x16xf32>,
    %172 = vector.extract_strided_slice %167 {offsets = [128, 0], sizes = [19, 16], strides = [1, 1]} : vector<147x16xf32> to vector<19x16xf32>
    %c9_142 = arith.constant 9 : index
    %c0_143 = arith.constant 0 : index
    %c0_144 = arith.constant 0 : index
    %173 = vector.load %arg10[%c9_142, %c0_143, %c0_144] : memref<16x19x16xf32, #tpu.memory_space<vmem>>, vector<1x19x16xf32>
    %174 = vector.shape_cast %173 : vector<1x19x16xf32> to vector<19x16xf32>
    %175 = vector.shape_cast %172 : vector<19x16xf32> to vector<1x19x16xf32>
    tpu.vector_store %arg10[%c9_142, %c0_143, %c0_144], %175 {strides = array<i32>} : memref<16x19x16xf32, #tpu.memory_space<vmem>>, vector<1x19x16xf32>,
    %c0_145 = arith.constant 0 : index
    %c10 = arith.constant 10 : index
    %c0_146 = arith.constant 0 : index
    %176 = vector.load %arg8[%c0_145, %c10, %c0_146] : memref<6x16x16xf32, #tpu.memory_space<vmem>>, vector<6x1x16xf32>
    %177 = vector.shape_cast %176 : vector<6x1x16xf32> to vector<6x16xf32>
    %cst_147 = arith.constant dense<0.000000e+00> : vector<147x16xf32>
    %178 = tpu.matmul %44, %177, %cst_147 {dimension_numbers = #tpu.dot_dimension_numbers<[1], [0], [0], [1], [0, 0, 1, 1], [], []>} : vector<147x6xf32>, vector<6x16xf32>, vector<147x16xf32> -> vector<147x16xf32>
    %179 = vector.broadcast %45 : vector<147x1xf32> to vector<147x16xf32>
    %180 = arith.addf %178, %179 : vector<147x16xf32>
    %181 = vector.extract_strided_slice %180 {offsets = [0, 0], sizes = [128, 16], strides = [1, 1]} : vector<147x16xf32> to vector<128x16xf32>
    %c10_148 = arith.constant 10 : index
    %c0_149 = arith.constant 0 : index
    %c0_150 = arith.constant 0 : index
    %182 = vector.load %arg9[%c10_148, %c0_149, %c0_150] : memref<16x128x16xf32, #tpu.memory_space<vmem>>, vector<1x128x16xf32>
    %183 = vector.shape_cast %182 : vector<1x128x16xf32> to vector<128x16xf32>
    %184 = vector.shape_cast %181 : vector<128x16xf32> to vector<1x128x16xf32>
    tpu.vector_store %arg9[%c10_148, %c0_149, %c0_150], %184 {strides = array<i32>} : memref<16x128x16xf32, #tpu.memory_space<vmem>>, vector<1x128x16xf32>,
    %185 = vector.extract_strided_slice %180 {offsets = [128, 0], sizes = [19, 16], strides = [1, 1]} : vector<147x16xf32> to vector<19x16xf32>
    %c10_151 = arith.constant 10 : index
    %c0_152 = arith.constant 0 : index
    %c0_153 = arith.constant 0 : index
    %186 = vector.load %arg10[%c10_151, %c0_152, %c0_153] : memref<16x19x16xf32, #tpu.memory_space<vmem>>, vector<1x19x16xf32>
    %187 = vector.shape_cast %186 : vector<1x19x16xf32> to vector<19x16xf32>
    %188 = vector.shape_cast %185 : vector<19x16xf32> to vector<1x19x16xf32>
    tpu.vector_store %arg10[%c10_151, %c0_152, %c0_153], %188 {strides = array<i32>} : memref<16x19x16xf32, #tpu.memory_space<vmem>>, vector<1x19x16xf32>,
    %c0_154 = arith.constant 0 : index
    %c11 = arith.constant 11 : index
    %c0_155 = arith.constant 0 : index
    %189 = vector.load %arg8[%c0_154, %c11, %c0_155] : memref<6x16x16xf32, #tpu.memory_space<vmem>>, vector<6x1x16xf32>
    %190 = vector.shape_cast %189 : vector<6x1x16xf32> to vector<6x16xf32>
    %cst_156 = arith.constant dense<0.000000e+00> : vector<147x16xf32>
    %191 = tpu.matmul %44, %190, %cst_156 {dimension_numbers = #tpu.dot_dimension_numbers<[1], [0], [0], [1], [0, 0, 1, 1], [], []>} : vector<147x6xf32>, vector<6x16xf32>, vector<147x16xf32> -> vector<147x16xf32>
    %192 = vector.broadcast %45 : vector<147x1xf32> to vector<147x16xf32>
    %193 = arith.addf %191, %192 : vector<147x16xf32>
    %194 = vector.extract_strided_slice %193 {offsets = [0, 0], sizes = [128, 16], strides = [1, 1]} : vector<147x16xf32> to vector<128x16xf32>
    %c11_157 = arith.constant 11 : index
    %c0_158 = arith.constant 0 : index
    %c0_159 = arith.constant 0 : index
    %195 = vector.load %arg9[%c11_157, %c0_158, %c0_159] : memref<16x128x16xf32, #tpu.memory_space<vmem>>, vector<1x128x16xf32>
    %196 = vector.shape_cast %195 : vector<1x128x16xf32> to vector<128x16xf32>
    %197 = vector.shape_cast %194 : vector<128x16xf32> to vector<1x128x16xf32>
    tpu.vector_store %arg9[%c11_157, %c0_158, %c0_159], %197 {strides = array<i32>} : memref<16x128x16xf32, #tpu.memory_space<vmem>>, vector<1x128x16xf32>,
    %198 = vector.extract_strided_slice %193 {offsets = [128, 0], sizes = [19, 16], strides = [1, 1]} : vector<147x16xf32> to vector<19x16xf32>
    %c11_160 = arith.constant 11 : index
    %c0_161 = arith.constant 0 : index
    %c0_162 = arith.constant 0 : index
    %199 = vector.load %arg10[%c11_160, %c0_161, %c0_162] : memref<16x19x16xf32, #tpu.memory_space<vmem>>, vector<1x19x16xf32>
    %200 = vector.shape_cast %199 : vector<1x19x16xf32> to vector<19x16xf32>
    %201 = vector.shape_cast %198 : vector<19x16xf32> to vector<1x19x16xf32>
    tpu.vector_store %arg10[%c11_160, %c0_161, %c0_162], %201 {strides = array<i32>} : memref<16x19x16xf32, #tpu.memory_space<vmem>>, vector<1x19x16xf32>,
    %c0_163 = arith.constant 0 : index
    %c12 = arith.constant 12 : index
    %c0_164 = arith.constant 0 : index
    %202 = vector.load %arg8[%c0_163, %c12, %c0_164] : memref<6x16x16xf32, #tpu.memory_space<vmem>>, vector<6x1x16xf32>
    %203 = vector.shape_cast %202 : vector<6x1x16xf32> to vector<6x16xf32>
    %cst_165 = arith.constant dense<0.000000e+00> : vector<147x16xf32>
    %204 = tpu.matmul %44, %203, %cst_165 {dimension_numbers = #tpu.dot_dimension_numbers<[1], [0], [0], [1], [0, 0, 1, 1], [], []>} : vector<147x6xf32>, vector<6x16xf32>, vector<147x16xf32> -> vector<147x16xf32>
    %205 = vector.broadcast %45 : vector<147x1xf32> to vector<147x16xf32>
    %206 = arith.addf %204, %205 : vector<147x16xf32>
    %207 = vector.extract_strided_slice %206 {offsets = [0, 0], sizes = [128, 16], strides = [1, 1]} : vector<147x16xf32> to vector<128x16xf32>
    %c12_166 = arith.constant 12 : index
    %c0_167 = arith.constant 0 : index
    %c0_168 = arith.constant 0 : index
    %208 = vector.load %arg9[%c12_166, %c0_167, %c0_168] : memref<16x128x16xf32, #tpu.memory_space<vmem>>, vector<1x128x16xf32>
    %209 = vector.shape_cast %208 : vector<1x128x16xf32> to vector<128x16xf32>
    %210 = vector.shape_cast %207 : vector<128x16xf32> to vector<1x128x16xf32>
    tpu.vector_store %arg9[%c12_166, %c0_167, %c0_168], %210 {strides = array<i32>} : memref<16x128x16xf32, #tpu.memory_space<vmem>>, vector<1x128x16xf32>,
    %211 = vector.extract_strided_slice %206 {offsets = [128, 0], sizes = [19, 16], strides = [1, 1]} : vector<147x16xf32> to vector<19x16xf32>
    %c12_169 = arith.constant 12 : index
    %c0_170 = arith.constant 0 : index
    %c0_171 = arith.constant 0 : index
    %212 = vector.load %arg10[%c12_169, %c0_170, %c0_171] : memref<16x19x16xf32, #tpu.memory_space<vmem>>, vector<1x19x16xf32>
    %213 = vector.shape_cast %212 : vector<1x19x16xf32> to vector<19x16xf32>
    %214 = vector.shape_cast %211 : vector<19x16xf32> to vector<1x19x16xf32>
    tpu.vector_store %arg10[%c12_169, %c0_170, %c0_171], %214 {strides = array<i32>} : memref<16x19x16xf32, #tpu.memory_space<vmem>>, vector<1x19x16xf32>,
    %c0_172 = arith.constant 0 : index
    %c13 = arith.constant 13 : index
    %c0_173 = arith.constant 0 : index
    %215 = vector.load %arg8[%c0_172, %c13, %c0_173] : memref<6x16x16xf32, #tpu.memory_space<vmem>>, vector<6x1x16xf32>
    %216 = vector.shape_cast %215 : vector<6x1x16xf32> to vector<6x16xf32>
    %cst_174 = arith.constant dense<0.000000e+00> : vector<147x16xf32>
    %217 = tpu.matmul %44, %216, %cst_174 {dimension_numbers = #tpu.dot_dimension_numbers<[1], [0], [0], [1], [0, 0, 1, 1], [], []>} : vector<147x6xf32>, vector<6x16xf32>, vector<147x16xf32> -> vector<147x16xf32>
    %218 = vector.broadcast %45 : vector<147x1xf32> to vector<147x16xf32>
    %219 = arith.addf %217, %218 : vector<147x16xf32>
    %220 = vector.extract_strided_slice %219 {offsets = [0, 0], sizes = [128, 16], strides = [1, 1]} : vector<147x16xf32> to vector<128x16xf32>
    %c13_175 = arith.constant 13 : index
    %c0_176 = arith.constant 0 : index
    %c0_177 = arith.constant 0 : index
    %221 = vector.load %arg9[%c13_175, %c0_176, %c0_177] : memref<16x128x16xf32, #tpu.memory_space<vmem>>, vector<1x128x16xf32>
    %222 = vector.shape_cast %221 : vector<1x128x16xf32> to vector<128x16xf32>
    %223 = vector.shape_cast %220 : vector<128x16xf32> to vector<1x128x16xf32>
    tpu.vector_store %arg9[%c13_175, %c0_176, %c0_177], %223 {strides = array<i32>} : memref<16x128x16xf32, #tpu.memory_space<vmem>>, vector<1x128x16xf32>,
    %224 = vector.extract_strided_slice %219 {offsets = [128, 0], sizes = [19, 16], strides = [1, 1]} : vector<147x16xf32> to vector<19x16xf32>
    %c13_178 = arith.constant 13 : index
    %c0_179 = arith.constant 0 : index
    %c0_180 = arith.constant 0 : index
    %225 = vector.load %arg10[%c13_178, %c0_179, %c0_180] : memref<16x19x16xf32, #tpu.memory_space<vmem>>, vector<1x19x16xf32>
    %226 = vector.shape_cast %225 : vector<1x19x16xf32> to vector<19x16xf32>
    %227 = vector.shape_cast %224 : vector<19x16xf32> to vector<1x19x16xf32>
    tpu.vector_store %arg10[%c13_178, %c0_179, %c0_180], %227 {strides = array<i32>} : memref<16x19x16xf32, #tpu.memory_space<vmem>>, vector<1x19x16xf32>,
    %c0_181 = arith.constant 0 : index
    %c14 = arith.constant 14 : index
    %c0_182 = arith.constant 0 : index
    %228 = vector.load %arg8[%c0_181, %c14, %c0_182] : memref<6x16x16xf32, #tpu.memory_space<vmem>>, vector<6x1x16xf32>
    %229 = vector.shape_cast %228 : vector<6x1x16xf32> to vector<6x16xf32>
    %cst_183 = arith.constant dense<0.000000e+00> : vector<147x16xf32>
    %230 = tpu.matmul %44, %229, %cst_183 {dimension_numbers = #tpu.dot_dimension_numbers<[1], [0], [0], [1], [0, 0, 1, 1], [], []>} : vector<147x6xf32>, vector<6x16xf32>, vector<147x16xf32> -> vector<147x16xf32>
    %231 = vector.broadcast %45 : vector<147x1xf32> to vector<147x16xf32>
    %232 = arith.addf %230, %231 : vector<147x16xf32>
    %233 = vector.extract_strided_slice %232 {offsets = [0, 0], sizes = [128, 16], strides = [1, 1]} : vector<147x16xf32> to vector<128x16xf32>
    %c14_184 = arith.constant 14 : index
    %c0_185 = arith.constant 0 : index
    %c0_186 = arith.constant 0 : index
    %234 = vector.load %arg9[%c14_184, %c0_185, %c0_186] : memref<16x128x16xf32, #tpu.memory_space<vmem>>, vector<1x128x16xf32>
    %235 = vector.shape_cast %234 : vector<1x128x16xf32> to vector<128x16xf32>
    %236 = vector.shape_cast %233 : vector<128x16xf32> to vector<1x128x16xf32>
    tpu.vector_store %arg9[%c14_184, %c0_185, %c0_186], %236 {strides = array<i32>} : memref<16x128x16xf32, #tpu.memory_space<vmem>>, vector<1x128x16xf32>,
    %237 = vector.extract_strided_slice %232 {offsets = [128, 0], sizes = [19, 16], strides = [1, 1]} : vector<147x16xf32> to vector<19x16xf32>
    %c14_187 = arith.constant 14 : index
    %c0_188 = arith.constant 0 : index
    %c0_189 = arith.constant 0 : index
    %238 = vector.load %arg10[%c14_187, %c0_188, %c0_189] : memref<16x19x16xf32, #tpu.memory_space<vmem>>, vector<1x19x16xf32>
    %239 = vector.shape_cast %238 : vector<1x19x16xf32> to vector<19x16xf32>
    %240 = vector.shape_cast %237 : vector<19x16xf32> to vector<1x19x16xf32>
    tpu.vector_store %arg10[%c14_187, %c0_188, %c0_189], %240 {strides = array<i32>} : memref<16x19x16xf32, #tpu.memory_space<vmem>>, vector<1x19x16xf32>,
    %c0_190 = arith.constant 0 : index
    %c15 = arith.constant 15 : index
    %c0_191 = arith.constant 0 : index
    %241 = vector.load %arg8[%c0_190, %c15, %c0_191] : memref<6x16x16xf32, #tpu.memory_space<vmem>>, vector<6x1x16xf32>
    %242 = vector.shape_cast %241 : vector<6x1x16xf32> to vector<6x16xf32>
    %cst_192 = arith.constant dense<0.000000e+00> : vector<147x16xf32>
    %243 = tpu.matmul %44, %242, %cst_192 {dimension_numbers = #tpu.dot_dimension_numbers<[1], [0], [0], [1], [0, 0, 1, 1], [], []>} : vector<147x6xf32>, vector<6x16xf32>, vector<147x16xf32> -> vector<147x16xf32>
    %244 = vector.broadcast %45 : vector<147x1xf32> to vector<147x16xf32>
    %245 = arith.addf %243, %244 : vector<147x16xf32>
    %246 = vector.extract_strided_slice %245 {offsets = [0, 0], sizes = [128, 16], strides = [1, 1]} : vector<147x16xf32> to vector<128x16xf32>
    %c15_193 = arith.constant 15 : index
    %c0_194 = arith.constant 0 : index
    %c0_195 = arith.constant 0 : index
    %247 = vector.load %arg9[%c15_193, %c0_194, %c0_195] : memref<16x128x16xf32, #tpu.memory_space<vmem>>, vector<1x128x16xf32>
    %248 = vector.shape_cast %247 : vector<1x128x16xf32> to vector<128x16xf32>
    %249 = vector.shape_cast %246 : vector<128x16xf32> to vector<1x128x16xf32>
    tpu.vector_store %arg9[%c15_193, %c0_194, %c0_195], %249 {strides = array<i32>} : memref<16x128x16xf32, #tpu.memory_space<vmem>>, vector<1x128x16xf32>,
    %250 = vector.extract_strided_slice %245 {offsets = [128, 0], sizes = [19, 16], strides = [1, 1]} : vector<147x16xf32> to vector<19x16xf32>
    %c15_196 = arith.constant 15 : index
    %c0_197 = arith.constant 0 : index
    %c0_198 = arith.constant 0 : index
    %251 = vector.load %arg10[%c15_196, %c0_197, %c0_198] : memref<16x19x16xf32, #tpu.memory_space<vmem>>, vector<1x19x16xf32>
    %252 = vector.shape_cast %251 : vector<1x19x16xf32> to vector<19x16xf32>
    %253 = vector.shape_cast %250 : vector<19x16xf32> to vector<1x19x16xf32>
    tpu.vector_store %arg10[%c15_196, %c0_197, %c0_198], %253 {strides = array<i32>} : memref<16x19x16xf32, #tpu.memory_space<vmem>>, vector<1x19x16xf32>,
    %c0_199 = arith.constant 0 : index
    %c0_200 = arith.constant 0 : index
    %254 = vector.load %arg6[%c0_199, %c0_200] : memref<16x8xf32, #tpu.memory_space<vmem>>, vector<16x8xf32>
    %c0_201 = arith.constant 0 : index
    %c0_202 = arith.constant 0 : index
    %255 = vector.load %arg7[%c0_201, %c0_202] : memref<8x16xf32, #tpu.memory_space<vmem>>, vector<8x16xf32>
    %c0_203 = arith.constant 0 : index
    %c16 = arith.constant 16 : index
    %c0_204 = arith.constant 0 : index
    %256 = vector.load %arg10[%c0_203, %c16, %c0_204] : memref<16x19x16xf32, #tpu.memory_space<vmem>>, vector<16x1x16xf32>
    %257 = vector.shape_cast %256 : vector<16x1x16xf32> to vector<16x16xf32>
    %cst_205 = arith.constant dense<0.000000e+00> : vector<16x8xf32>
    %258 = tpu.matmul %257, %254, %cst_205 {dimension_numbers = #tpu.dot_dimension_numbers<[1], [0], [0], [1], [0, 0, 1, 1], [], []>} : vector<16x16xf32>, vector<16x8xf32>, vector<16x8xf32> -> vector<16x8xf32>
    %cst_206 = arith.constant dense<0.000000e+00> : vector<8x8xf32>
    %259 = tpu.matmul %255, %258, %cst_206 {dimension_numbers = #tpu.dot_dimension_numbers<[1], [0], [0], [1], [0, 0, 1, 1], [], []>} : vector<8x16xf32>, vector<16x8xf32>, vector<8x8xf32> -> vector<8x8xf32>
    %c0_207 = arith.constant 0 : index
    %c0_208 = arith.constant 0 : index
    %c0_209 = arith.constant 0 : index
    %260 = vector.load %arg11[%c0_207, %c0_208, %c0_209] : memref<3x8x8xf32, #tpu.memory_space<vmem>>, vector<1x8x8xf32>
    %261 = vector.shape_cast %260 : vector<1x8x8xf32> to vector<8x8xf32>
    %262 = vector.shape_cast %259 : vector<8x8xf32> to vector<1x8x8xf32>
    tpu.vector_store %arg11[%c0_207, %c0_208, %c0_209], %262 {strides = array<i32>} : memref<3x8x8xf32, #tpu.memory_space<vmem>>, vector<1x8x8xf32>,
    %c0_210 = arith.constant 0 : index
    %c17 = arith.constant 17 : index
    %c0_211 = arith.constant 0 : index
    %263 = vector.load %arg10[%c0_210, %c17, %c0_211] : memref<16x19x16xf32, #tpu.memory_space<vmem>>, vector<16x1x16xf32>
    %264 = vector.shape_cast %263 : vector<16x1x16xf32> to vector<16x16xf32>
    %cst_212 = arith.constant dense<0.000000e+00> : vector<16x8xf32>
    %265 = tpu.matmul %264, %254, %cst_212 {dimension_numbers = #tpu.dot_dimension_numbers<[1], [0], [0], [1], [0, 0, 1, 1], [], []>} : vector<16x16xf32>, vector<16x8xf32>, vector<16x8xf32> -> vector<16x8xf32>
    %cst_213 = arith.constant dense<0.000000e+00> : vector<8x8xf32>
    %266 = tpu.matmul %255, %265, %cst_213 {dimension_numbers = #tpu.dot_dimension_numbers<[1], [0], [0], [1], [0, 0, 1, 1], [], []>} : vector<8x16xf32>, vector<16x8xf32>, vector<8x8xf32> -> vector<8x8xf32>
    %c1_214 = arith.constant 1 : index
    %c0_215 = arith.constant 0 : index
    %c0_216 = arith.constant 0 : index
    %267 = vector.load %arg11[%c1_214, %c0_215, %c0_216] : memref<3x8x8xf32, #tpu.memory_space<vmem>>, vector<1x8x8xf32>
    %268 = vector.shape_cast %267 : vector<1x8x8xf32> to vector<8x8xf32>
    %269 = vector.shape_cast %266 : vector<8x8xf32> to vector<1x8x8xf32>
    tpu.vector_store %arg11[%c1_214, %c0_215, %c0_216], %269 {strides = array<i32>} : memref<3x8x8xf32, #tpu.memory_space<vmem>>, vector<1x8x8xf32>,
    %c0_217 = arith.constant 0 : index
    %c18 = arith.constant 18 : index
    %c0_218 = arith.constant 0 : index
    %270 = vector.load %arg10[%c0_217, %c18, %c0_218] : memref<16x19x16xf32, #tpu.memory_space<vmem>>, vector<16x1x16xf32>
    %271 = vector.shape_cast %270 : vector<16x1x16xf32> to vector<16x16xf32>
    %cst_219 = arith.constant dense<0.000000e+00> : vector<16x8xf32>
    %272 = tpu.matmul %271, %254, %cst_219 {dimension_numbers = #tpu.dot_dimension_numbers<[1], [0], [0], [1], [0, 0, 1, 1], [], []>} : vector<16x16xf32>, vector<16x8xf32>, vector<16x8xf32> -> vector<16x8xf32>
    %cst_220 = arith.constant dense<0.000000e+00> : vector<8x8xf32>
    %273 = tpu.matmul %255, %272, %cst_220 {dimension_numbers = #tpu.dot_dimension_numbers<[1], [0], [0], [1], [0, 0, 1, 1], [], []>} : vector<8x16xf32>, vector<16x8xf32>, vector<8x8xf32> -> vector<8x8xf32>
    %c2_221 = arith.constant 2 : index
    %c0_222 = arith.constant 0 : index
    %c0_223 = arith.constant 0 : index
    %274 = vector.load %arg11[%c2_221, %c0_222, %c0_223] : memref<3x8x8xf32, #tpu.memory_space<vmem>>, vector<1x8x8xf32>
    %275 = vector.shape_cast %274 : vector<1x8x8xf32> to vector<8x8xf32>
    %276 = vector.shape_cast %273 : vector<8x8xf32> to vector<1x8x8xf32>
    tpu.vector_store %arg11[%c2_221, %c0_222, %c0_223], %276 {strides = array<i32>} : memref<3x8x8xf32, #tpu.memory_space<vmem>>, vector<1x8x8xf32>,
    return
  }
  func.func @transform_0(%arg0: i32) -> (i32, i32, i32) {
    %c0_i32 = arith.constant 0 : i32
    %c0_i32_0 = arith.constant 0 : i32
    %c0_i32_1 = arith.constant 0 : i32
    %c0_i32_2 = arith.constant 0 : i32
    return %c0_i32, %c0_i32_0, %c0_i32_1 : i32, i32, i32
  }
  func.func @transform_1(%arg0: i32) -> (i32, i32) {
    %c0_i32 = arith.constant 0 : i32
    %c0_i32_0 = arith.constant 0 : i32
    %c0_i32_1 = arith.constant 0 : i32
    return %c0_i32, %c0_i32_0 : i32, i32
  }
  func.func @transform_2(%arg0: i32) -> (i32, i32) {
    %c0_i32 = arith.constant 0 : i32
    %c0_i32_0 = arith.constant 0 : i32
    %c0_i32_1 = arith.constant 0 : i32
    return %c0_i32, %c0_i32_0 : i32, i32
  }
  func.func @transform_3(%arg0: i32) -> (i32, i32) {
    %c0_i32 = arith.constant 0 : i32
    %c0_i32_0 = arith.constant 0 : i32
    %c0_i32_1 = arith.constant 0 : i32
    return %c0_i32, %c0_i32_0 : i32, i32
  }
  func.func @transform_4(%arg0: i32) -> (i32, i32) {
    %c0_i32 = arith.constant 0 : i32
    %c0_i32_0 = arith.constant 0 : i32
    %c0_i32_1 = arith.constant 0 : i32
    return %c0_i32, %c0_i32_0 : i32, i32
  }
  func.func @transform_5(%arg0: i32) -> (i32, i32) {
    %c0_i32 = arith.constant 0 : i32
    %c0_i32_0 = arith.constant 0 : i32
    %c0_i32_1 = arith.constant 0 : i32
    return %c0_i32, %c0_i32_0 : i32, i32
  }
  func.func @transform_6(%arg0: i32) -> (i32, i32) {
    %c0_i32 = arith.constant 0 : i32
    %c0_i32_0 = arith.constant 0 : i32
    %c0_i32_1 = arith.constant 0 : i32
    return %c0_i32, %c0_i32_0 : i32, i32
  }
  func.func @transform_7(%arg0: i32) -> (i32, i32, i32) {
    %c0_i32 = arith.constant 0 : i32
    %c0_i32_0 = arith.constant 0 : i32
    %c0_i32_1 = arith.constant 0 : i32
    %c0_i32_2 = arith.constant 0 : i32
    return %c0_i32, %c0_i32_0, %c0_i32_1 : i32, i32, i32
  }
  func.func @transform_8(%arg0: i32) -> (i32, i32, i32) {
    %c0_i32 = arith.constant 0 : i32
    %c0_i32_0 = arith.constant 0 : i32
    %c0_i32_1 = arith.constant 0 : i32
    %c0_i32_2 = arith.constant 0 : i32
    return %c0_i32, %c0_i32_0, %c0_i32_1 : i32, i32, i32
  }
  func.func @transform_9(%arg0: i32) -> (i32, i32, i32) {
    %c0_i32 = arith.constant 0 : i32
    %c0_i32_0 = arith.constant 0 : i32
    %c0_i32_1 = arith.constant 0 : i32
    %c0_i32_2 = arith.constant 0 : i32
    return %c0_i32, %c0_i32_0, %c0_i32_1 : i32, i32, i32
  }
  func.func @transform_10(%arg0: i32) -> (i32, i32, i32) {
    %c0_i32 = arith.constant 0 : i32
    %c0_i32_0 = arith.constant 0 : i32
    %c0_i32_1 = arith.constant 0 : i32
    %c0_i32_2 = arith.constant 0 : i32
    return %c0_i32, %c0_i32_0, %c0_i32_1 : i32, i32, i32
  }
}

</mosaic_0001>

<bundles_post_ra>
// kernel: model_forward.1
= control target key start
LH: loop header
LB: loop body
LE: loop exit
PB: predicated region body
PF: predicated region fallthrough
CT: control target
= control target key end

     0   :  { %16 = vsyncpa [#allocation3], 0  ;;  %s6830_s0 = inlined_call_operand.vmem [shape: f32[6,32,32], index: 0, kind: input, shape index: {}]   ;;  %s6831_s1 = inlined_call_operand.vmem [shape: f32[32,16], index: 1, kind: input, shape index: {}]   ;;  %s6832_s2 = inlined_call_operand.vmem [shape: f32[16,32], index: 2, kind: input, shape index: {}]   ;;  %s6833_s3 = inlined_call_operand.vmem [shape: f32[147,6], index: 3, kind: input, shape index: {}]   ;;  %s6834_s4 = inlined_call_operand.vmem [shape: f32[147,1], index: 4, kind: input, shape index: {}]   ;;  %s6835_s5 = inlined_call_operand.vmem [shape: f32[16,8], index: 5, kind: input, shape index: {}]   ;;  %s6836_s6 = inlined_call_operand.vmem [shape: f32[8,16], index: 6, kind: input, shape index: {}]   ;;  %s6837_s7 = inlined_call_operand.hbm [shape: f32[6,16,16], index: 7, kind: output, shape index: {0}]   ;;  %s6838_s8 = inlined_call_operand.vmem [shape: f32[16,128,16], index: 8, kind: output, shape index: {1}]   ;;  %s6839_s9 = inlined_call_operand.vmem [shape: f32[16,19,16], index: 9, kind: output, shape index: {2}]   ;;  %s6840_s10 = inlined_call_operand.hbm [shape: f32[3,8,8], index: 10, kind: output, shape index: {3}]  }
   0x1   :  { %v3767_v0 = vld [vmem:[%s6831_s1 + $0x18] sm:$0xff]  ;;  %v3772_v1 = vld [vmem:[%s6831_s1 + $0x10] sm:$0xff]  ;;  %v3779_v2 = vld [vmem:[%s6831_s1 + $0x8] sm:$0xff] }
   0x2   :  { %67 = vmatpush.msra.mxu0 %v3767_v0  ;;  %145 = vmatpush.msra.mxu2 %v3767_v0  ;;  %v3786_v3 = vld [vmem:[%s6831_s1] sm:$0xff] }
   0x4   :  { %68 = vmatpush.msra.mxu0 %v3772_v1  ;;  %146 = vmatpush.msra.mxu2 %v3772_v1 }
   0x5   :  { %17 = vsyncpa [#allocation5], 0  ;;  %v38_v4 = vld [vmem:[%s6830_s0] sm:$0xff]  ;;  %vm42_vm0 = vcmask 261120   ;;  %v39_v6 = vld [vmem:[%s6830_s0 + $0x8] sm:$0xff]  ;;  %vm113_vm1 = vcmask 130048  }
   0x6   :  { %69 = vmatpush.msra.mxu0 %v3779_v2  ;;  %147 = vmatpush.msra.mxu2 %v3779_v2  ;;  %v2961_v5 = vld [vmem:[%s6830_s0 + $0x20] sm:$0xff]  ;;  %v2962_v7 = vld [vmem:[%s6830_s0 + $0x28] sm:$0xff]  ;;  %v40_v8 = vld [vmem:[%s6830_s0 + $0x10] sm:$0xff]  ;;  %vm622_vm2 = vcmask 1041409   ;;  %vm625_vm3 = vcmask 1042434   ;;  %vm628_vm4 = vcmask 1043459  }
   0x7   :  { %v2963_v9 = vld [vmem:[%s6830_s0 + $0x30] sm:$0xff]  ;;  %v41_v10 = vld [vmem:[%s6830_s0 + $0x18] sm:$0xff]  ;;  %v2981_v12 = vld [vmem:[%s6830_s0 + $0x60] sm:$0xff]  ;;  %vm631_vm5 = vcmask 1044484   ;;  %vm634_vm6 = vcmask 1045509   ;;  %vm694_vm7 = vcmask 1045504  }
   0x8   :  { %70 = vmatpush.msra.mxu0 %v3786_v3  ;;  %148 = vmatpush.msra.mxu2 %v3786_v3  ;;  %v2964_v11 = vld [vmem:[%s6830_s0 + $0x38] sm:$0xff]  ;;  %v2982_v13 = vld [vmem:[%s6830_s0 + $0x68] sm:$0xff]  ;;  %v2983_v15 = vld [vmem:[%s6830_s0 + $0x70] sm:$0xff]  ;;  %vm636_vm8 = vcmask 48128   ;;  %vm789_vm9 = vcmask 124928   ;;  %vm2622_vm10 = vcmask 1046534  }
   0x9   :  { %2955 = vmatmul.msk.f32.vlgmr.msra.gmra.mxu0 %vm42_vm0, %v38_v4  ;;  %2965 = vmatmul.msk.f32.vlgmr.msra.gmra.mxu2 %vm42_vm0, %v2961_v5  ;;  %v2984_v18 = vld [vmem:[%s6830_s0 + $0x78] sm:$0xff]  ;;  %v3847_v23 = vld [vmem:[%s6832_s2] sm:$0xff]  ;;  %v3856_v25 = vld [vmem:[%s6832_s2 + $0x8] sm:$0xff]  ;;  %vm2625_vm11 = vcmask 1047559   ;;  %vm2691_vm12 = vcmask 64512   ;;  %s2917_s13 = sshll.u32 %s6837_s7, 4  ;;  %s2918_s13 = int_to_ptr.hbm [resolvable:$true] %s2917_s13 }
   0xa   :  { %289 = vmatpush.msrb.mxu0 %v3767_v0  ;;  %v2971_v26 = vld [vmem:[%s6830_s0 + $0x40] sm:$0xff]  ;;  %v2972_v27 = vld [vmem:[%s6830_s0 + $0x48] sm:$0xff]  ;;  %v2973_v28 = vld [vmem:[%s6830_s0 + $0x50] sm:$0xff]  ;;  %s3705_s14 = smov [#allocation2]   ;;  %s3707_s16 = smov 8  }
   0xb   :  { %v2974_v29 = vld [vmem:[%s6830_s0 + $0x58] sm:$0xff]  ;;  %v3001_v35 = vld [vmem:[%s6830_s0 + $0xa0] sm:$0xff]  ;;  %v3002_v37 = vld [vmem:[%s6830_s0 + $0xa8] sm:$0xff]  ;;  %s2915_s15 = sshll.u32 %s3705_s14, 4  ;;  %s3708_s17 = smov [#allocation4]   ;;  %s2916_s15 = int_to_ptr.vmem [resolvable:$true] %s2915_s15 }
   0xc   :  { %290 = vmatpush.msrb.mxu0 %v3772_v1  ;;  %v3003_v40 = vld [vmem:[%s6830_s0 + $0xb0] sm:$0xff]  ;;  %v3004_v43 = vld [vmem:[%s6830_s0 + $0xb8] sm:$0xff]  ;;  %v2991_v46 = vld [vmem:[%s6830_s0 + $0x80] sm:$0xff]  ;;  %s2934_s20 = sshll.u32 %s6840_s10, 4  ;;  %s2935_s20 = int_to_ptr.hbm [resolvable:$true] %s2934_s20 }
   0xd   :  { %v2992_v47 = vld [vmem:[%s6830_s0 + $0x88] sm:$0xff]  ;;  %v2993_v48 = vld [vmem:[%s6830_s0 + $0x90] sm:$0xff]  ;;  %v2994_v49 = vld [vmem:[%s6830_s0 + $0x98] sm:$0xff] }
   0xe   :  { %291 = vmatpush.msrb.mxu0 %v3779_v2 }
  0x10   :  { %292 = vmatpush.msrb.mxu0 %v3786_v3 }
  0x11   :  { %2956 = vmatmul.msk.f32.gmra.mxu0 %vm42_vm0, %v39_v6  ;;  %2966 = vmatmul.msk.f32.gmra.mxu2 %vm42_vm0, %v2962_v7 }
  0x19   :  { %2957 = vmatmul.msk.f32.gmra.mxu0 %vm42_vm0, %v40_v8  ;;  %2967 = vmatmul.msk.f32.gmra.mxu2 %vm42_vm0, %v2963_v9 }
  0x21   :  { %2958 = vmatmul.msk.f32.gmra.mxu0 %vm42_vm0, %v41_v10  ;;  %2968 = vmatmul.msk.f32.gmra.mxu2 %vm42_vm0, %v2964_v11 }
  0x29   :  { %2985 = vmatmul.msk.f32.vlgmr.msrb.gmra.mxu0 %vm42_vm0, %v2981_v12 }
  0x31   :  { %2986 = vmatmul.msk.f32.gmra.mxu0 %vm42_vm0, %v2982_v13 }
  0x39   :  { %2987 = vmatmul.msk.f32.gmra.mxu0 %vm42_vm0, %v2983_v15 }
  0x41   :  { %2988 = vmatmul.msk.f32.gmra.mxu0 %vm42_vm0, %v2984_v18 }
  0x86   :  { %v72_v14 = vpop.f32.mrf.mxu0 }
  0x8c   :  { %v150_v16 = vpop.f32.mrf.mxu2 }
  0x8e   :  { %v75_v17 = vpop.f32.mrf.mxu0 }
  0x94   :  { %v153_v19 = vpop.f32.mrf.mxu2 }
  0x96   :  { %v78_v20 = vpop.f32.mrf.mxu0 }
  0x9c   :  { %v156_v21 = vpop.f32.mrf.mxu2 }
  0x9e   :  { %v81_v22 = vpop.f32.mrf.mxu0 }
  0x9f   :  { %102 = vmatpush.msra.mxu1 %v81_v22 }
  0xa1   :  { %103 = vmatpush.msra.mxu1 %v78_v20 }
  0xa3   :  { %104 = vmatpush.msra.mxu1 %v75_v17 }
  0xa4   :  { %v159_v24 = vpop.f32.mrf.mxu2 }
  0xa5   :  { %105 = vmatpush.msra.mxu1 %v72_v14  ;;  %174 = vmatpush.msra.mxu3 %v159_v24 }
  0xa6   :  { %2959 = vmatmul.msk.f32.vlgmr.msra.gmra.mxu1 %vm42_vm0, %v3847_v23  ;;  %v294_v30 = vpop.f32.mrf.mxu0 }
  0xa7   :  { %175 = vmatpush.msra.mxu3 %v156_v21  ;;  %217 = vmatpush.msrb.mxu1 %v3767_v0 }
  0xa9   :  { %176 = vmatpush.msra.mxu3 %v153_v19  ;;  %218 = vmatpush.msrb.mxu1 %v3772_v1 }
  0xab   :  { %177 = vmatpush.msra.mxu3 %v150_v16  ;;  %219 = vmatpush.msrb.mxu1 %v3779_v2 }
  0xac   :  { %2969 = vmatmul.msk.f32.vlgmr.msra.gmra.mxu3 %vm42_vm0, %v3847_v23 }
  0xad   :  { %220 = vmatpush.msrb.mxu1 %v3786_v3 }
  0xae   :  { %2960 = vmatmul.msk.f32.gmra.mxu1 %vm42_vm0, %v3856_v25  ;;  %v297_v31 = vpop.f32.mrf.mxu0 }
  0xb4   :  { %2970 = vmatmul.msk.f32.gmra.mxu3 %vm42_vm0, %v3856_v25 }
  0xb6   :  { %2975 = vmatmul.msk.f32.vlgmr.msrb.gmra.mxu1 %vm42_vm0, %v2971_v26  ;;  %v300_v32 = vpop.f32.mrf.mxu0 }
  0xbe   :  { %2976 = vmatmul.msk.f32.gmra.mxu1 %vm42_vm0, %v2972_v27  ;;  %v303_v33 = vpop.f32.mrf.mxu0 }
  0xbf   :  { %318 = vmatpush.msrb.mxu2 %v303_v33 }
  0xc1   :  { %319 = vmatpush.msrb.mxu2 %v300_v32 }
  0xc3   :  { %320 = vmatpush.msrb.mxu2 %v297_v31 }
  0xc5   :  { %321 = vmatpush.msrb.mxu2 %v294_v30 }
  0xc6   :  { %2977 = vmatmul.msk.f32.gmra.mxu1 %vm42_vm0, %v2973_v28  ;;  %2989 = vmatmul.msk.f32.vlgmr.msrb.gmra.mxu2 %vm42_vm0, %v3847_v23 }
  0xc7   :  { %433 = vmatpush.msra.mxu2 %v3767_v0 }
  0xc9   :  { %434 = vmatpush.msra.mxu2 %v3772_v1 }
  0xcb   :  { %435 = vmatpush.msra.mxu2 %v3779_v2 }
  0xcd   :  { %436 = vmatpush.msra.mxu2 %v3786_v3 }
  0xce   :  { %2978 = vmatmul.msk.f32.gmra.mxu1 %vm42_vm0, %v2974_v29  ;;  %2990 = vmatmul.msk.f32.gmra.mxu2 %vm42_vm0, %v3856_v25 }
  0xd6   :  { %3005 = vmatmul.msk.f32.vlgmr.msra.gmra.mxu2 %vm42_vm0, %v3001_v35 }
  0xde   :  { %3006 = vmatmul.msk.f32.gmra.mxu2 %vm42_vm0, %v3002_v37 }
  0xe6   :  { %3007 = vmatmul.msk.f32.gmra.mxu2 %vm42_vm0, %v3003_v40 }
  0xee   :  { %3008 = vmatmul.msk.f32.gmra.mxu2 %vm42_vm0, %v3004_v43 }
 0x123   :  { %v107_v34 = vpop.f32.mrf.mxu1 }
 0x124   :  { %114 = vst.msk [vmem:[#allocation2] sm:$0xff] %vm113_vm1, %v107_v34  ;;  %v513_v34 = vld [vmem:[%s6834_s4 + $0x90] sm:$0x7] }
 0x12b   :  { %v110_v36 = vpop.f32.mrf.mxu1  ;;  %v514_v31 = vld [vmem:[#allocation2] sm:$0x1] }
 0x12c   :  { %115 = vst.msk [vmem:[#allocation2 + $0x8] sm:$0xff] %vm113_vm1, %v110_v36 }
 0x12f   :  { %v179_v38 = vpop.f32.mrf.mxu3 }
 0x130   :  { %186 = vst.msk [vmem:[#allocation2 + $0x10] sm:$0xff] %vm113_vm1, %v179_v38 }
 0x133   :  { %v222_v39 = vpop.f32.mrf.mxu1 }
 0x137   :  { %v182_v41 = vpop.f32.mrf.mxu3  ;;  %v3954_v6 = vld [vmem:[#allocation2 + $0x13] sm:$0x1]  ;;  %v3956_v7 = vld [vmem:[#allocation2 + $0x14] sm:$0x1]  ;;  %v3958_v8 = vld [vmem:[#allocation2 + $0x15] sm:$0x1] }
 0x138   :  { %187 = vst.msk [vmem:[#allocation2 + $0x18] sm:$0xff] %vm113_vm1, %v182_v41  ;;  %v3960_v9 = vld [vmem:[#allocation2 + $0x16] sm:$0x1]  ;;  %v3962_v10 = vld [vmem:[#allocation2 + $0x17] sm:$0x1]  ;;  %v1041_v18 = vrot.slane %v3954_v6, 7 }
 0x139   :  { %v1160_v19 = vrot.slane %v3956_v7, 7  ;;  %v1279_v20 = vrot.slane %v3958_v8, 7  ;;  %v1398_v21 = vrot.slane %v3960_v9, 7  ;;  %v1517_v22 = vrot.slane %v3962_v10, 7  ;;  %v495_v8 = vld [vmem:[%s6834_s4] sm:$0xff] }
 0x13b   :  { %v225_v42 = vpop.f32.mrf.mxu1 }
 0x13f   :  { %v3964_v11 = vld [vmem:[#allocation2 + $0x18] sm:$0x1]  ;;  %v3966_v12 = vld [vmem:[#allocation2 + $0x19] sm:$0x1]  ;;  %v3970_v14 = vld [vmem:[#allocation2 + $0x1a] sm:$0x1] }
 0x140   :  { %v3972_v15 = vld [vmem:[#allocation2 + $0x1b] sm:$0x1]  ;;  %v1636_v24 = vrot.slane %v3964_v11, 7  ;;  %v1874_v26 = vrot.slane %v3970_v14, 7 }
 0x141   :  { %v1993_v27 = vrot.slane %v3972_v15, 7 }
 0x143   :  { %v228_v44 = vpop.f32.mrf.mxu1 }
 0x149   :  { %v323_v50 = vpop.f32.mrf.mxu2 }
 0x14a   :  { %330 = vst.msk [vmem:[#allocation2 + $0x30] sm:$0xff] %vm113_vm1, %v323_v50 }
 0x14b   :  { %v231_v45 = vpop.f32.mrf.mxu1 }
 0x14c   :  { %246 = vmatpush.msrb.mxu3 %v231_v45 }
 0x14e   :  { %247 = vmatpush.msrb.mxu3 %v228_v44 }
 0x150   :  { %248 = vmatpush.msrb.mxu3 %v225_v42  ;;  %v791_v42 = vld [vmem:[#allocation2 + $0x1] sm:$0x1] }
 0x151   :  { %v326_v51 = vpop.f32.mrf.mxu2  ;;  %v3968_v13 = vld [vmem:[#allocation2 + $0x30] sm:$0x1]  ;;  %v3974_v16 = vld [vmem:[#allocation2 + $0x31] sm:$0x1]  ;;  %v3976_v17 = vld [vmem:[#allocation2 + $0x32] sm:$0x1] }
 0x152   :  { %249 = vmatpush.msrb.mxu3 %v222_v39  ;;  %331 = vst.msk [vmem:[#allocation2 + $0x38] sm:$0xff] %vm113_vm1, %v326_v51  ;;  %v627_v28 = vrot.slane %v3968_v13, 5  ;;  %v807_v29 = vrot.slane %v3974_v16, 5  ;;  %v926_v30 = vrot.slane %v3976_v17, 5  ;;  %v3990_v32 = vld [vmem:[#allocation2 + $0x33] sm:$0x1] }
 0x153   :  { %2979 = vmatmul.msk.f32.vlgmr.msrb.gmra.mxu3 %vm42_vm0, %v3847_v23  ;;  %v3992_v33 = vld [vmem:[#allocation2 + $0x34] sm:$0x1]  ;;  %v3997_v35 = vld [vmem:[#allocation2 + $0x35] sm:$0x1]  ;;  %v3999_v36 = vld [vmem:[#allocation2 + $0x36] sm:$0x1] }
 0x154   :  { %361 = vmatpush.msra.mxu3 %v3767_v0  ;;  %v515_v0 = vld [vmem:[#allocation2 + $0x10] sm:$0x1]  ;;  %v4001_v37 = vld [vmem:[#allocation2 + $0x37] sm:$0x1]  ;;  %v1164_v50 = vrot.slane %v3992_v33, 5 }
 0x155   :  { %v1267_v51 = vld [vmem:[#allocation2 + $0x5] sm:$0x1] }
 0x156   :  { %362 = vmatpush.msra.mxu3 %v3772_v1  ;;  %v3948_v1 = vld [vmem:[#allocation2 + $0x11] sm:$0x1]  ;;  %v1280_v11 = vsel %vm622_vm2, %v1279_v20, %v1267_v51  ;;  %v1981_v51 = vld [vmem:[#allocation2 + $0xb] sm:$0x1] }
 0x157   :  { %v803_v4 = vrot.slane %v3948_v1, 7 }
 0x158   :  { %363 = vmatpush.msra.mxu3 %v3779_v2  ;;  %v3950_v2 = vld [vmem:[#allocation2 + $0x12] sm:$0x1] }
 0x159   :  { %v438_v52 = vpop.f32.mrf.mxu2  ;;  %v922_v5 = vrot.slane %v3950_v2, 7  ;;  %v4004_v44 = vld [vmem:[#allocation2 + $0x38] sm:$0x1]  ;;  %v4006_v45 = vld [vmem:[#allocation2 + $0x39] sm:$0x1] }
 0x15a   :  { %364 = vmatpush.msra.mxu3 %v3786_v3  ;;  %v621_v3 = vrot.slane %v515_v0, 7  ;;  %v1759_v6 = vrot.slane %v4006_v45, 5  ;;  %v4018_v7 = vld [vmem:[#allocation2 + $0x3a] sm:$0x1] }
 0x15b   :  { %2980 = vmatmul.msk.f32.gmra.mxu3 %vm42_vm0, %v3856_v25 }
 0x15c   :  { %v623_v41 = vsel %vm622_vm2, %v621_v3, %v514_v31  ;;  %v1640_v3 = vrot.slane %v4004_v44, 5 }
 0x161   :  { %v441_v53 = vpop.f32.mrf.mxu2 }
 0x163   :  { %2995 = vmatmul.msk.f32.vlgmr.msra.gmra.mxu3 %vm42_vm0, %v2991_v46  ;;  %v910_v46 = vld [vmem:[#allocation2 + $0x2] sm:$0x1] }
 0x164   :  { %v923_v9 = vsel %vm622_vm2, %v922_v5, %v910_v46 }
 0x169   :  { %v444_v54 = vpop.f32.mrf.mxu2 }
 0x16b   :  { %2996 = vmatmul.msk.f32.gmra.mxu3 %vm42_vm0, %v2992_v47  ;;  %v1029_v47 = vld [vmem:[#allocation2 + $0x3] sm:$0x1] }
 0x16c   :  { %v1042_v1 = vsel %vm622_vm2, %v1041_v18, %v1029_v47  ;;  %v4041_v18 = vld [vmem:[#allocation2 + $0x3b] sm:$0x1] }
 0x171   :  { %v447_v55 = vpop.f32.mrf.mxu2 }
 0x172   :  { %462 = vmatpush.msra.mxu0 %v447_v55 }
 0x173   :  { %2997 = vmatmul.msk.f32.gmra.mxu3 %vm42_vm0, %v2993_v48  ;;  %v1045_v48 = vrot.slane %v3990_v32, 5 }
 0x174   :  { %463 = vmatpush.msra.mxu0 %v444_v54 }
 0x176   :  { %464 = vmatpush.msra.mxu0 %v441_v53  ;;  %v1402_v53 = vrot.slane %v3999_v36, 5 }
 0x178   :  { %465 = vmatpush.msra.mxu0 %v438_v52  ;;  %v1283_v52 = vrot.slane %v3997_v35, 5 }
 0x179   :  { %3009 = vmatmul.msk.f32.vlgmr.msra.gmra.mxu0 %vm42_vm0, %v3847_v23 }
 0x17b   :  { %2998 = vmatmul.msk.f32.gmra.mxu3 %vm42_vm0, %v2994_v49  ;;  %v1148_v49 = vld [vmem:[#allocation2 + $0x4] sm:$0x1] }
 0x181   :  { %3010 = vmatmul.msk.f32.gmra.mxu0 %vm42_vm0, %v3856_v25 }
 0x1d6   :  { %v251_v56 = vpop.f32.mrf.mxu3 }
 0x1d7   :  { %258 = vst.msk [vmem:[#allocation2 + $0x20] sm:$0xff] %vm113_vm1, %v251_v56 }
 0x1de   :  { %v254_v57 = vpop.f32.mrf.mxu3  ;;  %v516_v38 = vld [vmem:[#allocation2 + $0x20] sm:$0x1]  ;;  %v793_v39 = vld [vmem:[#allocation2 + $0x21] sm:$0x1]  ;;  %v912_v40 = vld [vmem:[#allocation2 + $0x22] sm:$0x1] }
 0x1df   :  { %259 = vst.msk [vmem:[#allocation2 + $0x28] sm:$0xff] %vm113_vm1, %v254_v57  ;;  %v1031_v43 = vld [vmem:[#allocation2 + $0x23] sm:$0x1]  ;;  %v624_v54 = vrot.slane %v516_v38, 6  ;;  %v805_v55 = vrot.slane %v793_v39, 6  ;;  %v924_v56 = vrot.slane %v912_v40, 6 }
 0x1e0   :  { %v1386_v57 = vld [vmem:[#allocation2 + $0x6] sm:$0x1]  ;;  %v1150_v0 = vld [vmem:[#allocation2 + $0x24] sm:$0x1]  ;;  %v1269_v10 = vld [vmem:[#allocation2 + $0x25] sm:$0x1] }
 0x1e1   :  { %v1399_v31 = vsel %vm622_vm2, %v1398_v21, %v1386_v57  ;;  %v925_v21 = vsel %vm625_vm3, %v924_v56, %v923_v9  ;;  %v1162_v40 = vrot.slane %v1150_v0, 6  ;;  %v1878_v56 = vrot.slane %v4018_v7, 5 }
 0x1e2   :  { %v1997_v57 = vrot.slane %v4041_v18, 5  ;;  %v927_v14 = vsel %vm628_vm4, %v926_v30, %v925_v21 }
 0x1e6   :  { %v366_v58 = vpop.f32.mrf.mxu3  ;;  %v4031_v38 = vld [vmem:[#allocation2 + $0x28] sm:$0x1]  ;;  %v4036_v2 = vld [vmem:[#allocation2 + $0x29] sm:$0x1] }
 0x1ee   :  { %v369_v59 = vpop.f32.mrf.mxu3 }
 0x1f6   :  { %v372_v60 = vpop.f32.mrf.mxu3  ;;  %v467_v62 = vpop.f32.mrf.mxu0 }
 0x1f7   :  { %474 = vst.msk [vmem:[#allocation2 + $0x50] sm:$0xff] %vm113_vm1, %v467_v62  ;;  %v804_v62 = vsel %vm622_vm2, %v803_v4, %v791_v42  ;;  %v1161_v4 = vsel %vm622_vm2, %v1160_v19, %v1148_v49  ;;  %v626_v19 = vsel %vm625_vm3, %v624_v54, %v623_v41  ;;  %v4046_v42 = vld [vmem:[#allocation2 + $0x2a] sm:$0x1]  ;;  %v1638_v54 = vrot.slane %v4031_v38, 6 }
 0x1f8   :  { %v806_v20 = vsel %vm625_vm3, %v805_v55, %v804_v62  ;;  %v496_v41 = vld [vmem:[%s6834_s4 + $0x8] sm:$0xff]  ;;  %v1757_v55 = vrot.slane %v4036_v2, 6  ;;  %v1876_v62 = vrot.slane %v4046_v42, 6  ;;  %v1163_v13 = vsel %vm625_vm3, %v1162_v40, %v1161_v4 }
 0x1f9   :  { %v808_v9 = vsel %vm628_vm4, %v807_v29, %v806_v20  ;;  %v1165_v21 = vsel %vm628_vm4, %v1164_v50, %v1163_v13 }
 0x1fe   :  { %v375_v61 = vpop.f32.mrf.mxu3  ;;  %v470_v63 = vpop.f32.mrf.mxu0  ;;  %v4091_v29 = vld [vmem:[#allocation2 + $0x56] sm:$0x1] }
 0x1ff   :  { %390 = vmatpush.msra.mxu1 %v375_v61  ;;  %475 = vst.msk [vmem:[#allocation2 + $0x58] sm:$0xff] %vm113_vm1, %v470_v63  ;;  %v1743_v61 = vld [vmem:[#allocation2 + $0x9] sm:$0x1]  ;;  %v1043_v63 = vrot.slane %v1031_v43, 6  ;;  %v4048_v43 = vld [vmem:[#allocation2 + $0x2b] sm:$0x1] }
 0x200   :  { %v1995_v0 = vrot.slane %v4048_v43, 6 }
 0x201   :  { %391 = vmatpush.msra.mxu1 %v372_v60  ;;  %v1624_v60 = vld [vmem:[#allocation2 + $0x8] sm:$0x1]  ;;  %v1044_v46 = vsel %vm625_vm3, %v1043_v63, %v1042_v1  ;;  %v1994_v63 = vsel %vm622_vm2, %v1993_v27, %v1981_v51  ;;  %v915_v1 = vld [vmem:[#allocation2 + $0x52] sm:$0x1]  ;;  %v4085_v27 = vld [vmem:[#allocation2 + $0x54] sm:$0x1] }
 0x202   :  { %v4034_v39 = vsel %vm622_vm2, %v1636_v24, %v1624_v60  ;;  %v4061_v60 = vld [vmem:[#allocation2 + $0x51] sm:$0x1]  ;;  %v1046_v15 = vsel %vm628_vm4, %v1045_v48, %v1044_v46  ;;  %v930_v4 = vrot.slane %v915_v1, 3 }
 0x203   :  { %392 = vmatpush.msra.mxu1 %v369_v59  ;;  %v1521_v59 = vrot.slane %v4001_v37, 5  ;;  %v811_v48 = vrot.slane %v4061_v60, 3  ;;  %v1639_v35 = vsel %vm625_vm3, %v1638_v54, %v4034_v39 }
 0x205   :  { %393 = vmatpush.msra.mxu1 %v366_v58  ;;  %v1505_v58 = vld [vmem:[#allocation2 + $0x7] sm:$0x1] }
 0x206   :  { %2999 = vmatmul.msk.f32.vlgmr.msra.gmra.mxu1 %vm42_vm0, %v3847_v23  ;;  %v3704_v23 = vmov 0   ;;  %v4121_v50 = vld [vmem:[#allocation2 + $0x59] sm:$0x1] }
 0x207   :  { %3630 = vset.pattern.permute.xlu0 %v3704_v23  ;;  %3631 = vset.pattern.permute.xlu1 %v3704_v23 }
 0x208   :  { %3632 = vset.pattern.permute.xlu2 %v3704_v23  ;;  %612 = vperm.xlu0 %3630, %v513_v34   ;;  %v1507_v23 = vld [vmem:[#allocation2 + $0x27] sm:$0x1]  ;;  %v1518_v34 = vsel %vm622_vm2, %v1517_v22, %v1505_v58  ;;  %v1862_v22 = vld [vmem:[#allocation2 + $0xa] sm:$0x1]  ;;  %v4059_v58 = vld [vmem:[#allocation2 + $0x50] sm:$0x1] }
 0x209   :  { %v1519_v49 = vrot.slane %v1507_v23, 6  ;;  %527 = vperm.xlu1 %3631, %v496_v41   ;;  %v633_v32 = vrot.slane %v4059_v58, 3 }
 0x20b   :  { %v1520_v30 = vsel %vm625_vm3, %v1519_v49, %v1518_v34  ;;  %v497_v49 = vld [vmem:[%s6834_s4 + $0x10] sm:$0xff] }
 0x20c   :  { %v1522_v42 = vsel %vm628_vm4, %v1521_v59, %v1520_v30 }
 0x20e   :  { %3000 = vmatmul.msk.f32.gmra.mxu1 %vm42_vm0, %v3856_v25  ;;  %v1755_v25 = vrot.slane %v3966_v12, 7  ;;  %v1388_v12 = vld [vmem:[#allocation2 + $0x26] sm:$0x1] }
 0x20f   :  { %v1400_v47 = vrot.slane %v1388_v12, 6 }
 0x210   :  { %v4039_v5 = vsel %vm622_vm2, %v1755_v25, %v1743_v61  ;;  %522 = vperm.xlu0 %3630, %v495_v8   ;;  %v1281_v25 = vrot.slane %v1269_v10, 6  ;;  %v1875_v61 = vsel %vm622_vm2, %v1874_v26, %v1862_v22  ;;  %v629_v8 = vsel %vm628_vm4, %v627_v28, %v626_v19  ;;  %v4080_v26 = vld [vmem:[#allocation2 + $0x53] sm:$0x1]  ;;  %v4088_v28 = vld [vmem:[#allocation2 + $0x55] sm:$0x1] }
 0x211   :  { %v1401_v17 = vsel %vm625_vm3, %v1400_v47, %v1399_v31  ;;  %v4094_v10 = vld [vmem:[#allocation2 + $0x57] sm:$0x1]  ;;  %v1049_v12 = vrot.slane %v4080_v26, 3  ;;  %v1287_v23 = vrot.slane %v4088_v28, 3  ;;  %v1406_v31 = vrot.slane %v4091_v29, 3  ;;  %532 = vperm.xlu1 %3631, %v497_v49   ;;  %v4310_v49 = vld [vmem:[%s6833_s3 + $0x40] sm:$0xff] }
 0x212   :  { %v1282_v16 = vsel %vm625_vm3, %v1281_v25, %v1280_v11  ;;  %v1168_v11 = vrot.slane %v4085_v27, 3  ;;  %v1525_v38 = vrot.slane %v4094_v10, 3  ;;  %v1403_v22 = vsel %vm628_vm4, %v1402_v53, %v1401_v17  ;;  %v4117_v25 = vld [vmem:[#allocation2 + $0x58] sm:$0x1] }
 0x213   :  { %v1284_v40 = vsel %vm628_vm4, %v1283_v52, %v1282_v16  ;;  %v1758_v37 = vsel %vm625_vm3, %v1757_v55, %v4039_v5  ;;  %v1877_v59 = vsel %vm625_vm3, %v1876_v62, %v1875_v61  ;;  %v1996_v47 = vsel %vm625_vm3, %v1995_v0, %v1994_v63  ;;  %v4140_v63 = vld [vmem:[%s6833_s3] sm:$0xff]  ;;  %v1867_v0 = vld [vmem:[#allocation2 + $0x5a] sm:$0x1] }
 0x214   :  { %v1644_v13 = vrot.slane %v4117_v25, 3  ;;  %v1763_v28 = vrot.slane %v4121_v50, 3  ;;  %v1882_v17 = vrot.slane %v1867_v0, 3  ;;  %v1879_v10 = vsel %vm628_vm4, %v1878_v56, %v1877_v59  ;;  %v4193_v56 = vld [vmem:[%s6833_s3 + $0x8] sm:$0xff]  ;;  %v501_v25 = vld [vmem:[%s6834_s4 + $0x30] sm:$0xff]  ;;  %v499_v50 = vld [vmem:[%s6834_s4 + $0x20] sm:$0xff] }
 0x215   :  { %v1998_v44 = vsel %vm628_vm4, %v1997_v57, %v1996_v47  ;;  %v4211_v57 = vld [vmem:[%s6833_s3 + $0x10] sm:$0xff]  ;;  %v4294_v59 = vld [vmem:[%s6833_s3 + $0x38] sm:$0xff] }
 0x216   :  { %v502_v47 = vld [vmem:[%s6834_s4 + $0x38] sm:$0xff]  ;;  %v4403_v0 = vld [vmem:[%s6833_s3 + $0x70] sm:$0xff] }
 0x219   :  { %552 = vperm.xlu1 %3631, %v501_v25  }
 0x283   :  { %v395_v24 = vpop.f32.mrf.mxu1 }
 0x284   :  { %402 = vst.msk [vmem:[#allocation2 + $0x40] sm:$0xff] %vm113_vm1, %v395_v24 }
 0x28b   :  { %v398_v34 = vpop.f32.mrf.mxu1  ;;  %v518_v2 = vld [vmem:[#allocation2 + $0x40] sm:$0x1]  ;;  %v795_v19 = vld [vmem:[#allocation2 + $0x41] sm:$0x1]  ;;  %v914_v20 = vld [vmem:[#allocation2 + $0x42] sm:$0x1] }
 0x28c   :  { %403 = vst.msk [vmem:[#allocation2 + $0x48] sm:$0xff] %vm113_vm1, %v398_v34  ;;  %v630_v43 = vrot.slane %v518_v2, 4  ;;  %v809_v24 = vrot.slane %v795_v19, 4  ;;  %v928_v46 = vrot.slane %v914_v20, 4  ;;  %v1033_v33 = vld [vmem:[#allocation2 + $0x43] sm:$0x1] }
 0x28d   :  { %v1047_v36 = vrot.slane %v1033_v33, 4  ;;  %v1152_v52 = vld [vmem:[#allocation2 + $0x44] sm:$0x1]  ;;  %v1271_v53 = vld [vmem:[#allocation2 + $0x45] sm:$0x1]  ;;  %v498_v33 = vld [vmem:[%s6834_s4 + $0x18] sm:$0xff] }
 0x28e   :  { %v632_v51 = vsel %vm631_vm5, %v630_v43, %v629_v8  ;;  %v810_v39 = vsel %vm631_vm5, %v809_v24, %v808_v9  ;;  %v929_v41 = vsel %vm631_vm5, %v928_v46, %v927_v14  ;;  %v1166_v54 = vrot.slane %v1152_v52, 4  ;;  %v1390_v58 = vld [vmem:[#allocation2 + $0x46] sm:$0x1]  ;;  %v1509_v60 = vld [vmem:[#allocation2 + $0x47] sm:$0x1]  ;;  %v500_v24 = vld [vmem:[%s6834_s4 + $0x28] sm:$0xff]  ;;  %537 = vperm.xlu2 %3632, %v498_v33  }
 0x28f   :  { %v635_v5 = vsel %vm634_vm6, %v633_v32, %v632_v51  ;;  %v812_v55 = vsel %vm634_vm6, %v811_v48, %v810_v39  ;;  %v931_v61 = vsel %vm634_vm6, %v930_v4, %v929_v41  ;;  %v1048_v62 = vsel %vm631_vm5, %v1047_v36, %v1046_v15  ;;  %v1986_v8 = vld [vmem:[#allocation2 + $0x5b] sm:$0x1]  ;;  %547 = vperm.xlu0 %3630, %v500_v24   ;;  %v4262_v36 = vld [vmem:[%s6833_s3 + $0x28] sm:$0xff]  ;;  %v503_v52 = vld [vmem:[%s6834_s4 + $0x40] sm:$0xff] }
 0x290   :  { %3011 = vmatpush.msk.msrb.mxu1 %vm694_vm7, %v635_v5  ;;  %3031 = vmatpush.msk.msrb.mxu3 %vm694_vm7, %v812_v55  ;;  %v1050_v9 = vsel %vm634_vm6, %v1049_v12, %v1048_v62  ;;  %v1167_v1 = vsel %vm631_vm5, %v1166_v54, %v1165_v21  ;;  %v1285_v14 = vrot.slane %v1271_v53, 4  ;;  %v1404_v26 = vrot.slane %v1390_v58, 4  ;;  %v4227_v46 = vld [vmem:[%s6833_s3 + $0x18] sm:$0xff]  ;;  %v4278_v53 = vld [vmem:[%s6833_s3 + $0x30] sm:$0xff]  ;;  %v4326_v39 = vld [vmem:[%s6833_s3 + $0x48] sm:$0xff] }
 0x291   :  { %3070 = vmatpush.msk.msrb.mxu0 %vm694_vm7, %v931_v61  ;;  %3109 = vmatpush.msk.msrb.mxu2 %vm694_vm7, %v1050_v9  ;;  %v1169_v15 = vsel %vm634_vm6, %v1168_v11, %v1167_v1  ;;  %v1523_v27 = vrot.slane %v1509_v60, 4  ;;  %v2001_v30 = vrot.slane %v1986_v8, 3  ;;  %v506_v51 = vld [vmem:[%s6834_s4 + $0x58] sm:$0xff]  ;;  %v507_v41 = vld [vmem:[%s6834_s4 + $0x60] sm:$0xff]  ;;  %v4342_v54 = vld [vmem:[%s6833_s3 + $0x50] sm:$0xff]  ;;  %v4416_v9 = vpop.permute.xlu0 %612 }
 0x292   :  { %3012 = vmatmul.msk.f32.vlgmr.msrb.gmra.mxu1 %vm636_vm8, %v4140_v63  ;;  %3032 = vmatmul.msk.f32.vlgmr.msrb.gmra.mxu3 %vm636_vm8, %v4140_v63  ;;  %v1286_v16 = vsel %vm631_vm5, %v1285_v14, %v1284_v40  ;;  %v1405_v29 = vsel %vm631_vm5, %v1404_v26, %v1403_v22  ;;  %v505_v58 = vld [vmem:[%s6834_s4 + $0x50] sm:$0xff]  ;;  %v4358_v60 = vld [vmem:[%s6833_s3 + $0x58] sm:$0xff]  ;;  %v4371_v5 = vld [vmem:[%s6833_s3 + $0x60] sm:$0xff] }
 0x293   :  { %3071 = vmatmul.msk.f32.vlgmr.msrb.gmra.mxu0 %vm636_vm8, %v4140_v63  ;;  %3110 = vmatmul.msk.f32.vlgmr.msrb.gmra.mxu2 %vm636_vm8, %v4140_v63  ;;  %v1288_v32 = vsel %vm634_vm6, %v1287_v23, %v1286_v16  ;;  %v1407_v48 = vsel %vm634_vm6, %v1406_v31, %v1405_v29  ;;  %v1524_v4 = vsel %vm631_vm5, %v1523_v27, %v1522_v42  ;;  %v1628_v12 = vld [vmem:[#allocation2 + $0x48] sm:$0x1]  ;;  %v1747_v11 = vld [vmem:[#allocation2 + $0x49] sm:$0x1]  ;;  %v1866_v34 = vld [vmem:[#allocation2 + $0x4a] sm:$0x1]  ;;  %v4459_v29 = vpop.permute.xlu1 %527 }
 0x294   :  { %3148 = vmatpush.msk.msra.mxu1 %vm694_vm7, %v1169_v15  ;;  %3187 = vmatpush.msk.msra.mxu3 %vm694_vm7, %v1288_v32  ;;  %v1526_v2 = vsel %vm634_vm6, %v1525_v38, %v1524_v4  ;;  %v1642_v19 = vrot.slane %v1628_v12, 4  ;;  %v1761_v20 = vrot.slane %v1747_v11, 4  ;;  %v1880_v21 = vrot.slane %v1866_v34, 4  ;;  %v1985_v40 = vld [vmem:[#allocation2 + $0x4b] sm:$0x1]  ;;  %v509_v55 = vld [vmem:[%s6834_s4 + $0x70] sm:$0xff] }
 0x295   :  { %3226 = vmatpush.msk.msra.mxu0 %vm694_vm7, %v1407_v48  ;;  %3265 = vmatpush.msk.msra.mxu2 %vm694_vm7, %v1526_v2  ;;  %v1641_v23 = vsel %vm628_vm4, %v1640_v3, %v1639_v35  ;;  %v1760_v31 = vsel %vm628_vm4, %v1759_v6, %v1758_v37  ;;  %v1999_v38 = vrot.slane %v1985_v40, 4  ;;  %v4246_v35 = vld [vmem:[%s6833_s3 + $0x20] sm:$0xff]  ;;  %v504_v37 = vld [vmem:[%s6834_s4 + $0x48] sm:$0xff]  ;;  %v510_v62 = vld [vmem:[%s6834_s4 + $0x78] sm:$0xff] }
 0x296   :  { %v1643_v22 = vsel %vm631_vm5, %v1642_v19, %v1641_v23  ;;  %v1762_v42 = vsel %vm631_vm5, %v1761_v20, %v1760_v31  ;;  %v1881_v43 = vsel %vm631_vm5, %v1880_v21, %v1879_v10  ;;  %542 = vperm.xlu2 %3632, %v499_v50   ;;  %567 = vperm.xlu1 %3631, %v504_v37   ;;  %v4387_v61 = vld [vmem:[%s6833_s3 + $0x68] sm:$0xff]  ;;  %v4421_v1 = vld [vmem:[%s6833_s3 + $0x78] sm:$0xff]  ;;  %v4439_v27 = vld [vmem:[%s6833_s3 + $0x80] sm:$0xff] }
 0x297   :  { %v1645_v3 = vsel %vm634_vm6, %v1644_v13, %v1643_v22  ;;  %v1764_v45 = vsel %vm634_vm6, %v1763_v28, %v1762_v42  ;;  %v1883_v6 = vsel %vm634_vm6, %v1882_v17, %v1881_v43  ;;  %v2000_v7 = vsel %vm631_vm5, %v1999_v38, %v1998_v44  ;;  %562 = vperm.xlu0 %3630, %v503_v52   ;;  %v508_v8 = vld [vmem:[%s6834_s4 + $0x68] sm:$0xff]  ;;  %v2101_v2 = vld [vmem:[#allocation2 + $0x1c] sm:$0x1]  ;;  %v511_v20 = vld [vmem:[%s6834_s4 + $0x80] sm:$0xff] }
 0x298   :  { %3304 = vmatpush.msk.msrb.mxu1 %vm694_vm7, %v1645_v3  ;;  %3343 = vmatpush.msk.msrb.mxu3 %vm694_vm7, %v1764_v45  ;;  %v2002_v18 = vsel %vm634_vm6, %v2001_v30, %v2000_v7  ;;  %v512_v14 = vld [vmem:[%s6834_s4 + $0x88] sm:$0xff]  ;;  %v2220_v21 = vld [vmem:[#allocation2 + $0x1d] sm:$0x1]  ;;  %v2339_v40 = vld [vmem:[#allocation2 + $0x1e] sm:$0x1]  ;;  %v2112_v31 = vrot.slane %v2101_v2, 7 }
 0x299   :  { %3382 = vmatpush.msk.msrb.mxu0 %vm694_vm7, %v1883_v6  ;;  %3421 = vmatpush.msk.msrb.mxu2 %vm694_vm7, %v2002_v18  ;;  %v4434_v26 = vpop.permute.xlu0 %522  ;;  %v4466_v12 = vld [vmem:[%s6833_s3 + $0x88] sm:$0xff]  ;;  %v2458_v10 = vld [vmem:[#allocation2 + $0x1f] sm:$0x1]  ;;  %v2103_v45 = vld [vmem:[#allocation2 + $0x3c] sm:$0x1]  ;;  %v2231_v7 = vrot.slane %v2220_v21, 7 }
 0x29a   :  { %3013 = vmatmul.msk.f32.gmra.mxu1 %vm636_vm8, %v4193_v56  ;;  %3033 = vmatmul.msk.f32.gmra.mxu3 %vm636_vm8, %v4193_v56  ;;  %v2102_v23 = vld [vmem:[#allocation2 + $0x2c] sm:$0x1]  ;;  %v2221_v38 = vld [vmem:[#allocation2 + $0x2d] sm:$0x1]  ;;  %v2340_v22 = vld [vmem:[#allocation2 + $0x2e] sm:$0x1] }
 0x29b   :  { %3072 = vmatmul.msk.f32.gmra.mxu0 %vm636_vm8, %v4193_v56  ;;  %3111 = vmatmul.msk.f32.gmra.mxu2 %vm636_vm8, %v4193_v56  ;;  %v2459_v42 = vld [vmem:[#allocation2 + $0x2f] sm:$0x1]  ;;  %v4497_v44 = vpop.permute.xlu1 %532  ;;  %v2100_v3 = vld [vmem:[#allocation2 + $0xc] sm:$0x1]  ;;  %v2222_v6 = vld [vmem:[#allocation2 + $0x3d] sm:$0x1] }
 0x29c   :  { %v2350_v18 = vrot.slane %v2339_v40, 7  ;;  %v2114_v25 = vrot.slane %v2102_v23, 6  ;;  %v2219_v50 = vld [vmem:[#allocation2 + $0xd] sm:$0x1]  ;;  %v2338_v52 = vld [vmem:[#allocation2 + $0xe] sm:$0x1] }
 0x29d   :  { %v2341_v37 = vld [vmem:[#allocation2 + $0x3e] sm:$0x1]  ;;  %v2461_v21 = vld [vmem:[#allocation2 + $0x4f] sm:$0x1] }
 0x29e   :  { %557 = vperm.xlu2 %3632, %v502_v47   ;;  %582 = vperm.xlu1 %3631, %v507_v41   ;;  %v2460_v47 = vld [vmem:[#allocation2 + $0x3f] sm:$0x1]  ;;  %v2354_v2 = vrot.slane %v2341_v37, 5 }
 0x29f   :  { %577 = vperm.xlu0 %3630, %v506_v51   ;;  %v2469_v51 = vrot.slane %v2458_v10, 7  ;;  %v2473_v23 = vrot.slane %v2460_v47, 5 }
 0x2a2   :  { %3014 = vmatmul.msk.f32.gmra.mxu1 %vm636_vm8, %v4211_v57  ;;  %3034 = vmatmul.msk.f32.gmra.mxu3 %vm636_vm8, %v4211_v57 }
 0x2a3   :  { %3073 = vmatmul.msk.f32.gmra.mxu0 %vm636_vm8, %v4211_v57  ;;  %3112 = vmatmul.msk.f32.gmra.mxu2 %vm636_vm8, %v4211_v57 }
 0x2a6   :  { %572 = vperm.xlu2 %3632, %v505_v58   ;;  %597 = vperm.xlu1 %3631, %v510_v62   ;;  %v2233_v62 = vrot.slane %v2221_v38, 6 }
 0x2a7   :  { %592 = vperm.xlu0 %3630, %v509_v55   ;;  %v4504_v55 = vld [vmem:[%s6833_s3 + $0x90] sm:$0x7] }
 0x2aa   :  { %3015 = vmatmul.msk.f32.gmra.mxu1 %vm636_vm8, %v4227_v46  ;;  %3035 = vmatmul.msk.f32.gmra.mxu3 %vm636_vm8, %v4227_v46 }
 0x2ab   :  { %3074 = vmatmul.msk.f32.gmra.mxu0 %vm636_vm8, %v4227_v46  ;;  %3113 = vmatmul.msk.f32.gmra.mxu2 %vm636_vm8, %v4227_v46 }
 0x2ae   :  { %587 = vperm.xlu2 %3632, %v508_v8   ;;  %v2352_v8 = vrot.slane %v2340_v22, 6 }
 0x2af   :  { %607 = vperm.xlu0 %3630, %v512_v14   ;;  %v2471_v14 = vrot.slane %v2459_v42, 6 }
 0x2b2   :  { %3016 = vmatmul.msk.f32.gmra.mxu1 %vm636_vm8, %v4246_v35  ;;  %3036 = vmatmul.msk.f32.gmra.mxu3 %vm636_vm8, %v4246_v35 }
 0x2b3   :  { %3075 = vmatmul.msk.f32.gmra.mxu0 %vm636_vm8, %v4246_v35  ;;  %3114 = vmatmul.msk.f32.gmra.mxu2 %vm636_vm8, %v4246_v35 }
 0x2b6   :  { %602 = vperm.xlu2 %3632, %v511_v20   ;;  %v2342_v20 = vld [vmem:[#allocation2 + $0x4e] sm:$0x1] }
 0x2ba   :  { %3017 = vmatmul.msk.f32.gmra.mxu1 %vm636_vm8, %v4262_v36  ;;  %3037 = vmatmul.msk.f32.gmra.mxu3 %vm636_vm8, %v4262_v36 }
 0x2bb   :  { %3076 = vmatmul.msk.f32.gmra.mxu0 %vm636_vm8, %v4262_v36  ;;  %3115 = vmatmul.msk.f32.gmra.mxu2 %vm636_vm8, %v4262_v36 }
 0x2c2   :  { %3018 = vmatmul.msk.f32.gmra.mxu1 %vm636_vm8, %v4278_v53  ;;  %3038 = vmatmul.msk.f32.gmra.mxu3 %vm636_vm8, %v4278_v53 }
 0x2c3   :  { %3077 = vmatmul.msk.f32.gmra.mxu0 %vm636_vm8, %v4278_v53  ;;  %3116 = vmatmul.msk.f32.gmra.mxu2 %vm636_vm8, %v4278_v53 }
 0x2ca   :  { %3019 = vmatmul.msk.f32.gmra.mxu1 %vm636_vm8, %v4294_v59  ;;  %3039 = vmatmul.msk.f32.gmra.mxu3 %vm636_vm8, %v4294_v59 }
 0x2cb   :  { %3078 = vmatmul.msk.f32.gmra.mxu0 %vm636_vm8, %v4294_v59  ;;  %3117 = vmatmul.msk.f32.gmra.mxu2 %vm636_vm8, %v4294_v59 }
 0x2d2   :  { %3020 = vmatmul.msk.f32.gmra.mxu1 %vm636_vm8, %v4310_v49  ;;  %3040 = vmatmul.msk.f32.gmra.mxu3 %vm636_vm8, %v4310_v49 }
 0x2d3   :  { %3079 = vmatmul.msk.f32.gmra.mxu0 %vm636_vm8, %v4310_v49  ;;  %3118 = vmatmul.msk.f32.gmra.mxu2 %vm636_vm8, %v4310_v49 }
 0x2da   :  { %3021 = vmatmul.msk.f32.gmra.mxu1 %vm636_vm8, %v4326_v39  ;;  %3041 = vmatmul.msk.f32.gmra.mxu3 %vm636_vm8, %v4326_v39 }
 0x2db   :  { %3080 = vmatmul.msk.f32.gmra.mxu0 %vm636_vm8, %v4326_v39  ;;  %3119 = vmatmul.msk.f32.gmra.mxu2 %vm636_vm8, %v4326_v39 }
 0x2e2   :  { %3022 = vmatmul.msk.f32.gmra.mxu1 %vm636_vm8, %v4342_v54  ;;  %3042 = vmatmul.msk.f32.gmra.mxu3 %vm636_vm8, %v4342_v54 }
 0x2e3   :  { %3081 = vmatmul.msk.f32.gmra.mxu0 %vm636_vm8, %v4342_v54  ;;  %3120 = vmatmul.msk.f32.gmra.mxu2 %vm636_vm8, %v4342_v54 }
 0x2e8   :  { %v4540_v42 = vpop.permute.xlu2 %537 }
 0x2ea   :  { %3023 = vmatmul.msk.f32.gmra.mxu1 %vm636_vm8, %v4358_v60  ;;  %3043 = vmatmul.msk.f32.gmra.mxu3 %vm636_vm8, %v4358_v60 }
 0x2eb   :  { %3082 = vmatmul.msk.f32.gmra.mxu0 %vm636_vm8, %v4358_v60  ;;  %3121 = vmatmul.msk.f32.gmra.mxu2 %vm636_vm8, %v4358_v60 }
 0x2f2   :  { %3024 = vmatmul.msk.f32.gmra.mxu1 %vm636_vm8, %v4371_v5  ;;  %3044 = vmatmul.msk.f32.gmra.mxu3 %vm636_vm8, %v4371_v5 }
 0x2f3   :  { %3083 = vmatmul.msk.f32.gmra.mxu0 %vm636_vm8, %v4371_v5  ;;  %3122 = vmatmul.msk.f32.gmra.mxu2 %vm636_vm8, %v4371_v5 }
 0x2fa   :  { %3025 = vmatmul.msk.f32.gmra.mxu1 %vm636_vm8, %v4387_v61  ;;  %3045 = vmatmul.msk.f32.gmra.mxu3 %vm636_vm8, %v4387_v61 }
 0x2fb   :  { %3084 = vmatmul.msk.f32.gmra.mxu0 %vm636_vm8, %v4387_v61  ;;  %3123 = vmatmul.msk.f32.gmra.mxu2 %vm636_vm8, %v4387_v61 }
 0x302   :  { %3026 = vmatmul.msk.f32.gmra.mxu1 %vm636_vm8, %v4403_v0  ;;  %3046 = vmatmul.msk.f32.gmra.mxu3 %vm636_vm8, %v4403_v0 }
 0x303   :  { %3085 = vmatmul.msk.f32.gmra.mxu0 %vm636_vm8, %v4403_v0  ;;  %3124 = vmatmul.msk.f32.gmra.mxu2 %vm636_vm8, %v4403_v0 }
 0x30a   :  { %3027 = vmatmul.msk.f32.gmra.mxu1 %vm636_vm8, %v4421_v1  ;;  %3047 = vmatmul.msk.f32.gmra.mxu3 %vm636_vm8, %v4421_v1 }
 0x30b   :  { %3086 = vmatmul.msk.f32.gmra.mxu0 %vm636_vm8, %v4421_v1  ;;  %3125 = vmatmul.msk.f32.gmra.mxu2 %vm636_vm8, %v4421_v1 }
 0x30f   :  { %v714_v15 = vpop.f32.mrf.mxu1 }
 0x310   :  { %v951_v13 = vpop.f32.mrf.mxu0  ;;  %v715_v28 = vadd.f32 %v714_v15, %v4434_v26 }
 0x311   :  { %v952_v16 = vadd.f32 %v951_v13, %v4434_v26 }
 0x312   :  { %3028 = vmatmul.msk.f32.gmra.mxu1 %vm636_vm8, %v4439_v27  ;;  %3048 = vmatmul.msk.f32.gmra.mxu3 %vm636_vm8, %v4439_v27  ;;  %771 = vst.msk [vmem:[%s6838_s8] sm:$0xff] %vm113_vm1, %v715_v28  ;;  %v2113_v28 = vsel %vm622_vm2, %v2112_v31, %v2100_v3  ;;  %v2105_v31 = vld [vmem:[#allocation2 + $0x5c] sm:$0x1]  ;;  %v2224_v3 = vld [vmem:[#allocation2 + $0x5d] sm:$0x1] }
 0x313   :  { %3087 = vmatmul.msk.f32.gmra.mxu0 %vm636_vm8, %v4439_v27  ;;  %3126 = vmatmul.msk.f32.gmra.mxu2 %vm636_vm8, %v4439_v27  ;;  %3090 = vst.msk [vmem:[%s6838_s8 + $0x100] sm:$0xff] %vm113_vm1, %v952_v16  ;;  %v2116_v16 = vrot.slane %v2103_v45, 5 }
 0x315   :  { %v832_v17 = vpop.f32.mrf.mxu3 }
 0x316   :  { %v833_v30 = vadd.f32 %v832_v17, %v4434_v26  ;;  %v1070_v32 = vpop.f32.mrf.mxu2  ;;  %v2235_v17 = vrot.slane %v2222_v6, 5  ;;  %v2343_v6 = vld [vmem:[#allocation2 + $0x5e] sm:$0x1] }
 0x317   :  { %v1071_v48 = vadd.f32 %v1070_v32, %v4434_v26  ;;  %v717_v4 = vpop.f32.mrf.mxu1 }
 0x318   :  { %3051 = vst.msk [vmem:[%s6838_s8 + $0x80] sm:$0xff] %vm113_vm1, %v833_v30  ;;  %v954_v11 = vpop.f32.mrf.mxu0  ;;  %v718_v34 = vadd.f32 %v717_v4, %v4459_v29  ;;  %v2457_v30 = vld [vmem:[#allocation2 + $0xf] sm:$0x1]  ;;  %v2223_v4 = vld [vmem:[#allocation2 + $0x4d] sm:$0x1] }
 0x319   :  { %3129 = vst.msk [vmem:[%s6838_s8 + $0x180] sm:$0xff] %vm113_vm1, %v1071_v48  ;;  %v955_v19 = vadd.f32 %v954_v11, %v4459_v29  ;;  %v2104_v48 = vld [vmem:[#allocation2 + $0x4c] sm:$0x1]  ;;  %v2232_v11 = vsel %vm622_vm2, %v2231_v7, %v2219_v50  ;;  %v2470_v40 = vsel %vm622_vm2, %v2469_v51, %v2457_v30  ;;  %v2237_v45 = vrot.slane %v2223_v4, 4 }
 0x31a   :  { %3029 = vmatmul.msk.f32.gmra.mxu1 %vm636_vm8, %v4466_v12  ;;  %3049 = vmatmul.msk.f32.gmra.mxu3 %vm636_vm8, %v4466_v12  ;;  %772 = vst.msk [vmem:[%s6838_s8 + $0x8] sm:$0xff] %vm113_vm1, %v718_v34  ;;  %v2351_v34 = vsel %vm622_vm2, %v2350_v18, %v2338_v52  ;;  %v2234_v10 = vsel %vm625_vm3, %v2233_v62, %v2232_v11  ;;  %v2120_v62 = vrot.slane %v2105_v31, 3 }
 0x31b   :  { %3088 = vmatmul.msk.f32.gmra.mxu0 %vm636_vm8, %v4466_v12  ;;  %3127 = vmatmul.msk.f32.gmra.mxu2 %vm636_vm8, %v4466_v12  ;;  %3091 = vst.msk [vmem:[%s6838_s8 + $0x108] sm:$0xff] %vm113_vm1, %v955_v19  ;;  %v2115_v19 = vsel %vm625_vm3, %v2114_v25, %v2113_v28  ;;  %v2353_v38 = vsel %vm625_vm3, %v2352_v8, %v2351_v34  ;;  %v2475_v25 = vrot.slane %v2461_v21, 4  ;;  %v2239_v8 = vrot.slane %v2224_v3, 3 }
 0x31c   :  { %v2472_v22 = vsel %vm625_vm3, %v2471_v14, %v2470_v40  ;;  %v2117_v18 = vsel %vm628_vm4, %v2116_v16, %v2115_v19  ;;  %v2236_v37 = vsel %vm628_vm4, %v2235_v17, %v2234_v10  ;;  %v2355_v47 = vsel %vm628_vm4, %v2354_v2, %v2353_v38  ;;  %v4586_v19 = vpop.permute.xlu2 %542 }
 0x31d   :  { %v835_v43 = vpop.f32.mrf.mxu3  ;;  %v2474_v51 = vsel %vm628_vm4, %v2473_v23, %v2472_v22  ;;  %v2358_v14 = vrot.slane %v2343_v6, 3  ;;  %v2238_v28 = vsel %vm631_vm5, %v2237_v45, %v2236_v37 }
 0x31e   :  { %v836_v24 = vadd.f32 %v835_v43, %v4459_v29  ;;  %v1073_v33 = vpop.f32.mrf.mxu2  ;;  %v2118_v43 = vrot.slane %v2104_v48, 4  ;;  %v2240_v11 = vsel %vm634_vm6, %v2239_v8, %v2238_v28 }
 0x31f   :  { %v1074_v41 = vadd.f32 %v1073_v33, %v4459_v29  ;;  %v720_v58 = vpop.f32.mrf.mxu1  ;;  %v2462_v33 = vld [vmem:[#allocation2 + $0x5f] sm:$0x1] }
 0x320   :  { %3052 = vst.msk [vmem:[%s6838_s8 + $0x88] sm:$0xff] %vm113_vm1, %v836_v24  ;;  %v957_v15 = vpop.f32.mrf.mxu0  ;;  %v721_v13 = vadd.f32 %v720_v58, %v4497_v44  ;;  %v2356_v24 = vrot.slane %v2342_v20, 4  ;;  %v2477_v16 = vrot.slane %v2462_v33, 3 }
 0x321   :  { %3130 = vst.msk [vmem:[%s6838_s8 + $0x188] sm:$0xff] %vm113_vm1, %v1074_v41  ;;  %v958_v32 = vadd.f32 %v957_v15, %v4497_v44 }
 0x322   :  { %3030 = vmatmul.msk.f32.gmra.mxu1 %vm636_vm8, %v4504_v55  ;;  %3050 = vmatmul.msk.f32.gmra.mxu3 %vm636_vm8, %v4504_v55  ;;  %773 = vst.msk [vmem:[%s6838_s8 + $0x10] sm:$0xff] %vm113_vm1, %v721_v13  ;;  %v2119_v13 = vsel %vm631_vm5, %v2118_v43, %v2117_v18  ;;  %v2357_v30 = vsel %vm631_vm5, %v2356_v24, %v2355_v47  ;;  %v4616_v43 = vpop.permute.xlu0 %547 }
 0x323   :  { %3089 = vmatmul.msk.f32.gmra.mxu0 %vm636_vm8, %v4504_v55  ;;  %3128 = vmatmul.msk.f32.gmra.mxu2 %vm636_vm8, %v4504_v55  ;;  %3092 = vst.msk [vmem:[%s6838_s8 + $0x110] sm:$0xff] %vm113_vm1, %v958_v32  ;;  %v2476_v32 = vsel %vm631_vm5, %v2475_v25, %v2474_v51  ;;  %v2121_v4 = vsel %vm634_vm6, %v2120_v62, %v2119_v13  ;;  %v4646_v25 = vpop.permute.xlu1 %552 }
 0x324   :  { %v2359_v34 = vsel %vm634_vm6, %v2358_v14, %v2357_v30  ;;  %v2478_v2 = vsel %vm634_vm6, %v2477_v16, %v2476_v32  ;;  %v4676_v62 = vpop.permute.xlu2 %557 }
 0x325   :  { %v838_v7 = vpop.f32.mrf.mxu3 }
 0x326   :  { %v839_v50 = vadd.f32 %v838_v7, %v4497_v44  ;;  %v1076_v52 = vpop.f32.mrf.mxu2 }
 0x327   :  { %v1077_v41 = vadd.f32 %v1076_v52, %v4497_v44  ;;  %v723_v58 = vpop.f32.mrf.mxu1 }
 0x328   :  { %3053 = vst.msk [vmem:[%s6838_s8 + $0x90] sm:$0xff] %vm113_vm1, %v839_v50  ;;  %v960_v15 = vpop.f32.mrf.mxu0  ;;  %v724_v17 = vadd.f32 %v723_v58, %v4540_v42 }
 0x329   :  { %3131 = vst.msk [vmem:[%s6838_s8 + $0x190] sm:$0xff] %vm113_vm1, %v1077_v41  ;;  %v961_v48 = vadd.f32 %v960_v15, %v4540_v42 }
 0x32a   :  { %3149 = vmatmul.msk.f32.vlgmr.msra.gmra.mxu1 %vm636_vm8, %v4140_v63  ;;  %3188 = vmatmul.msk.f32.vlgmr.msra.gmra.mxu3 %vm636_vm8, %v4140_v63  ;;  %774 = vst.msk [vmem:[%s6838_s8 + $0x18] sm:$0xff] %vm113_vm1, %v724_v17  ;;  %v4706_v30 = vpop.permute.xlu0 %562 }
 0x32b   :  { %3227 = vmatmul.msk.f32.vlgmr.msra.gmra.mxu0 %vm636_vm8, %v4140_v63  ;;  %3266 = vmatmul.msk.f32.vlgmr.msra.gmra.mxu2 %vm636_vm8, %v4140_v63  ;;  %3093 = vst.msk [vmem:[%s6838_s8 + $0x118] sm:$0xff] %vm113_vm1, %v961_v48 }
 0x32c   :  { %3460 = vmatpush.msk.msra.mxu1 %vm694_vm7, %v2121_v4  ;;  %3499 = vmatpush.msk.msra.mxu3 %vm694_vm7, %v2240_v11 }
 0x32d   :  { %3538 = vmatpush.msk.msra.mxu0 %vm694_vm7, %v2359_v34  ;;  %3577 = vmatpush.msk.msra.mxu2 %vm694_vm7, %v2478_v2  ;;  %v841_v63 = vpop.f32.mrf.mxu3 }
 0x32e   :  { %v842_v20 = vadd.f32 %v841_v63, %v4540_v42  ;;  %v1079_v21 = vpop.f32.mrf.mxu2 }
 0x32f   :  { %v1080_v40 = vadd.f32 %v1079_v21, %v4540_v42  ;;  %v726_v23 = vpop.f32.mrf.mxu1 }
 0x330   :  { %3054 = vst.msk [vmem:[%s6838_s8 + $0x98] sm:$0xff] %vm113_vm1, %v842_v20  ;;  %v963_v31 = vpop.f32.mrf.mxu0  ;;  %v727_v10 = vadd.f32 %v726_v23, %v4586_v19  ;;  %v4736_v20 = vpop.permute.xlu1 %567 }
 0x331   :  { %3132 = vst.msk [vmem:[%s6838_s8 + $0x198] sm:$0xff] %vm113_vm1, %v1080_v40  ;;  %v964_v38 = vadd.f32 %v963_v31, %v4586_v19 }
 0x332   :  { %3150 = vmatmul.msk.f32.gmra.mxu1 %vm636_vm8, %v4193_v56  ;;  %3189 = vmatmul.msk.f32.gmra.mxu3 %vm636_vm8, %v4193_v56  ;;  %775 = vst.msk [vmem:[%s6838_s8 + $0x20] sm:$0xff] %vm113_vm1, %v727_v10 }
 0x333   :  { %3228 = vmatmul.msk.f32.gmra.mxu0 %vm636_vm8, %v4193_v56  ;;  %3267 = vmatmul.msk.f32.gmra.mxu2 %vm636_vm8, %v4193_v56  ;;  %3094 = vst.msk [vmem:[%s6838_s8 + $0x120] sm:$0xff] %vm113_vm1, %v964_v38 }
 0x335   :  { %v844_v22 = vpop.f32.mrf.mxu3 }
 0x336   :  { %v845_v3 = vadd.f32 %v844_v22, %v4586_v19  ;;  %v1082_v45 = vpop.f32.mrf.mxu2 }
 0x337   :  { %v1083_v6 = vadd.f32 %v1082_v45, %v4586_v19  ;;  %v729_v7 = vpop.f32.mrf.mxu1 }
 0x338   :  { %3055 = vst.msk [vmem:[%s6838_s8 + $0xa0] sm:$0xff] %vm113_vm1, %v845_v3  ;;  %v966_v56 = vpop.f32.mrf.mxu0  ;;  %v730_v18 = vadd.f32 %v729_v7, %v4616_v43  ;;  %v4766_v3 = vpop.permute.xlu2 %572 }
 0x339   :  { %3133 = vst.msk [vmem:[%s6838_s8 + $0x1a0] sm:$0xff] %vm113_vm1, %v1083_v6  ;;  %v967_v24 = vadd.f32 %v966_v56, %v4616_v43 }
 0x33a   :  { %3151 = vmatmul.msk.f32.gmra.mxu1 %vm636_vm8, %v4211_v57  ;;  %3190 = vmatmul.msk.f32.gmra.mxu3 %vm636_vm8, %v4211_v57  ;;  %776 = vst.msk [vmem:[%s6838_s8 + $0x28] sm:$0xff] %vm113_vm1, %v730_v18 }
 0x33b   :  { %3229 = vmatmul.msk.f32.gmra.mxu0 %vm636_vm8, %v4211_v57  ;;  %3268 = vmatmul.msk.f32.gmra.mxu2 %vm636_vm8, %v4211_v57  ;;  %3095 = vst.msk [vmem:[%s6838_s8 + $0x128] sm:$0xff] %vm113_vm1, %v967_v24 }
 0x33d   :  { %v847_v33 = vpop.f32.mrf.mxu3 }
 0x33e   :  { %v848_v50 = vadd.f32 %v847_v33, %v4616_v43  ;;  %v1085_v52 = vpop.f32.mrf.mxu2 }
 0x33f   :  { %v1086_v37 = vadd.f32 %v1085_v52, %v4616_v43  ;;  %v732_v47 = vpop.f32.mrf.mxu1 }
 0x340   :  { %3056 = vst.msk [vmem:[%s6838_s8 + $0xa8] sm:$0xff] %vm113_vm1, %v848_v50  ;;  %v969_v57 = vpop.f32.mrf.mxu0  ;;  %v733_v51 = vadd.f32 %v732_v47, %v4646_v25  ;;  %v4796_v50 = vpop.permute.xlu0 %577 }
 0x341   :  { %3134 = vst.msk [vmem:[%s6838_s8 + $0x1a8] sm:$0xff] %vm113_vm1, %v1086_v37  ;;  %v970_v41 = vadd.f32 %v969_v57, %v4646_v25 }
 0x342   :  { %3152 = vmatmul.msk.f32.gmra.mxu1 %vm636_vm8, %v4227_v46  ;;  %3191 = vmatmul.msk.f32.gmra.mxu3 %vm636_vm8, %v4227_v46  ;;  %777 = vst.msk [vmem:[%s6838_s8 + $0x30] sm:$0xff] %vm113_vm1, %v733_v51 }
 0x343   :  { %3230 = vmatmul.msk.f32.gmra.mxu0 %vm636_vm8, %v4227_v46  ;;  %3269 = vmatmul.msk.f32.gmra.mxu2 %vm636_vm8, %v4227_v46  ;;  %3096 = vst.msk [vmem:[%s6838_s8 + $0x130] sm:$0xff] %vm113_vm1, %v970_v41 }
 0x345   :  { %v850_v58 = vpop.f32.mrf.mxu3 }
 0x346   :  { %v851_v8 = vadd.f32 %v850_v58, %v4646_v25  ;;  %v1088_v14 = vpop.f32.mrf.mxu2 }
 0x347   :  { %v1089_v15 = vadd.f32 %v1088_v14, %v4646_v25  ;;  %v735_v13 = vpop.f32.mrf.mxu1 }
 0x348   :  { %3057 = vst.msk [vmem:[%s6838_s8 + $0xb0] sm:$0xff] %vm113_vm1, %v851_v8  ;;  %v972_v46 = vpop.f32.mrf.mxu0  ;;  %v736_v28 = vadd.f32 %v735_v13, %v4676_v62  ;;  %v4826_v8 = vpop.permute.xlu1 %582 }
 0x349   :  { %3135 = vst.msk [vmem:[%s6838_s8 + $0x1b0] sm:$0xff] %vm113_vm1, %v1089_v15  ;;  %v973_v16 = vadd.f32 %v972_v46, %v4676_v62 }
 0x34a   :  { %3153 = vmatmul.msk.f32.gmra.mxu1 %vm636_vm8, %v4246_v35  ;;  %3192 = vmatmul.msk.f32.gmra.mxu3 %vm636_vm8, %v4246_v35  ;;  %778 = vst.msk [vmem:[%s6838_s8 + $0x38] sm:$0xff] %vm113_vm1, %v736_v28 }
 0x34b   :  { %3231 = vmatmul.msk.f32.gmra.mxu0 %vm636_vm8, %v4246_v35  ;;  %3270 = vmatmul.msk.f32.gmra.mxu2 %vm636_vm8, %v4246_v35  ;;  %3097 = vst.msk [vmem:[%s6838_s8 + $0x138] sm:$0xff] %vm113_vm1, %v973_v16 }
 0x34d   :  { %v853_v17 = vpop.f32.mrf.mxu3 }
 0x34e   :  { %v854_v32 = vadd.f32 %v853_v17, %v4676_v62  ;;  %v1091_v48 = vpop.f32.mrf.mxu2 }
 0x34f   :  { %v1092_v4 = vadd.f32 %v1091_v48, %v4676_v62  ;;  %v738_v11 = vpop.f32.mrf.mxu1 }
 0x350   :  { %3058 = vst.msk [vmem:[%s6838_s8 + $0xb8] sm:$0xff] %vm113_vm1, %v854_v32  ;;  %v975_v35 = vpop.f32.mrf.mxu0  ;;  %v739_v34 = vadd.f32 %v738_v11, %v4706_v30  ;;  %v4856_v32 = vpop.permute.xlu2 %587 }
 0x351   :  { %3136 = vst.msk [vmem:[%s6838_s8 + $0x1b8] sm:$0xff] %vm113_vm1, %v1092_v4  ;;  %v976_v2 = vadd.f32 %v975_v35, %v4706_v30 }
 0x352   :  { %3154 = vmatmul.msk.f32.gmra.mxu1 %vm636_vm8, %v4262_v36  ;;  %3193 = vmatmul.msk.f32.gmra.mxu3 %vm636_vm8, %v4262_v36  ;;  %779 = vst.msk [vmem:[%s6838_s8 + $0x40] sm:$0xff] %vm113_vm1, %v739_v34 }
 0x353   :  { %3232 = vmatmul.msk.f32.gmra.mxu0 %vm636_vm8, %v4262_v36  ;;  %3271 = vmatmul.msk.f32.gmra.mxu2 %vm636_vm8, %v4262_v36  ;;  %3098 = vst.msk [vmem:[%s6838_s8 + $0x140] sm:$0xff] %vm113_vm1, %v976_v2 }
 0x355   :  { %v856_v63 = vpop.f32.mrf.mxu3 }
 0x356   :  { %v857_v21 = vadd.f32 %v856_v63, %v4706_v30  ;;  %v1094_v40 = vpop.f32.mrf.mxu2 }
 0x357   :  { %v1095_v23 = vadd.f32 %v1094_v40, %v4706_v30  ;;  %v741_v31 = vpop.f32.mrf.mxu1 }
 0x358   :  { %3059 = vst.msk [vmem:[%s6838_s8 + $0xc0] sm:$0xff] %vm113_vm1, %v857_v21  ;;  %v978_v36 = vpop.f32.mrf.mxu0  ;;  %v742_v10 = vadd.f32 %v741_v31, %v4736_v20  ;;  %v4886_v21 = vpop.permute.xlu0 %592 }
 0x359   :  { %3137 = vst.msk [vmem:[%s6838_s8 + $0x1c0] sm:$0xff] %vm113_vm1, %v1095_v23  ;;  %v979_v38 = vadd.f32 %v978_v36, %v4736_v20 }
 0x35a   :  { %3155 = vmatmul.msk.f32.gmra.mxu1 %vm636_vm8, %v4278_v53  ;;  %3194 = vmatmul.msk.f32.gmra.mxu3 %vm636_vm8, %v4278_v53  ;;  %780 = vst.msk [vmem:[%s6838_s8 + $0x48] sm:$0xff] %vm113_vm1, %v742_v10 }
 0x35b   :  { %3233 = vmatmul.msk.f32.gmra.mxu0 %vm636_vm8, %v4278_v53  ;;  %3272 = vmatmul.msk.f32.gmra.mxu2 %vm636_vm8, %v4278_v53  ;;  %3099 = vst.msk [vmem:[%s6838_s8 + $0x148] sm:$0xff] %vm113_vm1, %v979_v38 }
 0x35d   :  { %v859_v22 = vpop.f32.mrf.mxu3 }
 0x35e   :  { %v860_v45 = vadd.f32 %v859_v22, %v4736_v20  ;;  %v1097_v6 = vpop.f32.mrf.mxu2 }
 0x35f   :  { %v1098_v7 = vadd.f32 %v1097_v6, %v4736_v20  ;;  %v744_v56 = vpop.f32.mrf.mxu1 }
 0x360   :  { %3060 = vst.msk [vmem:[%s6838_s8 + $0xc8] sm:$0xff] %vm113_vm1, %v860_v45  ;;  %v981_v53 = vpop.f32.mrf.mxu0  ;;  %v745_v18 = vadd.f32 %v744_v56, %v4766_v3  ;;  %v4916_v45 = vpop.permute.xlu1 %597 }
 0x361   :  { %3138 = vst.msk [vmem:[%s6838_s8 + $0x1c8] sm:$0xff] %vm113_vm1, %v1098_v7  ;;  %v982_v24 = vadd.f32 %v981_v53, %v4766_v3 }
 0x362   :  { %3156 = vmatmul.msk.f32.gmra.mxu1 %vm636_vm8, %v4294_v59  ;;  %3195 = vmatmul.msk.f32.gmra.mxu3 %vm636_vm8, %v4294_v59  ;;  %781 = vst.msk [vmem:[%s6838_s8 + $0x50] sm:$0xff] %vm113_vm1, %v745_v18 }
 0x363   :  { %3234 = vmatmul.msk.f32.gmra.mxu0 %vm636_vm8, %v4294_v59  ;;  %3273 = vmatmul.msk.f32.gmra.mxu2 %vm636_vm8, %v4294_v59  ;;  %3100 = vst.msk [vmem:[%s6838_s8 + $0x150] sm:$0xff] %vm113_vm1, %v982_v24 }
 0x365   :  { %v862_v33 = vpop.f32.mrf.mxu3 }
 0x366   :  { %v863_v52 = vadd.f32 %v862_v33, %v4766_v3  ;;  %v1100_v37 = vpop.f32.mrf.mxu2 }
 0x367   :  { %v1101_v47 = vadd.f32 %v1100_v37, %v4766_v3  ;;  %v747_v57 = vpop.f32.mrf.mxu1 }
 0x368   :  { %3061 = vst.msk [vmem:[%s6838_s8 + $0xd0] sm:$0xff] %vm113_vm1, %v863_v52  ;;  %v984_v59 = vpop.f32.mrf.mxu0  ;;  %v748_v51 = vadd.f32 %v747_v57, %v4796_v50  ;;  %v4946_v52 = vpop.permute.xlu2 %602 }
 0x369   :  { %3139 = vst.msk [vmem:[%s6838_s8 + $0x1d0] sm:$0xff] %vm113_vm1, %v1101_v47  ;;  %v985_v41 = vadd.f32 %v984_v59, %v4796_v50 }
 0x36a   :  { %3157 = vmatmul.msk.f32.gmra.mxu1 %vm636_vm8, %v4310_v49  ;;  %3196 = vmatmul.msk.f32.gmra.mxu3 %vm636_vm8, %v4310_v49  ;;  %782 = vst.msk [vmem:[%s6838_s8 + $0x58] sm:$0xff] %vm113_vm1, %v748_v51 }
 0x36b   :  { %3235 = vmatmul.msk.f32.gmra.mxu0 %vm636_vm8, %v4310_v49  ;;  %3274 = vmatmul.msk.f32.gmra.mxu2 %vm636_vm8, %v4310_v49  ;;  %3101 = vst.msk [vmem:[%s6838_s8 + $0x158] sm:$0xff] %vm113_vm1, %v985_v41 }
 0x36d   :  { %v865_v58 = vpop.f32.mrf.mxu3 }
 0x36e   :  { %v866_v14 = vadd.f32 %v865_v58, %v4796_v50  ;;  %v1103_v15 = vpop.f32.mrf.mxu2 }
 0x36f   :  { %v1104_v13 = vadd.f32 %v1103_v15, %v4796_v50  ;;  %v750_v46 = vpop.f32.mrf.mxu1 }
 0x370   :  { %3062 = vst.msk [vmem:[%s6838_s8 + $0xd8] sm:$0xff] %vm113_vm1, %v866_v14  ;;  %v987_v49 = vpop.f32.mrf.mxu0  ;;  %v751_v28 = vadd.f32 %v750_v46, %v4826_v8  ;;  %v4976_v14 = vpop.permute.xlu0 %607 }
 0x371   :  { %3140 = vst.msk [vmem:[%s6838_s8 + $0x1d8] sm:$0xff] %vm113_vm1, %v1104_v13  ;;  %v988_v16 = vadd.f32 %v987_v49, %v4826_v8 }
 0x372   :  { %3158 = vmatmul.msk.f32.gmra.mxu1 %vm636_vm8, %v4326_v39  ;;  %3197 = vmatmul.msk.f32.gmra.mxu3 %vm636_vm8, %v4326_v39  ;;  %783 = vst.msk [vmem:[%s6838_s8 + $0x60] sm:$0xff] %vm113_vm1, %v751_v28 }
 0x373   :  { %3236 = vmatmul.msk.f32.gmra.mxu0 %vm636_vm8, %v4326_v39  ;;  %3275 = vmatmul.msk.f32.gmra.mxu2 %vm636_vm8, %v4326_v39  ;;  %3102 = vst.msk [vmem:[%s6838_s8 + $0x160] sm:$0xff] %vm113_vm1, %v988_v16 }
 0x375   :  { %v868_v17 = vpop.f32.mrf.mxu3 }
 0x376   :  { %v869_v48 = vadd.f32 %v868_v17, %v4826_v8  ;;  %v1106_v4 = vpop.f32.mrf.mxu2 }
 0x377   :  { %v1107_v11 = vadd.f32 %v1106_v4, %v4826_v8  ;;  %v753_v35 = vpop.f32.mrf.mxu1 }
 0x378   :  { %3063 = vst.msk [vmem:[%s6838_s8 + $0xe0] sm:$0xff] %vm113_vm1, %v869_v48  ;;  %v990_v39 = vpop.f32.mrf.mxu0  ;;  %v754_v34 = vadd.f32 %v753_v35, %v4856_v32 }
 0x379   :  { %3141 = vst.msk [vmem:[%s6838_s8 + $0x1e0] sm:$0xff] %vm113_vm1, %v1107_v11  ;;  %v991_v2 = vadd.f32 %v990_v39, %v4856_v32 }
 0x37a   :  { %3159 = vmatmul.msk.f32.gmra.mxu1 %vm636_vm8, %v4342_v54  ;;  %3198 = vmatmul.msk.f32.gmra.mxu3 %vm636_vm8, %v4342_v54  ;;  %784 = vst.msk [vmem:[%s6838_s8 + $0x68] sm:$0xff] %vm113_vm1, %v754_v34 }
 0x37b   :  { %3237 = vmatmul.msk.f32.gmra.mxu0 %vm636_vm8, %v4342_v54  ;;  %3276 = vmatmul.msk.f32.gmra.mxu2 %vm636_vm8, %v4342_v54  ;;  %3103 = vst.msk [vmem:[%s6838_s8 + $0x168] sm:$0xff] %vm113_vm1, %v991_v2 }
 0x37d   :  { %v871_v63 = vpop.f32.mrf.mxu3 }
 0x37e   :  { %v872_v40 = vadd.f32 %v871_v63, %v4856_v32  ;;  %v1109_v23 = vpop.f32.mrf.mxu2 }
 0x37f   :  { %v1110_v31 = vadd.f32 %v1109_v23, %v4856_v32  ;;  %v756_v36 = vpop.f32.mrf.mxu1 }
 0x380   :  { %3064 = vst.msk [vmem:[%s6838_s8 + $0xe8] sm:$0xff] %vm113_vm1, %v872_v40  ;;  %v993_v54 = vpop.f32.mrf.mxu0  ;;  %v757_v10 = vadd.f32 %v756_v36, %v4886_v21 }
 0x381   :  { %3142 = vst.msk [vmem:[%s6838_s8 + $0x1e8] sm:$0xff] %vm113_vm1, %v1110_v31  ;;  %v994_v38 = vadd.f32 %v993_v54, %v4886_v21 }
 0x382   :  { %3160 = vmatmul.msk.f32.gmra.mxu1 %vm636_vm8, %v4358_v60  ;;  %3199 = vmatmul.msk.f32.gmra.mxu3 %vm636_vm8, %v4358_v60  ;;  %785 = vst.msk [vmem:[%s6838_s8 + $0x70] sm:$0xff] %vm113_vm1, %v757_v10 }
 0x383   :  { %3238 = vmatmul.msk.f32.gmra.mxu0 %vm636_vm8, %v4358_v60  ;;  %3277 = vmatmul.msk.f32.gmra.mxu2 %vm636_vm8, %v4358_v60  ;;  %3104 = vst.msk [vmem:[%s6838_s8 + $0x170] sm:$0xff] %vm113_vm1, %v994_v38 }
 0x385   :  { %v874_v22 = vpop.f32.mrf.mxu3 }
 0x386   :  { %v875_v6 = vadd.f32 %v874_v22, %v4886_v21  ;;  %v1112_v7 = vpop.f32.mrf.mxu2 }
 0x387   :  { %v1113_v56 = vadd.f32 %v1112_v7, %v4886_v21  ;;  %v759_v53 = vpop.f32.mrf.mxu1 }
 0x388   :  { %3065 = vst.msk [vmem:[%s6838_s8 + $0xf0] sm:$0xff] %vm113_vm1, %v875_v6  ;;  %v996_v60 = vpop.f32.mrf.mxu0  ;;  %v760_v18 = vadd.f32 %v759_v53, %v4916_v45 }
 0x389   :  { %3143 = vst.msk [vmem:[%s6838_s8 + $0x1f0] sm:$0xff] %vm113_vm1, %v1113_v56  ;;  %v997_v24 = vadd.f32 %v996_v60, %v4916_v45 }
 0x38a   :  { %3161 = vmatmul.msk.f32.gmra.mxu1 %vm636_vm8, %v4371_v5  ;;  %3200 = vmatmul.msk.f32.gmra.mxu3 %vm636_vm8, %v4371_v5  ;;  %786 = vst.msk [vmem:[%s6838_s8 + $0x78] sm:$0xff] %vm113_vm1, %v760_v18 }
 0x38b   :  { %3239 = vmatmul.msk.f32.gmra.mxu0 %vm636_vm8, %v4371_v5  ;;  %3278 = vmatmul.msk.f32.gmra.mxu2 %vm636_vm8, %v4371_v5  ;;  %3105 = vst.msk [vmem:[%s6838_s8 + $0x178] sm:$0xff] %vm113_vm1, %v997_v24 }
 0x38d   :  { %v877_v33 = vpop.f32.mrf.mxu3 }
 0x38e   :  { %v878_v37 = vadd.f32 %v877_v33, %v4916_v45  ;;  %v1115_v47 = vpop.f32.mrf.mxu2 }
 0x38f   :  { %v1116_v57 = vadd.f32 %v1115_v47, %v4916_v45  ;;  %v762_v59 = vpop.f32.mrf.mxu1 }
 0x390   :  { %3066 = vst.msk [vmem:[%s6838_s8 + $0xf8] sm:$0xff] %vm113_vm1, %v878_v37  ;;  %v999_v5 = vpop.f32.mrf.mxu0  ;;  %v763_v51 = vadd.f32 %v762_v59, %v4946_v52 }
 0x391   :  { %3144 = vst.msk [vmem:[%s6838_s8 + $0x1f8] sm:$0xff] %vm113_vm1, %v1116_v57  ;;  %v1000_v41 = vadd.f32 %v999_v5, %v4946_v52 }
 0x392   :  { %3162 = vmatmul.msk.f32.gmra.mxu1 %vm636_vm8, %v4387_v61  ;;  %3201 = vmatmul.msk.f32.gmra.mxu3 %vm636_vm8, %v4387_v61  ;;  %787 = vst.msk [vmem:[%s6839_s9] sm:$0xff] %vm113_vm1, %v763_v51 }
 0x393   :  { %3240 = vmatmul.msk.f32.gmra.mxu0 %vm636_vm8, %v4387_v61  ;;  %3279 = vmatmul.msk.f32.gmra.mxu2 %vm636_vm8, %v4387_v61  ;;  %3106 = vst.msk [vmem:[%s6839_s9 + $0x30] sm:$0xff] %vm113_vm1, %v1000_v41 }
 0x395   :  { %v880_v58 = vpop.f32.mrf.mxu3 }
 0x396   :  { %v881_v15 = vadd.f32 %v880_v58, %v4946_v52  ;;  %v1118_v13 = vpop.f32.mrf.mxu2 }
 0x397   :  { %v1119_v46 = vadd.f32 %v1118_v13, %v4946_v52  ;;  %v765_v49 = vpop.f32.mrf.mxu1 }
 0x398   :  { %3067 = vst.msk [vmem:[%s6839_s9 + $0x18] sm:$0xff] %vm113_vm1, %v881_v15  ;;  %v1002_v61 = vpop.f32.mrf.mxu0  ;;  %v766_v28 = vadd.f32 %v765_v49, %v4976_v14 }
 0x399   :  { %3145 = vst.msk [vmem:[%s6839_s9 + $0x48] sm:$0xff] %vm113_vm1, %v1119_v46  ;;  %v1003_v16 = vadd.f32 %v1002_v61, %v4976_v14  ;;  %v5137_v46 = vld [vmem:[%s6833_s3] sm:$0xff] }
 0x39a   :  { %3163 = vmatmul.msk.f32.gmra.mxu1 %vm636_vm8, %v4403_v0  ;;  %3202 = vmatmul.msk.f32.gmra.mxu3 %vm636_vm8, %v4403_v0  ;;  %788 = vst.msk [vmem:[%s6839_s9 + $0x8] sm:$0xff] %vm113_vm1, %v766_v28 }
 0x39b   :  { %3241 = vmatmul.msk.f32.gmra.mxu0 %vm636_vm8, %v4403_v0  ;;  %3280 = vmatmul.msk.f32.gmra.mxu2 %vm636_vm8, %v4403_v0  ;;  %3107 = vst.msk [vmem:[%s6839_s9 + $0x38] sm:$0xff] %vm113_vm1, %v1003_v16 }
 0x39d   :  { %v883_v17 = vpop.f32.mrf.mxu3 }
 0x39e   :  { %v884_v48 = vadd.f32 %v883_v17, %v4976_v14  ;;  %v1121_v4 = vpop.f32.mrf.mxu2 }
 0x39f   :  { %v1122_v11 = vadd.f32 %v1121_v4, %v4976_v14  ;;  %v768_v35 = vpop.f32.mrf.mxu1 }
 0x3a0   :  { %3068 = vst.msk [vmem:[%s6839_s9 + $0x20] sm:$0xff] %vm113_vm1, %v884_v48  ;;  %v769_v0 = vadd.f32 %v768_v35, %v4416_v9  ;;  %v1005_v39 = vpop.f32.mrf.mxu0  ;;  %v5170_v35 = vld [vmem:[%s6833_s3 + $0x8] sm:$0xff] }
 0x3a1   :  { %3146 = vst.msk [vmem:[%s6839_s9 + $0x50] sm:$0xff] %vm113_vm1, %v1122_v11  ;;  %v1006_v34 = vadd.f32 %v1005_v39, %v4416_v9 }
 0x3a2   :  { %790 = vst.msk [vmem:[%s6839_s9 + $0x10] sm:$0x7] %vm789_vm9, %v769_v0  ;;  %3164 = vmatmul.msk.f32.gmra.mxu1 %vm636_vm8, %v4421_v1  ;;  %3203 = vmatmul.msk.f32.gmra.mxu3 %vm636_vm8, %v4421_v1 }
 0x3a3   :  { %3108 = vst.msk [vmem:[%s6839_s9 + $0x40] sm:$0x7] %vm789_vm9, %v1006_v34  ;;  %3242 = vmatmul.msk.f32.gmra.mxu0 %vm636_vm8, %v4421_v1  ;;  %3281 = vmatmul.msk.f32.gmra.mxu2 %vm636_vm8, %v4421_v1 }
 0x3a5   :  { %v886_v2 = vpop.f32.mrf.mxu3 }
 0x3a6   :  { %v887_v63 = vadd.f32 %v886_v2, %v4416_v9  ;;  %v1124_v40 = vpop.f32.mrf.mxu2 }
 0x3a7   :  { %v1125_v23 = vadd.f32 %v1124_v40, %v4416_v9  ;;  %v1189_v31 = vpop.f32.mrf.mxu1 }
 0x3a8   :  { %3069 = vst.msk [vmem:[%s6839_s9 + $0x28] sm:$0x7] %vm789_vm9, %v887_v63  ;;  %v1190_v36 = vadd.f32 %v1189_v31, %v4434_v26  ;;  %v1427_v54 = vpop.f32.mrf.mxu0 }
 0x3a9   :  { %3147 = vst.msk [vmem:[%s6839_s9 + $0x58] sm:$0x7] %vm789_vm9, %v1125_v23  ;;  %v1428_v1 = vadd.f32 %v1427_v54, %v4434_v26 }
 0x3aa   :  { %3168 = vst.msk [vmem:[%s6838_s8 + $0x200] sm:$0xff] %vm113_vm1, %v1190_v36  ;;  %3165 = vmatmul.msk.f32.gmra.mxu1 %vm636_vm8, %v4439_v27  ;;  %3204 = vmatmul.msk.f32.gmra.mxu3 %vm636_vm8, %v4439_v27  ;;  %v5203_v36 = vld [vmem:[%s6833_s3 + $0x10] sm:$0xff] }
 0x3ab   :  { %3246 = vst.msk [vmem:[%s6838_s8 + $0x300] sm:$0xff] %vm113_vm1, %v1428_v1  ;;  %3243 = vmatmul.msk.f32.gmra.mxu0 %vm636_vm8, %v4439_v27  ;;  %3282 = vmatmul.msk.f32.gmra.mxu2 %vm636_vm8, %v4439_v27 }
 0x3ad   :  { %v1308_v10 = vpop.f32.mrf.mxu3 }
 0x3ae   :  { %v1309_v38 = vadd.f32 %v1308_v10, %v4434_v26  ;;  %v1546_v22 = vpop.f32.mrf.mxu2 }
 0x3af   :  { %v1547_v6 = vadd.f32 %v1546_v22, %v4434_v26  ;;  %v1192_v7 = vpop.f32.mrf.mxu1 }
 0x3b0   :  { %3207 = vst.msk [vmem:[%s6838_s8 + $0x280] sm:$0xff] %vm113_vm1, %v1309_v38  ;;  %v1193_v56 = vadd.f32 %v1192_v7, %v4459_v29  ;;  %v1430_v53 = vpop.f32.mrf.mxu0 }
 0x3b1   :  { %3285 = vst.msk [vmem:[%s6838_s8 + $0x380] sm:$0xff] %vm113_vm1, %v1547_v6  ;;  %v1431_v27 = vadd.f32 %v1430_v53, %v4459_v29  ;;  %v5236_v53 = vld [vmem:[%s6833_s3 + $0x18] sm:$0xff] }
 0x3b2   :  { %3169 = vst.msk [vmem:[%s6838_s8 + $0x208] sm:$0xff] %vm113_vm1, %v1193_v56  ;;  %3166 = vmatmul.msk.f32.gmra.mxu1 %vm636_vm8, %v4466_v12  ;;  %3205 = vmatmul.msk.f32.gmra.mxu3 %vm636_vm8, %v4466_v12 }
 0x3b3   :  { %3247 = vst.msk [vmem:[%s6838_s8 + $0x308] sm:$0xff] %vm113_vm1, %v1431_v27  ;;  %3244 = vmatmul.msk.f32.gmra.mxu0 %vm636_vm8, %v4466_v12  ;;  %3283 = vmatmul.msk.f32.gmra.mxu2 %vm636_vm8, %v4466_v12 }
 0x3b5   :  { %v1311_v60 = vpop.f32.mrf.mxu3 }
 0x3b6   :  { %v1312_v18 = vadd.f32 %v1311_v60, %v4459_v29  ;;  %v1549_v24 = vpop.f32.mrf.mxu2 }
 0x3b7   :  { %v1550_v33 = vadd.f32 %v1549_v24, %v4459_v29  ;;  %v1195_v37 = vpop.f32.mrf.mxu1 }
 0x3b8   :  { %3208 = vst.msk [vmem:[%s6838_s8 + $0x288] sm:$0xff] %vm113_vm1, %v1312_v18  ;;  %v1196_v47 = vadd.f32 %v1195_v37, %v4497_v44  ;;  %v1433_v57 = vpop.f32.mrf.mxu0 }
 0x3b9   :  { %3286 = vst.msk [vmem:[%s6838_s8 + $0x388] sm:$0xff] %vm113_vm1, %v1550_v33  ;;  %v1434_v12 = vadd.f32 %v1433_v57, %v4497_v44 }
 0x3ba   :  { %3170 = vst.msk [vmem:[%s6838_s8 + $0x210] sm:$0xff] %vm113_vm1, %v1196_v47  ;;  %3167 = vmatmul.msk.f32.gmra.mxu1 %vm636_vm8, %v4504_v55  ;;  %3206 = vmatmul.msk.f32.gmra.mxu3 %vm636_vm8, %v4504_v55 }
 0x3bb   :  { %3248 = vst.msk [vmem:[%s6838_s8 + $0x310] sm:$0xff] %vm113_vm1, %v1434_v12  ;;  %3245 = vmatmul.msk.f32.gmra.mxu0 %vm636_vm8, %v4504_v55  ;;  %3284 = vmatmul.msk.f32.gmra.mxu2 %vm636_vm8, %v4504_v55  ;;  %v5269_v12 = vld [vmem:[%s6833_s3 + $0x20] sm:$0xff] }
 0x3bd   :  { %v1314_v59 = vpop.f32.mrf.mxu3 }
 0x3be   :  { %v1315_v5 = vadd.f32 %v1314_v59, %v4497_v44  ;;  %v1552_v51 = vpop.f32.mrf.mxu2 }
 0x3bf   :  { %v1553_v41 = vadd.f32 %v1552_v51, %v4497_v44  ;;  %v1198_v58 = vpop.f32.mrf.mxu1 }
 0x3c0   :  { %3209 = vst.msk [vmem:[%s6838_s8 + $0x290] sm:$0xff] %vm113_vm1, %v1315_v5  ;;  %v1199_v15 = vadd.f32 %v1198_v58, %v4540_v42  ;;  %v1436_v13 = vpop.f32.mrf.mxu0 }
 0x3c1   :  { %3287 = vst.msk [vmem:[%s6838_s8 + $0x390] sm:$0xff] %vm113_vm1, %v1553_v41  ;;  %v1437_v55 = vadd.f32 %v1436_v13, %v4540_v42 }
 0x3c2   :  { %3171 = vst.msk [vmem:[%s6838_s8 + $0x218] sm:$0xff] %vm113_vm1, %v1199_v15  ;;  %3305 = vmatmul.msk.f32.vlgmr.msrb.gmra.mxu1 %vm636_vm8, %v5137_v46  ;;  %3344 = vmatmul.msk.f32.vlgmr.msrb.gmra.mxu3 %vm636_vm8, %v5137_v46 }
 0x3c3   :  { %3249 = vst.msk [vmem:[%s6838_s8 + $0x318] sm:$0xff] %vm113_vm1, %v1437_v55  ;;  %3383 = vmatmul.msk.f32.vlgmr.msrb.gmra.mxu0 %vm636_vm8, %v5137_v46  ;;  %3422 = vmatmul.msk.f32.vlgmr.msrb.gmra.mxu2 %vm636_vm8, %v5137_v46 }
 0x3c5   :  { %v1317_v49 = vpop.f32.mrf.mxu3 }
 0x3c6   :  { %v1318_v61 = vadd.f32 %v1317_v49, %v4540_v42  ;;  %v1555_v28 = vpop.f32.mrf.mxu2  ;;  %v5302_v49 = vld [vmem:[%s6833_s3 + $0x28] sm:$0xff] }
 0x3c7   :  { %v1556_v16 = vadd.f32 %v1555_v28, %v4540_v42  ;;  %v1201_v17 = vpop.f32.mrf.mxu1 }
 0x3c8   :  { %3210 = vst.msk [vmem:[%s6838_s8 + $0x298] sm:$0xff] %vm113_vm1, %v1318_v61  ;;  %v1202_v48 = vadd.f32 %v1201_v17, %v4586_v19  ;;  %v1439_v4 = vpop.f32.mrf.mxu0 }
 0x3c9   :  { %3288 = vst.msk [vmem:[%s6838_s8 + $0x398] sm:$0xff] %vm113_vm1, %v1556_v16  ;;  %v1440_v11 = vadd.f32 %v1439_v4, %v4586_v19 }
 0x3ca   :  { %3172 = vst.msk [vmem:[%s6838_s8 + $0x220] sm:$0xff] %vm113_vm1, %v1202_v48  ;;  %3306 = vmatmul.msk.f32.gmra.mxu1 %vm636_vm8, %v5170_v35  ;;  %3345 = vmatmul.msk.f32.gmra.mxu3 %vm636_vm8, %v5170_v35 }
 0x3cb   :  { %3250 = vst.msk [vmem:[%s6838_s8 + $0x320] sm:$0xff] %vm113_vm1, %v1440_v11  ;;  %3384 = vmatmul.msk.f32.gmra.mxu0 %vm636_vm8, %v5170_v35  ;;  %3423 = vmatmul.msk.f32.gmra.mxu2 %vm636_vm8, %v5170_v35 }
 0x3cd   :  { %v1320_v0 = vpop.f32.mrf.mxu3 }
 0x3ce   :  { %v1321_v39 = vadd.f32 %v1320_v0, %v4586_v19  ;;  %v1558_v34 = vpop.f32.mrf.mxu2 }
 0x3cf   :  { %v1559_v2 = vadd.f32 %v1558_v34, %v4586_v19  ;;  %v1204_v63 = vpop.f32.mrf.mxu1 }
 0x3d0   :  { %3211 = vst.msk [vmem:[%s6838_s8 + $0x2a0] sm:$0xff] %vm113_vm1, %v1321_v39  ;;  %v1205_v40 = vadd.f32 %v1204_v63, %v4616_v43  ;;  %v1442_v23 = vpop.f32.mrf.mxu0  ;;  %v5335_v39 = vld [vmem:[%s6833_s3 + $0x30] sm:$0xff] }
 0x3d1   :  { %3289 = vst.msk [vmem:[%s6838_s8 + $0x3a0] sm:$0xff] %vm113_vm1, %v1559_v2  ;;  %v1443_v31 = vadd.f32 %v1442_v23, %v4616_v43 }
 0x3d2   :  { %3173 = vst.msk [vmem:[%s6838_s8 + $0x228] sm:$0xff] %vm113_vm1, %v1205_v40  ;;  %3307 = vmatmul.msk.f32.gmra.mxu1 %vm636_vm8, %v5203_v36  ;;  %3346 = vmatmul.msk.f32.gmra.mxu3 %vm636_vm8, %v5203_v36 }
 0x3d3   :  { %3251 = vst.msk [vmem:[%s6838_s8 + $0x328] sm:$0xff] %vm113_vm1, %v1443_v31  ;;  %3385 = vmatmul.msk.f32.gmra.mxu0 %vm636_vm8, %v5203_v36  ;;  %3424 = vmatmul.msk.f32.gmra.mxu2 %vm636_vm8, %v5203_v36 }
 0x3d5   :  { %v1323_v54 = vpop.f32.mrf.mxu3 }
 0x3d6   :  { %v1324_v1 = vadd.f32 %v1323_v54, %v4616_v43  ;;  %v1561_v10 = vpop.f32.mrf.mxu2 }
 0x3d7   :  { %v1562_v38 = vadd.f32 %v1561_v10, %v4616_v43  ;;  %v1207_v22 = vpop.f32.mrf.mxu1  ;;  %v5368_v10 = vld [vmem:[%s6833_s3 + $0x38] sm:$0xff] }
 0x3d8   :  { %3212 = vst.msk [vmem:[%s6838_s8 + $0x2a8] sm:$0xff] %vm113_vm1, %v1324_v1  ;;  %v1208_v6 = vadd.f32 %v1207_v22, %v4646_v25  ;;  %v1445_v7 = vpop.f32.mrf.mxu0 }
 0x3d9   :  { %3290 = vst.msk [vmem:[%s6838_s8 + $0x3a8] sm:$0xff] %vm113_vm1, %v1562_v38  ;;  %v1446_v56 = vadd.f32 %v1445_v7, %v4646_v25 }
 0x3da   :  { %3174 = vst.msk [vmem:[%s6838_s8 + $0x230] sm:$0xff] %vm113_vm1, %v1208_v6  ;;  %3308 = vmatmul.msk.f32.gmra.mxu1 %vm636_vm8, %v5236_v53  ;;  %3347 = vmatmul.msk.f32.gmra.mxu3 %vm636_vm8, %v5236_v53 }
 0x3db   :  { %3252 = vst.msk [vmem:[%s6838_s8 + $0x330] sm:$0xff] %vm113_vm1, %v1446_v56  ;;  %3386 = vmatmul.msk.f32.gmra.mxu0 %vm636_vm8, %v5236_v53  ;;  %3425 = vmatmul.msk.f32.gmra.mxu2 %vm636_vm8, %v5236_v53 }
 0x3dd   :  { %v1326_v27 = vpop.f32.mrf.mxu3 }
 0x3de   :  { %v1327_v60 = vadd.f32 %v1326_v27, %v4646_v25  ;;  %v1564_v18 = vpop.f32.mrf.mxu2 }
 0x3df   :  { %v1565_v24 = vadd.f32 %v1564_v18, %v4646_v25  ;;  %v1210_v33 = vpop.f32.mrf.mxu1 }
 0x3e0   :  { %3213 = vst.msk [vmem:[%s6838_s8 + $0x2b0] sm:$0xff] %vm113_vm1, %v1327_v60  ;;  %v1211_v37 = vadd.f32 %v1210_v33, %v4676_v62  ;;  %v1448_v47 = vpop.f32.mrf.mxu0 }
 0x3e1   :  { %3291 = vst.msk [vmem:[%s6838_s8 + $0x3b0] sm:$0xff] %vm113_vm1, %v1565_v24  ;;  %v1449_v57 = vadd.f32 %v1448_v47, %v4676_v62  ;;  %v5401_v24 = vld [vmem:[%s6833_s3 + $0x40] sm:$0xff] }
 0x3e2   :  { %3175 = vst.msk [vmem:[%s6838_s8 + $0x238] sm:$0xff] %vm113_vm1, %v1211_v37  ;;  %3309 = vmatmul.msk.f32.gmra.mxu1 %vm636_vm8, %v5269_v12  ;;  %3348 = vmatmul.msk.f32.gmra.mxu3 %vm636_vm8, %v5269_v12 }
 0x3e3   :  { %3253 = vst.msk [vmem:[%s6838_s8 + $0x338] sm:$0xff] %vm113_vm1, %v1449_v57  ;;  %3387 = vmatmul.msk.f32.gmra.mxu0 %vm636_vm8, %v5269_v12  ;;  %3426 = vmatmul.msk.f32.gmra.mxu2 %vm636_vm8, %v5269_v12 }
 0x3e5   :  { %v1329_v59 = vpop.f32.mrf.mxu3 }
 0x3e6   :  { %v1330_v5 = vadd.f32 %v1329_v59, %v4676_v62  ;;  %v1567_v51 = vpop.f32.mrf.mxu2 }
 0x3e7   :  { %v1568_v41 = vadd.f32 %v1567_v51, %v4676_v62  ;;  %v1213_v58 = vpop.f32.mrf.mxu1 }
 0x3e8   :  { %3214 = vst.msk [vmem:[%s6838_s8 + $0x2b8] sm:$0xff] %vm113_vm1, %v1330_v5  ;;  %v1214_v15 = vadd.f32 %v1213_v58, %v4706_v30  ;;  %v1451_v13 = vpop.f32.mrf.mxu0  ;;  %v5434_v58 = vld [vmem:[%s6833_s3 + $0x48] sm:$0xff] }
 0x3e9   :  { %3292 = vst.msk [vmem:[%s6838_s8 + $0x3b8] sm:$0xff] %vm113_vm1, %v1568_v41  ;;  %v1452_v55 = vadd.f32 %v1451_v13, %v4706_v30 }
 0x3ea   :  { %3176 = vst.msk [vmem:[%s6838_s8 + $0x240] sm:$0xff] %vm113_vm1, %v1214_v15  ;;  %3310 = vmatmul.msk.f32.gmra.mxu1 %vm636_vm8, %v5302_v49  ;;  %3349 = vmatmul.msk.f32.gmra.mxu3 %vm636_vm8, %v5302_v49 }
 0x3eb   :  { %3254 = vst.msk [vmem:[%s6838_s8 + $0x340] sm:$0xff] %vm113_vm1, %v1452_v55  ;;  %3388 = vmatmul.msk.f32.gmra.mxu0 %vm636_vm8, %v5302_v49  ;;  %3427 = vmatmul.msk.f32.gmra.mxu2 %vm636_vm8, %v5302_v49 }
 0x3ed   :  { %v1332_v61 = vpop.f32.mrf.mxu3 }
 0x3ee   :  { %v1333_v28 = vadd.f32 %v1332_v61, %v4706_v30  ;;  %v1570_v16 = vpop.f32.mrf.mxu2 }
 0x3ef   :  { %v1571_v17 = vadd.f32 %v1570_v16, %v4706_v30  ;;  %v1216_v48 = vpop.f32.mrf.mxu1 }
 0x3f0   :  { %3215 = vst.msk [vmem:[%s6838_s8 + $0x2c0] sm:$0xff] %vm113_vm1, %v1333_v28  ;;  %v1217_v4 = vadd.f32 %v1216_v48, %v4736_v20  ;;  %v1454_v11 = vpop.f32.mrf.mxu0 }
 0x3f1   :  { %3293 = vst.msk [vmem:[%s6838_s8 + $0x3c0] sm:$0xff] %vm113_vm1, %v1571_v17  ;;  %v1455_v0 = vadd.f32 %v1454_v11, %v4736_v20 }
 0x3f2   :  { %3177 = vst.msk [vmem:[%s6838_s8 + $0x248] sm:$0xff] %vm113_vm1, %v1217_v4  ;;  %3311 = vmatmul.msk.f32.gmra.mxu1 %vm636_vm8, %v5335_v39  ;;  %3350 = vmatmul.msk.f32.gmra.mxu3 %vm636_vm8, %v5335_v39  ;;  %v5467_v4 = vld [vmem:[%s6833_s3 + $0x50] sm:$0xff] }
 0x3f3   :  { %3255 = vst.msk [vmem:[%s6838_s8 + $0x348] sm:$0xff] %vm113_vm1, %v1455_v0  ;;  %3389 = vmatmul.msk.f32.gmra.mxu0 %vm636_vm8, %v5335_v39  ;;  %3428 = vmatmul.msk.f32.gmra.mxu2 %vm636_vm8, %v5335_v39 }
 0x3f5   :  { %v1335_v34 = vpop.f32.mrf.mxu3 }
 0x3f6   :  { %v1336_v2 = vadd.f32 %v1335_v34, %v4736_v20  ;;  %v1573_v63 = vpop.f32.mrf.mxu2 }
 0x3f7   :  { %v1574_v40 = vadd.f32 %v1573_v63, %v4736_v20  ;;  %v1219_v23 = vpop.f32.mrf.mxu1 }
 0x3f8   :  { %3216 = vst.msk [vmem:[%s6838_s8 + $0x2c8] sm:$0xff] %vm113_vm1, %v1336_v2  ;;  %v1220_v31 = vadd.f32 %v1219_v23, %v4766_v3  ;;  %v1457_v54 = vpop.f32.mrf.mxu0 }
 0x3f9   :  { %3294 = vst.msk [vmem:[%s6838_s8 + $0x3c8] sm:$0xff] %vm113_vm1, %v1574_v40  ;;  %v1458_v1 = vadd.f32 %v1457_v54, %v4766_v3  ;;  %v5500_v54 = vld [vmem:[%s6833_s3 + $0x58] sm:$0xff] }
 0x3fa   :  { %3178 = vst.msk [vmem:[%s6838_s8 + $0x250] sm:$0xff] %vm113_vm1, %v1220_v31  ;;  %3312 = vmatmul.msk.f32.gmra.mxu1 %vm636_vm8, %v5368_v10  ;;  %3351 = vmatmul.msk.f32.gmra.mxu3 %vm636_vm8, %v5368_v10 }
 0x3fb   :  { %3256 = vst.msk [vmem:[%s6838_s8 + $0x350] sm:$0xff] %vm113_vm1, %v1458_v1  ;;  %3390 = vmatmul.msk.f32.gmra.mxu0 %vm636_vm8, %v5368_v10  ;;  %3429 = vmatmul.msk.f32.gmra.mxu2 %vm636_vm8, %v5368_v10 }
 0x3fd   :  { %v1338_v38 = vpop.f32.mrf.mxu3 }
 0x3fe   :  { %v1339_v22 = vadd.f32 %v1338_v38, %v4766_v3  ;;  %v1576_v6 = vpop.f32.mrf.mxu2 }
 0x3ff   :  { %v1577_v7 = vadd.f32 %v1576_v6, %v4766_v3  ;;  %v1222_v56 = vpop.f32.mrf.mxu1 }
 0x400   :  { %3217 = vst.msk [vmem:[%s6838_s8 + $0x2d0] sm:$0xff] %vm113_vm1, %v1339_v22  ;;  %v1223_v27 = vadd.f32 %v1222_v56, %v4796_v50  ;;  %v1460_v60 = vpop.f32.mrf.mxu0 }
 0x401   :  { %3295 = vst.msk [vmem:[%s6838_s8 + $0x3d0] sm:$0xff] %vm113_vm1, %v1577_v7  ;;  %v1461_v18 = vadd.f32 %v1460_v60, %v4796_v50 }
 0x402   :  { %3179 = vst.msk [vmem:[%s6838_s8 + $0x258] sm:$0xff] %vm113_vm1, %v1223_v27  ;;  %3313 = vmatmul.msk.f32.gmra.mxu1 %vm636_vm8, %v5401_v24  ;;  %3352 = vmatmul.msk.f32.gmra.mxu3 %vm636_vm8, %v5401_v24 }
 0x403   :  { %3257 = vst.msk [vmem:[%s6838_s8 + $0x358] sm:$0xff] %vm113_vm1, %v1461_v18  ;;  %3391 = vmatmul.msk.f32.gmra.mxu0 %vm636_vm8, %v5401_v24  ;;  %3430 = vmatmul.msk.f32.gmra.mxu2 %vm636_vm8, %v5401_v24  ;;  %v5533_v18 = vld [vmem:[%s6833_s3 + $0x60] sm:$0xff] }
 0x405   :  { %v1341_v33 = vpop.f32.mrf.mxu3 }
 0x406   :  { %v1342_v37 = vadd.f32 %v1341_v33, %v4796_v50  ;;  %v1579_v47 = vpop.f32.mrf.mxu2 }
 0x407   :  { %v1580_v57 = vadd.f32 %v1579_v47, %v4796_v50  ;;  %v1225_v59 = vpop.f32.mrf.mxu1 }
 0x408   :  { %3218 = vst.msk [vmem:[%s6838_s8 + $0x2d8] sm:$0xff] %vm113_vm1, %v1342_v37  ;;  %v1226_v5 = vadd.f32 %v1225_v59, %v4826_v8  ;;  %v1463_v51 = vpop.f32.mrf.mxu0 }
 0x409   :  { %3296 = vst.msk [vmem:[%s6838_s8 + $0x3d8] sm:$0xff] %vm113_vm1, %v1580_v57  ;;  %v1464_v41 = vadd.f32 %v1463_v51, %v4826_v8 }
 0x40a   :  { %3180 = vst.msk [vmem:[%s6838_s8 + $0x260] sm:$0xff] %vm113_vm1, %v1226_v5  ;;  %3314 = vmatmul.msk.f32.gmra.mxu1 %vm636_vm8, %v5434_v58  ;;  %3353 = vmatmul.msk.f32.gmra.mxu3 %vm636_vm8, %v5434_v58 }
 0x40b   :  { %3258 = vst.msk [vmem:[%s6838_s8 + $0x360] sm:$0xff] %vm113_vm1, %v1464_v41  ;;  %3392 = vmatmul.msk.f32.gmra.mxu0 %vm636_vm8, %v5434_v58  ;;  %3431 = vmatmul.msk.f32.gmra.mxu2 %vm636_vm8, %v5434_v58 }
 0x40d   :  { %v1344_v15 = vpop.f32.mrf.mxu3 }
 0x40e   :  { %v1345_v13 = vadd.f32 %v1344_v15, %v4826_v8  ;;  %v1582_v55 = vpop.f32.mrf.mxu2  ;;  %v5566_v15 = vld [vmem:[%s6833_s3 + $0x68] sm:$0xff] }
 0x40f   :  { %v1583_v61 = vadd.f32 %v1582_v55, %v4826_v8  ;;  %v1228_v28 = vpop.f32.mrf.mxu1 }
 0x410   :  { %3219 = vst.msk [vmem:[%s6838_s8 + $0x2e0] sm:$0xff] %vm113_vm1, %v1345_v13  ;;  %v1229_v16 = vadd.f32 %v1228_v28, %v4856_v32  ;;  %v1466_v17 = vpop.f32.mrf.mxu0 }
 0x411   :  { %3297 = vst.msk [vmem:[%s6838_s8 + $0x3e0] sm:$0xff] %vm113_vm1, %v1583_v61  ;;  %v1467_v48 = vadd.f32 %v1466_v17, %v4856_v32 }
 0x412   :  { %3181 = vst.msk [vmem:[%s6838_s8 + $0x268] sm:$0xff] %vm113_vm1, %v1229_v16  ;;  %3315 = vmatmul.msk.f32.gmra.mxu1 %vm636_vm8, %v5467_v4  ;;  %3354 = vmatmul.msk.f32.gmra.mxu3 %vm636_vm8, %v5467_v4 }
 0x413   :  { %3259 = vst.msk [vmem:[%s6838_s8 + $0x368] sm:$0xff] %vm113_vm1, %v1467_v48  ;;  %3393 = vmatmul.msk.f32.gmra.mxu0 %vm636_vm8, %v5467_v4  ;;  %3432 = vmatmul.msk.f32.gmra.mxu2 %vm636_vm8, %v5467_v4 }
 0x415   :  { %v1347_v11 = vpop.f32.mrf.mxu3 }
 0x416   :  { %v1348_v0 = vadd.f32 %v1347_v11, %v4856_v32  ;;  %v1585_v34 = vpop.f32.mrf.mxu2 }
 0x417   :  { %v1586_v2 = vadd.f32 %v1585_v34, %v4856_v32  ;;  %v1231_v63 = vpop.f32.mrf.mxu1 }
 0x418   :  { %3220 = vst.msk [vmem:[%s6838_s8 + $0x2e8] sm:$0xff] %vm113_vm1, %v1348_v0  ;;  %v1232_v40 = vadd.f32 %v1231_v63, %v4886_v21  ;;  %v1469_v23 = vpop.f32.mrf.mxu0  ;;  %v5599_v0 = vld [vmem:[%s6833_s3 + $0x70] sm:$0xff] }
 0x419   :  { %3298 = vst.msk [vmem:[%s6838_s8 + $0x3e8] sm:$0xff] %vm113_vm1, %v1586_v2  ;;  %v1470_v31 = vadd.f32 %v1469_v23, %v4886_v21 }
 0x41a   :  { %3182 = vst.msk [vmem:[%s6838_s8 + $0x270] sm:$0xff] %vm113_vm1, %v1232_v40  ;;  %3316 = vmatmul.msk.f32.gmra.mxu1 %vm636_vm8, %v5500_v54  ;;  %3355 = vmatmul.msk.f32.gmra.mxu3 %vm636_vm8, %v5500_v54 }
 0x41b   :  { %3260 = vst.msk [vmem:[%s6838_s8 + $0x370] sm:$0xff] %vm113_vm1, %v1470_v31  ;;  %3394 = vmatmul.msk.f32.gmra.mxu0 %vm636_vm8, %v5500_v54  ;;  %3433 = vmatmul.msk.f32.gmra.mxu2 %vm636_vm8, %v5500_v54 }
 0x41d   :  { %v1350_v1 = vpop.f32.mrf.mxu3 }
 0x41e   :  { %v1351_v38 = vadd.f32 %v1350_v1, %v4886_v21  ;;  %v1588_v22 = vpop.f32.mrf.mxu2 }
 0x41f   :  { %v1589_v6 = vadd.f32 %v1588_v22, %v4886_v21  ;;  %v1234_v7 = vpop.f32.mrf.mxu1  ;;  %v5632_v22 = vld [vmem:[%s6833_s3 + $0x78] sm:$0xff] }
 0x420   :  { %3221 = vst.msk [vmem:[%s6838_s8 + $0x2f0] sm:$0xff] %vm113_vm1, %v1351_v38  ;;  %v1235_v56 = vadd.f32 %v1234_v7, %v4916_v45  ;;  %v1472_v27 = vpop.f32.mrf.mxu0 }
 0x421   :  { %3299 = vst.msk [vmem:[%s6838_s8 + $0x3f0] sm:$0xff] %vm113_vm1, %v1589_v6  ;;  %v1473_v60 = vadd.f32 %v1472_v27, %v4916_v45 }
 0x422   :  { %3183 = vst.msk [vmem:[%s6838_s8 + $0x278] sm:$0xff] %vm113_vm1, %v1235_v56  ;;  %3317 = vmatmul.msk.f32.gmra.mxu1 %vm636_vm8, %v5533_v18  ;;  %3356 = vmatmul.msk.f32.gmra.mxu3 %vm636_vm8, %v5533_v18 }
 0x423   :  { %3261 = vst.msk [vmem:[%s6838_s8 + $0x378] sm:$0xff] %vm113_vm1, %v1473_v60  ;;  %3395 = vmatmul.msk.f32.gmra.mxu0 %vm636_vm8, %v5533_v18  ;;  %3434 = vmatmul.msk.f32.gmra.mxu2 %vm636_vm8, %v5533_v18 }
 0x425   :  { %v1353_v33 = vpop.f32.mrf.mxu3 }
 0x426   :  { %v1354_v37 = vadd.f32 %v1353_v33, %v4916_v45  ;;  %v1591_v47 = vpop.f32.mrf.mxu2 }
 0x427   :  { %v1592_v57 = vadd.f32 %v1591_v47, %v4916_v45  ;;  %v1237_v59 = vpop.f32.mrf.mxu1 }
 0x428   :  { %3222 = vst.msk [vmem:[%s6838_s8 + $0x2f8] sm:$0xff] %vm113_vm1, %v1354_v37  ;;  %v1238_v5 = vadd.f32 %v1237_v59, %v4946_v52  ;;  %v1475_v51 = vpop.f32.mrf.mxu0 }
 0x429   :  { %3300 = vst.msk [vmem:[%s6838_s8 + $0x3f8] sm:$0xff] %vm113_vm1, %v1592_v57  ;;  %v1476_v41 = vadd.f32 %v1475_v51, %v4946_v52  ;;  %v5665_v57 = vld [vmem:[%s6833_s3 + $0x80] sm:$0xff] }
 0x42a   :  { %3184 = vst.msk [vmem:[%s6839_s9 + $0x60] sm:$0xff] %vm113_vm1, %v1238_v5  ;;  %3318 = vmatmul.msk.f32.gmra.mxu1 %vm636_vm8, %v5566_v15  ;;  %3357 = vmatmul.msk.f32.gmra.mxu3 %vm636_vm8, %v5566_v15 }
 0x42b   :  { %3262 = vst.msk [vmem:[%s6839_s9 + $0x90] sm:$0xff] %vm113_vm1, %v1476_v41  ;;  %3396 = vmatmul.msk.f32.gmra.mxu0 %vm636_vm8, %v5566_v15  ;;  %3435 = vmatmul.msk.f32.gmra.mxu2 %vm636_vm8, %v5566_v15 }
 0x42d   :  { %v1356_v13 = vpop.f32.mrf.mxu3 }
 0x42e   :  { %v1357_v55 = vadd.f32 %v1356_v13, %v4946_v52  ;;  %v1594_v61 = vpop.f32.mrf.mxu2 }
 0x42f   :  { %v1595_v28 = vadd.f32 %v1594_v61, %v4946_v52  ;;  %v1240_v16 = vpop.f32.mrf.mxu1 }
 0x430   :  { %3223 = vst.msk [vmem:[%s6839_s9 + $0x78] sm:$0xff] %vm113_vm1, %v1357_v55  ;;  %v1241_v17 = vadd.f32 %v1240_v16, %v4976_v14  ;;  %v1478_v48 = vpop.f32.mrf.mxu0  ;;  %v5698_v16 = vld [vmem:[%s6833_s3 + $0x88] sm:$0xff] }
 0x431   :  { %3301 = vst.msk [vmem:[%s6839_s9 + $0xa8] sm:$0xff] %vm113_vm1, %v1595_v28  ;;  %v1479_v11 = vadd.f32 %v1478_v48, %v4976_v14 }
 0x432   :  { %3185 = vst.msk [vmem:[%s6839_s9 + $0x68] sm:$0xff] %vm113_vm1, %v1241_v17  ;;  %3319 = vmatmul.msk.f32.gmra.mxu1 %vm636_vm8, %v5599_v0  ;;  %3358 = vmatmul.msk.f32.gmra.mxu3 %vm636_vm8, %v5599_v0 }
 0x433   :  { %3263 = vst.msk [vmem:[%s6839_s9 + $0x98] sm:$0xff] %vm113_vm1, %v1479_v11  ;;  %3397 = vmatmul.msk.f32.gmra.mxu0 %vm636_vm8, %v5599_v0  ;;  %3436 = vmatmul.msk.f32.gmra.mxu2 %vm636_vm8, %v5599_v0 }
 0x435   :  { %v1359_v34 = vpop.f32.mrf.mxu3 }
 0x436   :  { %v1360_v2 = vadd.f32 %v1359_v34, %v4976_v14  ;;  %v1597_v63 = vpop.f32.mrf.mxu2 }
 0x437   :  { %v1598_v40 = vadd.f32 %v1597_v63, %v4976_v14  ;;  %v1243_v23 = vpop.f32.mrf.mxu1 }
 0x438   :  { %3224 = vst.msk [vmem:[%s6839_s9 + $0x80] sm:$0xff] %vm113_vm1, %v1360_v2  ;;  %v1244_v31 = vadd.f32 %v1243_v23, %v4416_v9  ;;  %v1481_v1 = vpop.f32.mrf.mxu0 }
 0x439   :  { %3302 = vst.msk [vmem:[%s6839_s9 + $0xb0] sm:$0xff] %vm113_vm1, %v1598_v40  ;;  %v1482_v38 = vadd.f32 %v1481_v1, %v4416_v9 }
 0x43a   :  { %3186 = vst.msk [vmem:[%s6839_s9 + $0x70] sm:$0x7] %vm789_vm9, %v1244_v31  ;;  %3320 = vmatmul.msk.f32.gmra.mxu1 %vm636_vm8, %v5632_v22  ;;  %3359 = vmatmul.msk.f32.gmra.mxu3 %vm636_vm8, %v5632_v22  ;;  %v5731_v31 = vld [vmem:[%s6833_s3 + $0x90] sm:$0x7]  ;;  %s3706_s3 = smov 128  }
 0x43b   :  { %3264 = vst.msk [vmem:[%s6839_s9 + $0xa0] sm:$0x7] %vm789_vm9, %v1482_v38  ;;  %3398 = vmatmul.msk.f32.gmra.mxu0 %vm636_vm8, %v5632_v22  ;;  %3437 = vmatmul.msk.f32.gmra.mxu2 %vm636_vm8, %v5632_v22 }
 0x43c   :  { %2923 = dma.vmem_to_hbm [thread:$0]  %s2916_s15, 1536, %s2918_s13, [#allocation3], %s3706_s3, %s3706_s3, %s3707_s16  }
 0x43d   :  { %v1362_v6 = vpop.f32.mrf.mxu3 }
 0x43e   :  { %v1363_v7 = vadd.f32 %v1362_v6, %v4416_v9  ;;  %v1600_v56 = vpop.f32.mrf.mxu2 }
 0x43f   :  { %v1601_v27 = vadd.f32 %v1600_v56, %v4416_v9  ;;  %v1665_v60 = vpop.f32.mrf.mxu1 }
 0x440   :  { %3225 = vst.msk [vmem:[%s6839_s9 + $0x88] sm:$0x7] %vm789_vm9, %v1363_v7  ;;  %v1666_v33 = vadd.f32 %v1665_v60, %v4434_v26  ;;  %v1903_v37 = vpop.f32.mrf.mxu0 }
 0x441   :  { %3303 = vst.msk [vmem:[%s6839_s9 + $0xb8] sm:$0x7] %vm789_vm9, %v1601_v27  ;;  %v1904_v47 = vadd.f32 %v1903_v37, %v4434_v26 }
 0x442   :  { %3324 = vst.msk [vmem:[%s6838_s8 + $0x400] sm:$0xff] %vm113_vm1, %v1666_v33  ;;  %3321 = vmatmul.msk.f32.gmra.mxu1 %vm636_vm8, %v5665_v57  ;;  %3360 = vmatmul.msk.f32.gmra.mxu3 %vm636_vm8, %v5665_v57 }
 0x443   :  { %3402 = vst.msk [vmem:[%s6838_s8 + $0x500] sm:$0xff] %vm113_vm1, %v1904_v47  ;;  %3399 = vmatmul.msk.f32.gmra.mxu0 %vm636_vm8, %v5665_v57  ;;  %3438 = vmatmul.msk.f32.gmra.mxu2 %vm636_vm8, %v5665_v57 }
 0x445   :  { %v1784_v59 = vpop.f32.mrf.mxu3 }
 0x446   :  { %v1785_v5 = vadd.f32 %v1784_v59, %v4434_v26  ;;  %v2022_v51 = vpop.f32.mrf.mxu2 }
 0x447   :  { %v2023_v41 = vadd.f32 %v2022_v51, %v4434_v26  ;;  %v1668_v13 = vpop.f32.mrf.mxu1 }
 0x448   :  { %3363 = vst.msk [vmem:[%s6838_s8 + $0x480] sm:$0xff] %vm113_vm1, %v1785_v5  ;;  %v1669_v55 = vadd.f32 %v1668_v13, %v4459_v29  ;;  %v1906_v61 = vpop.f32.mrf.mxu0 }
 0x449   :  { %3441 = vst.msk [vmem:[%s6838_s8 + $0x580] sm:$0xff] %vm113_vm1, %v2023_v41  ;;  %v1907_v28 = vadd.f32 %v1906_v61, %v4459_v29 }
 0x44a   :  { %3325 = vst.msk [vmem:[%s6838_s8 + $0x408] sm:$0xff] %vm113_vm1, %v1669_v55  ;;  %3322 = vmatmul.msk.f32.gmra.mxu1 %vm636_vm8, %v5698_v16  ;;  %3361 = vmatmul.msk.f32.gmra.mxu3 %vm636_vm8, %v5698_v16 }
 0x44b   :  { %3403 = vst.msk [vmem:[%s6838_s8 + $0x508] sm:$0xff] %vm113_vm1, %v1907_v28  ;;  %3400 = vmatmul.msk.f32.gmra.mxu0 %vm636_vm8, %v5698_v16  ;;  %3439 = vmatmul.msk.f32.gmra.mxu2 %vm636_vm8, %v5698_v16 }
 0x44d   :  { %v1787_v17 = vpop.f32.mrf.mxu3 }
 0x44e   :  { %v1788_v48 = vadd.f32 %v1787_v17, %v4459_v29  ;;  %v2025_v11 = vpop.f32.mrf.mxu2 }
 0x44f   :  { %v2026_v34 = vadd.f32 %v2025_v11, %v4459_v29  ;;  %v1671_v2 = vpop.f32.mrf.mxu1 }
 0x450   :  { %3364 = vst.msk [vmem:[%s6838_s8 + $0x488] sm:$0xff] %vm113_vm1, %v1788_v48  ;;  %v1672_v63 = vadd.f32 %v1671_v2, %v4497_v44  ;;  %v1909_v40 = vpop.f32.mrf.mxu0 }
 0x451   :  { %3442 = vst.msk [vmem:[%s6838_s8 + $0x588] sm:$0xff] %vm113_vm1, %v2026_v34  ;;  %v1910_v23 = vadd.f32 %v1909_v40, %v4497_v44 }
 0x452   :  { %3326 = vst.msk [vmem:[%s6838_s8 + $0x410] sm:$0xff] %vm113_vm1, %v1672_v63  ;;  %3323 = vmatmul.msk.f32.gmra.mxu1 %vm636_vm8, %v5731_v31  ;;  %3362 = vmatmul.msk.f32.gmra.mxu3 %vm636_vm8, %v5731_v31 }
 0x453   :  { %3404 = vst.msk [vmem:[%s6838_s8 + $0x510] sm:$0xff] %vm113_vm1, %v1910_v23  ;;  %3401 = vmatmul.msk.f32.gmra.mxu0 %vm636_vm8, %v5731_v31  ;;  %3440 = vmatmul.msk.f32.gmra.mxu2 %vm636_vm8, %v5731_v31 }
 0x455   :  { %v1790_v1 = vpop.f32.mrf.mxu3 }
 0x456   :  { %v1791_v38 = vadd.f32 %v1790_v1, %v4497_v44  ;;  %v2028_v6 = vpop.f32.mrf.mxu2 }
 0x457   :  { %v2029_v7 = vadd.f32 %v2028_v6, %v4497_v44  ;;  %v1674_v56 = vpop.f32.mrf.mxu1 }
 0x458   :  { %3365 = vst.msk [vmem:[%s6838_s8 + $0x490] sm:$0xff] %vm113_vm1, %v1791_v38  ;;  %v1675_v27 = vadd.f32 %v1674_v56, %v4540_v42  ;;  %v1912_v60 = vpop.f32.mrf.mxu0 }
 0x459   :  { %3443 = vst.msk [vmem:[%s6838_s8 + $0x590] sm:$0xff] %vm113_vm1, %v2029_v7  ;;  %v1913_v33 = vadd.f32 %v1912_v60, %v4540_v42 }
 0x45a   :  { %3327 = vst.msk [vmem:[%s6838_s8 + $0x418] sm:$0xff] %vm113_vm1, %v1675_v27  ;;  %3461 = vmatmul.msk.f32.vlgmr.msra.gmra.mxu1 %vm636_vm8, %v5137_v46  ;;  %3500 = vmatmul.msk.f32.vlgmr.msra.gmra.mxu3 %vm636_vm8, %v5137_v46 }
 0x45b   :  { %3405 = vst.msk [vmem:[%s6838_s8 + $0x518] sm:$0xff] %vm113_vm1, %v1913_v33  ;;  %3539 = vmatmul.msk.f32.vlgmr.msra.gmra.mxu0 %vm636_vm8, %v5137_v46  ;;  %3578 = vmatmul.msk.f32.vlgmr.msra.gmra.mxu2 %vm636_vm8, %v5137_v46 }
 0x45d   :  { %v1793_v37 = vpop.f32.mrf.mxu3 }
 0x45e   :  { %v1794_v47 = vadd.f32 %v1793_v37, %v4540_v42  ;;  %v2031_v59 = vpop.f32.mrf.mxu2 }
 0x45f   :  { %v2032_v5 = vadd.f32 %v2031_v59, %v4540_v42  ;;  %v1677_v51 = vpop.f32.mrf.mxu1 }
 0x460   :  { %3366 = vst.msk [vmem:[%s6838_s8 + $0x498] sm:$0xff] %vm113_vm1, %v1794_v47  ;;  %v1678_v41 = vadd.f32 %v1677_v51, %v4586_v19  ;;  %v1915_v13 = vpop.f32.mrf.mxu0 }
 0x461   :  { %3444 = vst.msk [vmem:[%s6838_s8 + $0x598] sm:$0xff] %vm113_vm1, %v2032_v5  ;;  %v1916_v46 = vadd.f32 %v1915_v13, %v4586_v19 }
 0x462   :  { %3328 = vst.msk [vmem:[%s6838_s8 + $0x420] sm:$0xff] %vm113_vm1, %v1678_v41  ;;  %3462 = vmatmul.msk.f32.gmra.mxu1 %vm636_vm8, %v5170_v35  ;;  %3501 = vmatmul.msk.f32.gmra.mxu3 %vm636_vm8, %v5170_v35 }
 0x463   :  { %3406 = vst.msk [vmem:[%s6838_s8 + $0x520] sm:$0xff] %vm113_vm1, %v1916_v46  ;;  %3540 = vmatmul.msk.f32.gmra.mxu0 %vm636_vm8, %v5170_v35  ;;  %3579 = vmatmul.msk.f32.gmra.mxu2 %vm636_vm8, %v5170_v35 }
 0x465   :  { %v1796_v55 = vpop.f32.mrf.mxu3 }
 0x466   :  { %v1797_v61 = vadd.f32 %v1796_v55, %v4586_v19  ;;  %v2034_v28 = vpop.f32.mrf.mxu2 }
 0x467   :  { %v2035_v17 = vadd.f32 %v2034_v28, %v4586_v19  ;;  %v1680_v48 = vpop.f32.mrf.mxu1 }
 0x468   :  { %3367 = vst.msk [vmem:[%s6838_s8 + $0x4a0] sm:$0xff] %vm113_vm1, %v1797_v61  ;;  %v1681_v11 = vadd.f32 %v1680_v48, %v4616_v43  ;;  %v1918_v34 = vpop.f32.mrf.mxu0 }
 0x469   :  { %3445 = vst.msk [vmem:[%s6838_s8 + $0x5a0] sm:$0xff] %vm113_vm1, %v2035_v17  ;;  %v1919_v35 = vadd.f32 %v1918_v34, %v4616_v43 }
 0x46a   :  { %3329 = vst.msk [vmem:[%s6838_s8 + $0x428] sm:$0xff] %vm113_vm1, %v1681_v11  ;;  %3463 = vmatmul.msk.f32.gmra.mxu1 %vm636_vm8, %v5203_v36  ;;  %3502 = vmatmul.msk.f32.gmra.mxu3 %vm636_vm8, %v5203_v36 }
 0x46b   :  { %3407 = vst.msk [vmem:[%s6838_s8 + $0x528] sm:$0xff] %vm113_vm1, %v1919_v35  ;;  %3541 = vmatmul.msk.f32.gmra.mxu0 %vm636_vm8, %v5203_v36  ;;  %3580 = vmatmul.msk.f32.gmra.mxu2 %vm636_vm8, %v5203_v36 }
 0x46d   :  { %v1799_v2 = vpop.f32.mrf.mxu3 }
 0x46e   :  { %v1800_v63 = vadd.f32 %v1799_v2, %v4616_v43  ;;  %v2037_v40 = vpop.f32.mrf.mxu2 }
 0x46f   :  { %v2038_v23 = vadd.f32 %v2037_v40, %v4616_v43  ;;  %v1683_v1 = vpop.f32.mrf.mxu1 }
 0x470   :  { %3368 = vst.msk [vmem:[%s6838_s8 + $0x4a8] sm:$0xff] %vm113_vm1, %v1800_v63  ;;  %v1684_v38 = vadd.f32 %v1683_v1, %v4646_v25  ;;  %v1921_v6 = vpop.f32.mrf.mxu0 }
 0x471   :  { %3446 = vst.msk [vmem:[%s6838_s8 + $0x5a8] sm:$0xff] %vm113_vm1, %v2038_v23  ;;  %v1922_v36 = vadd.f32 %v1921_v6, %v4646_v25 }
 0x472   :  { %3330 = vst.msk [vmem:[%s6838_s8 + $0x430] sm:$0xff] %vm113_vm1, %v1684_v38  ;;  %3464 = vmatmul.msk.f32.gmra.mxu1 %vm636_vm8, %v5236_v53  ;;  %3503 = vmatmul.msk.f32.gmra.mxu3 %vm636_vm8, %v5236_v53 }
 0x473   :  { %3408 = vst.msk [vmem:[%s6838_s8 + $0x530] sm:$0xff] %vm113_vm1, %v1922_v36  ;;  %3542 = vmatmul.msk.f32.gmra.mxu0 %vm636_vm8, %v5236_v53  ;;  %3581 = vmatmul.msk.f32.gmra.mxu2 %vm636_vm8, %v5236_v53 }
 0x475   :  { %v1802_v7 = vpop.f32.mrf.mxu3 }
 0x476   :  { %v1803_v56 = vadd.f32 %v1802_v7, %v4646_v25  ;;  %v2040_v27 = vpop.f32.mrf.mxu2 }
 0x477   :  { %v2041_v60 = vadd.f32 %v2040_v27, %v4646_v25  ;;  %v1686_v33 = vpop.f32.mrf.mxu1 }
 0x478   :  { %3369 = vst.msk [vmem:[%s6838_s8 + $0x4b0] sm:$0xff] %vm113_vm1, %v1803_v56  ;;  %v1687_v37 = vadd.f32 %v1686_v33, %v4676_v62  ;;  %v1924_v47 = vpop.f32.mrf.mxu0 }
 0x479   :  { %3447 = vst.msk [vmem:[%s6838_s8 + $0x5b0] sm:$0xff] %vm113_vm1, %v2041_v60  ;;  %v1925_v53 = vadd.f32 %v1924_v47, %v4676_v62 }
 0x47a   :  { %3331 = vst.msk [vmem:[%s6838_s8 + $0x438] sm:$0xff] %vm113_vm1, %v1687_v37  ;;  %3465 = vmatmul.msk.f32.gmra.mxu1 %vm636_vm8, %v5269_v12  ;;  %3504 = vmatmul.msk.f32.gmra.mxu3 %vm636_vm8, %v5269_v12 }
 0x47b   :  { %3409 = vst.msk [vmem:[%s6838_s8 + $0x538] sm:$0xff] %vm113_vm1, %v1925_v53  ;;  %3543 = vmatmul.msk.f32.gmra.mxu0 %vm636_vm8, %v5269_v12  ;;  %3582 = vmatmul.msk.f32.gmra.mxu2 %vm636_vm8, %v5269_v12 }
 0x47d   :  { %v1805_v59 = vpop.f32.mrf.mxu3 }
 0x47e   :  { %v1806_v5 = vadd.f32 %v1805_v59, %v4676_v62  ;;  %v2043_v51 = vpop.f32.mrf.mxu2 }
 0x47f   :  { %v2044_v41 = vadd.f32 %v2043_v51, %v4676_v62  ;;  %v1689_v13 = vpop.f32.mrf.mxu1 }
 0x480   :  { %3370 = vst.msk [vmem:[%s6838_s8 + $0x4b8] sm:$0xff] %vm113_vm1, %v1806_v5  ;;  %v1690_v46 = vadd.f32 %v1689_v13, %v4706_v30  ;;  %v1927_v55 = vpop.f32.mrf.mxu0 }
 0x481   :  { %3448 = vst.msk [vmem:[%s6838_s8 + $0x5b8] sm:$0xff] %vm113_vm1, %v2044_v41  ;;  %v1928_v12 = vadd.f32 %v1927_v55, %v4706_v30 }
 0x482   :  { %3332 = vst.msk [vmem:[%s6838_s8 + $0x440] sm:$0xff] %vm113_vm1, %v1690_v46  ;;  %3466 = vmatmul.msk.f32.gmra.mxu1 %vm636_vm8, %v5302_v49  ;;  %3505 = vmatmul.msk.f32.gmra.mxu3 %vm636_vm8, %v5302_v49 }
 0x483   :  { %3410 = vst.msk [vmem:[%s6838_s8 + $0x540] sm:$0xff] %vm113_vm1, %v1928_v12  ;;  %3544 = vmatmul.msk.f32.gmra.mxu0 %vm636_vm8, %v5302_v49  ;;  %3583 = vmatmul.msk.f32.gmra.mxu2 %vm636_vm8, %v5302_v49 }
 0x485   :  { %v1808_v61 = vpop.f32.mrf.mxu3 }
 0x486   :  { %v1809_v28 = vadd.f32 %v1808_v61, %v4706_v30  ;;  %v2046_v17 = vpop.f32.mrf.mxu2 }
 0x487   :  { %v2047_v48 = vadd.f32 %v2046_v17, %v4706_v30  ;;  %v1692_v11 = vpop.f32.mrf.mxu1 }
 0x488   :  { %3371 = vst.msk [vmem:[%s6838_s8 + $0x4c0] sm:$0xff] %vm113_vm1, %v1809_v28  ;;  %v1693_v34 = vadd.f32 %v1692_v11, %v4736_v20  ;;  %v1930_v35 = vpop.f32.mrf.mxu0 }
 0x489   :  { %3449 = vst.msk [vmem:[%s6838_s8 + $0x5c0] sm:$0xff] %vm113_vm1, %v2047_v48  ;;  %v1931_v49 = vadd.f32 %v1930_v35, %v4736_v20 }
 0x48a   :  { %3333 = vst.msk [vmem:[%s6838_s8 + $0x448] sm:$0xff] %vm113_vm1, %v1693_v34  ;;  %3467 = vmatmul.msk.f32.gmra.mxu1 %vm636_vm8, %v5335_v39  ;;  %3506 = vmatmul.msk.f32.gmra.mxu3 %vm636_vm8, %v5335_v39 }
 0x48b   :  { %3411 = vst.msk [vmem:[%s6838_s8 + $0x548] sm:$0xff] %vm113_vm1, %v1931_v49  ;;  %3545 = vmatmul.msk.f32.gmra.mxu0 %vm636_vm8, %v5335_v39  ;;  %3584 = vmatmul.msk.f32.gmra.mxu2 %vm636_vm8, %v5335_v39 }
 0x48d   :  { %v1811_v2 = vpop.f32.mrf.mxu3 }
 0x48e   :  { %v1812_v63 = vadd.f32 %v1811_v2, %v4736_v20  ;;  %v2049_v40 = vpop.f32.mrf.mxu2 }
 0x48f   :  { %v2050_v23 = vadd.f32 %v2049_v40, %v4736_v20  ;;  %v1695_v1 = vpop.f32.mrf.mxu1 }
 0x490   :  { %3372 = vst.msk [vmem:[%s6838_s8 + $0x4c8] sm:$0xff] %vm113_vm1, %v1812_v63  ;;  %v1696_v38 = vadd.f32 %v1695_v1, %v4766_v3  ;;  %v1933_v6 = vpop.f32.mrf.mxu0 }
 0x491   :  { %3450 = vst.msk [vmem:[%s6838_s8 + $0x5c8] sm:$0xff] %vm113_vm1, %v2050_v23  ;;  %v1934_v39 = vadd.f32 %v1933_v6, %v4766_v3 }
 0x492   :  { %3334 = vst.msk [vmem:[%s6838_s8 + $0x450] sm:$0xff] %vm113_vm1, %v1696_v38  ;;  %3468 = vmatmul.msk.f32.gmra.mxu1 %vm636_vm8, %v5368_v10  ;;  %3507 = vmatmul.msk.f32.gmra.mxu3 %vm636_vm8, %v5368_v10 }
 0x493   :  { %3412 = vst.msk [vmem:[%s6838_s8 + $0x550] sm:$0xff] %vm113_vm1, %v1934_v39  ;;  %3546 = vmatmul.msk.f32.gmra.mxu0 %vm636_vm8, %v5368_v10  ;;  %3585 = vmatmul.msk.f32.gmra.mxu2 %vm636_vm8, %v5368_v10 }
 0x495   :  { %v1814_v36 = vpop.f32.mrf.mxu3 }
 0x496   :  { %v1815_v7 = vadd.f32 %v1814_v36, %v4766_v3  ;;  %v2052_v56 = vpop.f32.mrf.mxu2 }
 0x497   :  { %v2053_v27 = vadd.f32 %v2052_v56, %v4766_v3  ;;  %v1698_v60 = vpop.f32.mrf.mxu1 }
 0x498   :  { %3373 = vst.msk [vmem:[%s6838_s8 + $0x4d0] sm:$0xff] %vm113_vm1, %v1815_v7  ;;  %v1699_v33 = vadd.f32 %v1698_v60, %v4796_v50  ;;  %v1936_v37 = vpop.f32.mrf.mxu0 }
 0x499   :  { %3451 = vst.msk [vmem:[%s6838_s8 + $0x5d0] sm:$0xff] %vm113_vm1, %v2053_v27  ;;  %v1937_v10 = vadd.f32 %v1936_v37, %v4796_v50 }
 0x49a   :  { %3335 = vst.msk [vmem:[%s6838_s8 + $0x458] sm:$0xff] %vm113_vm1, %v1699_v33  ;;  %3469 = vmatmul.msk.f32.gmra.mxu1 %vm636_vm8, %v5401_v24  ;;  %3508 = vmatmul.msk.f32.gmra.mxu3 %vm636_vm8, %v5401_v24 }
 0x49b   :  { %3413 = vst.msk [vmem:[%s6838_s8 + $0x558] sm:$0xff] %vm113_vm1, %v1937_v10  ;;  %3547 = vmatmul.msk.f32.gmra.mxu0 %vm636_vm8, %v5401_v24  ;;  %3586 = vmatmul.msk.f32.gmra.mxu2 %vm636_vm8, %v5401_v24 }
 0x49d   :  { %v1817_v47 = vpop.f32.mrf.mxu3 }
 0x49e   :  { %v1818_v53 = vadd.f32 %v1817_v47, %v4796_v50  ;;  %v2055_v59 = vpop.f32.mrf.mxu2 }
 0x49f   :  { %v2056_v5 = vadd.f32 %v2055_v59, %v4796_v50  ;;  %v1701_v51 = vpop.f32.mrf.mxu1 }
 0x4a0   :  { %3374 = vst.msk [vmem:[%s6838_s8 + $0x4d8] sm:$0xff] %vm113_vm1, %v1818_v53  ;;  %v1702_v41 = vadd.f32 %v1701_v51, %v4826_v8  ;;  %v1939_v13 = vpop.f32.mrf.mxu0 }
 0x4a1   :  { %3452 = vst.msk [vmem:[%s6838_s8 + $0x5d8] sm:$0xff] %vm113_vm1, %v2056_v5  ;;  %v1940_v24 = vadd.f32 %v1939_v13, %v4826_v8 }
 0x4a2   :  { %3336 = vst.msk [vmem:[%s6838_s8 + $0x460] sm:$0xff] %vm113_vm1, %v1702_v41  ;;  %3470 = vmatmul.msk.f32.gmra.mxu1 %vm636_vm8, %v5434_v58  ;;  %3509 = vmatmul.msk.f32.gmra.mxu3 %vm636_vm8, %v5434_v58 }
 0x4a3   :  { %3414 = vst.msk [vmem:[%s6838_s8 + $0x560] sm:$0xff] %vm113_vm1, %v1940_v24  ;;  %3548 = vmatmul.msk.f32.gmra.mxu0 %vm636_vm8, %v5434_v58  ;;  %3587 = vmatmul.msk.f32.gmra.mxu2 %vm636_vm8, %v5434_v58 }
 0x4a5   :  { %v1820_v46 = vpop.f32.mrf.mxu3 }
 0x4a6   :  { %v1821_v55 = vadd.f32 %v1820_v46, %v4826_v8  ;;  %v2058_v12 = vpop.f32.mrf.mxu2 }
 0x4a7   :  { %v2059_v61 = vadd.f32 %v2058_v12, %v4826_v8  ;;  %v1704_v28 = vpop.f32.mrf.mxu1 }
 0x4a8   :  { %3375 = vst.msk [vmem:[%s6838_s8 + $0x4e0] sm:$0xff] %vm113_vm1, %v1821_v55  ;;  %v1705_v17 = vadd.f32 %v1704_v28, %v4856_v32  ;;  %v1942_v48 = vpop.f32.mrf.mxu0 }
 0x4a9   :  { %3453 = vst.msk [vmem:[%s6838_s8 + $0x5e0] sm:$0xff] %vm113_vm1, %v2059_v61  ;;  %v1943_v58 = vadd.f32 %v1942_v48, %v4856_v32 }
 0x4aa   :  { %3337 = vst.msk [vmem:[%s6838_s8 + $0x468] sm:$0xff] %vm113_vm1, %v1705_v17  ;;  %3471 = vmatmul.msk.f32.gmra.mxu1 %vm636_vm8, %v5467_v4  ;;  %3510 = vmatmul.msk.f32.gmra.mxu3 %vm636_vm8, %v5467_v4 }
 0x4ab   :  { %3415 = vst.msk [vmem:[%s6838_s8 + $0x568] sm:$0xff] %vm113_vm1, %v1943_v58  ;;  %3549 = vmatmul.msk.f32.gmra.mxu0 %vm636_vm8, %v5467_v4  ;;  %3588 = vmatmul.msk.f32.gmra.mxu2 %vm636_vm8, %v5467_v4  ;;  %v6188_v58 = vld [vmem:[%s6835_s5 + $0x8] sm:$0xff] }
 0x4ac   :  { %2659 = vmatpush.msrb.mxu1 %v6188_v58 }
 0x4ad   :  { %v1823_v11 = vpop.f32.mrf.mxu3 }
 0x4ae   :  { %v1824_v34 = vadd.f32 %v1823_v11, %v4856_v32  ;;  %v2061_v35 = vpop.f32.mrf.mxu2  ;;  %v6201_v11 = vld [vmem:[%s6835_s5] sm:$0xff] }
 0x4af   :  { %v2062_v49 = vadd.f32 %v2061_v35, %v4856_v32  ;;  %v1707_v2 = vpop.f32.mrf.mxu1  ;;  %2660 = vmatpush.msrb.mxu1 %v6201_v11 }
 0x4b0   :  { %3376 = vst.msk [vmem:[%s6838_s8 + $0x4e8] sm:$0xff] %vm113_vm1, %v1824_v34  ;;  %v1708_v63 = vadd.f32 %v1707_v2, %v4886_v21  ;;  %v1945_v40 = vpop.f32.mrf.mxu0 }
 0x4b1   :  { %3454 = vst.msk [vmem:[%s6838_s8 + $0x5e8] sm:$0xff] %vm113_vm1, %v2062_v49  ;;  %v1946_v4 = vadd.f32 %v1945_v40, %v4886_v21  ;;  %2880 = vmatpush.msra.mxu1 %v6188_v58 }
 0x4b2   :  { %3338 = vst.msk [vmem:[%s6838_s8 + $0x470] sm:$0xff] %vm113_vm1, %v1708_v63  ;;  %3472 = vmatmul.msk.f32.gmra.mxu1 %vm636_vm8, %v5500_v54  ;;  %3511 = vmatmul.msk.f32.gmra.mxu3 %vm636_vm8, %v5500_v54 }
 0x4b3   :  { %3416 = vst.msk [vmem:[%s6838_s8 + $0x570] sm:$0xff] %vm113_vm1, %v1946_v4  ;;  %3550 = vmatmul.msk.f32.gmra.mxu0 %vm636_vm8, %v5500_v54  ;;  %3589 = vmatmul.msk.f32.gmra.mxu2 %vm636_vm8, %v5500_v54 }
 0x4b4   :  { %2881 = vmatpush.msra.mxu1 %v6201_v11 }
 0x4b5   :  { %v1826_v23 = vpop.f32.mrf.mxu3 }
 0x4b6   :  { %v1827_v1 = vadd.f32 %v1826_v23, %v4886_v21  ;;  %v2064_v38 = vpop.f32.mrf.mxu2  ;;  %v2580_v23 = vld [vmem:[%s6839_s9 + $0x28] sm:$0x1] }
 0x4b7   :  { %v2065_v6 = vadd.f32 %v2064_v38, %v4886_v21  ;;  %v1710_v39 = vpop.f32.mrf.mxu1 }
 0x4b8   :  { %3377 = vst.msk [vmem:[%s6838_s8 + $0x4f0] sm:$0xff] %vm113_vm1, %v1827_v1  ;;  %v1711_v36 = vadd.f32 %v1710_v39, %v4916_v45  ;;  %v1948_v7 = vpop.f32.mrf.mxu0 }
 0x4b9   :  { %3455 = vst.msk [vmem:[%s6838_s8 + $0x5f0] sm:$0xff] %vm113_vm1, %v2065_v6  ;;  %v1949_v54 = vadd.f32 %v1948_v7, %v4916_v45  ;;  %v2581_v7 = vld [vmem:[%s6839_s9 + $0x40] sm:$0x1] }
 0x4ba   :  { %3339 = vst.msk [vmem:[%s6838_s8 + $0x478] sm:$0xff] %vm113_vm1, %v1711_v36  ;;  %3473 = vmatmul.msk.f32.gmra.mxu1 %vm636_vm8, %v5533_v18  ;;  %3512 = vmatmul.msk.f32.gmra.mxu3 %vm636_vm8, %v5533_v18 }
 0x4bb   :  { %3417 = vst.msk [vmem:[%s6838_s8 + $0x578] sm:$0xff] %vm113_vm1, %v1949_v54  ;;  %3551 = vmatmul.msk.f32.gmra.mxu0 %vm636_vm8, %v5533_v18  ;;  %3590 = vmatmul.msk.f32.gmra.mxu2 %vm636_vm8, %v5533_v18  ;;  %v2611_v54 = vrot.slane %v2580_v23, 7 }
 0x4bd   :  { %v1829_v56 = vpop.f32.mrf.mxu3 }
 0x4be   :  { %v1830_v27 = vadd.f32 %v1829_v56, %v4916_v45  ;;  %v2067_v60 = vpop.f32.mrf.mxu2 }
 0x4bf   :  { %v2068_v33 = vadd.f32 %v2067_v60, %v4916_v45  ;;  %v1713_v37 = vpop.f32.mrf.mxu1  ;;  %v2582_v60 = vld [vmem:[%s6839_s9 + $0x58] sm:$0x1] }
 0x4c0   :  { %3378 = vst.msk [vmem:[%s6838_s8 + $0x4f8] sm:$0xff] %vm113_vm1, %v1830_v27  ;;  %v1714_v10 = vadd.f32 %v1713_v37, %v4946_v52  ;;  %v1951_v47 = vpop.f32.mrf.mxu0  ;;  %v2579_v27 = vld [vmem:[%s6839_s9 + $0x10] sm:$0x1] }
 0x4c1   :  { %3456 = vst.msk [vmem:[%s6838_s8 + $0x5f8] sm:$0xff] %vm113_vm1, %v2068_v33  ;;  %v1952_v18 = vadd.f32 %v1951_v47, %v4946_v52  ;;  %v2613_v33 = vrot.slane %v2581_v7, 6  ;;  %v2583_v37 = vld [vmem:[%s6839_s9 + $0x70] sm:$0x1]  ;;  %v2584_v47 = vld [vmem:[%s6839_s9 + $0x88] sm:$0x1] }
 0x4c2   :  { %3340 = vst.msk [vmem:[%s6839_s9 + $0xc0] sm:$0xff] %vm113_vm1, %v1714_v10  ;;  %3474 = vmatmul.msk.f32.gmra.mxu1 %vm636_vm8, %v5566_v15  ;;  %3513 = vmatmul.msk.f32.gmra.mxu3 %vm636_vm8, %v5566_v15  ;;  %v2612_v10 = vsel %vm622_vm2, %v2611_v54, %v2579_v27 }
 0x4c3   :  { %3418 = vst.msk [vmem:[%s6839_s9 + $0xf0] sm:$0xff] %vm113_vm1, %v1952_v18  ;;  %3552 = vmatmul.msk.f32.gmra.mxu0 %vm636_vm8, %v5566_v15  ;;  %3591 = vmatmul.msk.f32.gmra.mxu2 %vm636_vm8, %v5566_v15 }
 0x4c5   :  { %v1832_v53 = vpop.f32.mrf.mxu3 }
 0x4c6   :  { %v1833_v59 = vadd.f32 %v1832_v53, %v4946_v52  ;;  %v2070_v5 = vpop.f32.mrf.mxu2  ;;  %v2615_v53 = vrot.slane %v2582_v60, 5 }
 0x4c7   :  { %v2071_v51 = vadd.f32 %v2070_v5, %v4946_v52  ;;  %v1716_v41 = vpop.f32.mrf.mxu1 }
 0x4c8   :  { %3379 = vst.msk [vmem:[%s6839_s9 + $0xd8] sm:$0xff] %vm113_vm1, %v1833_v59  ;;  %v1717_v13 = vadd.f32 %v1716_v41, %v4976_v14  ;;  %v1954_v24 = vpop.f32.mrf.mxu0  ;;  %v2617_v41 = vrot.slane %v2583_v37, 4 }
 0x4c9   :  { %3457 = vst.msk [vmem:[%s6839_s9 + $0x108] sm:$0xff] %vm113_vm1, %v2071_v51  ;;  %v1955_v15 = vadd.f32 %v1954_v24, %v4976_v14  ;;  %v2614_v51 = vsel %vm625_vm3, %v2613_v33, %v2612_v10  ;;  %v2585_v24 = vld [vmem:[%s6839_s9 + $0xa0] sm:$0x1] }
 0x4ca   :  { %3341 = vst.msk [vmem:[%s6839_s9 + $0xc8] sm:$0xff] %vm113_vm1, %v1717_v13  ;;  %3475 = vmatmul.msk.f32.gmra.mxu1 %vm636_vm8, %v5599_v0  ;;  %3514 = vmatmul.msk.f32.gmra.mxu3 %vm636_vm8, %v5599_v0 }
 0x4cb   :  { %3419 = vst.msk [vmem:[%s6839_s9 + $0xf8] sm:$0xff] %vm113_vm1, %v1955_v15  ;;  %3553 = vmatmul.msk.f32.gmra.mxu0 %vm636_vm8, %v5599_v0  ;;  %3592 = vmatmul.msk.f32.gmra.mxu2 %vm636_vm8, %v5599_v0  ;;  %v2619_v15 = vrot.slane %v2584_v47, 3 }
 0x4cd   :  { %v1835_v46 = vpop.f32.mrf.mxu3 }
 0x4ce   :  { %v1836_v55 = vadd.f32 %v1835_v46, %v4976_v14  ;;  %v2073_v12 = vpop.f32.mrf.mxu2 }
 0x4cf   :  { %v2074_v61 = vadd.f32 %v2073_v12, %v4976_v14  ;;  %v1719_v28 = vpop.f32.mrf.mxu1  ;;  %v2616_v12 = vsel %vm628_vm4, %v2615_v53, %v2614_v51 }
 0x4d0   :  { %3380 = vst.msk [vmem:[%s6839_s9 + $0xe0] sm:$0xff] %vm113_vm1, %v1836_v55  ;;  %v1720_v17 = vadd.f32 %v1719_v28, %v4416_v9  ;;  %v1957_v48 = vpop.f32.mrf.mxu0  ;;  %v2618_v28 = vsel %vm631_vm5, %v2617_v41, %v2616_v12 }
 0x4d1   :  { %3458 = vst.msk [vmem:[%s6839_s9 + $0x110] sm:$0xff] %vm113_vm1, %v2074_v61  ;;  %v1958_v0 = vadd.f32 %v1957_v48, %v4416_v9  ;;  %v2586_v61 = vld [vmem:[%s6839_s9 + $0xb8] sm:$0x1]  ;;  %v2620_v48 = vsel %vm634_vm6, %v2619_v15, %v2618_v28 }
 0x4d2   :  { %3342 = vst.msk [vmem:[%s6839_s9 + $0xd0] sm:$0x7] %vm789_vm9, %v1720_v17  ;;  %3476 = vmatmul.msk.f32.gmra.mxu1 %vm636_vm8, %v5632_v22  ;;  %3515 = vmatmul.msk.f32.gmra.mxu3 %vm636_vm8, %v5632_v22  ;;  %v2621_v17 = vrot.slane %v2585_v24, 2 }
 0x4d3   :  { %3420 = vst.msk [vmem:[%s6839_s9 + $0x100] sm:$0x7] %vm789_vm9, %v1958_v0  ;;  %3554 = vmatmul.msk.f32.gmra.mxu0 %vm636_vm8, %v5632_v22  ;;  %3593 = vmatmul.msk.f32.gmra.mxu2 %vm636_vm8, %v5632_v22 }
 0x4d5   :  { %v1838_v34 = vpop.f32.mrf.mxu3 }
 0x4d6   :  { %v1839_v35 = vadd.f32 %v1838_v34, %v4416_v9  ;;  %v2076_v49 = vpop.f32.mrf.mxu2  ;;  %v2624_v34 = vrot.slane %v2586_v61, 1 }
 0x4d7   :  { %v2077_v2 = vadd.f32 %v2076_v49, %v4416_v9  ;;  %v2141_v63 = vpop.f32.mrf.mxu1 }
 0x4d8   :  { %3381 = vst.msk [vmem:[%s6839_s9 + $0xe8] sm:$0x7] %vm789_vm9, %v1839_v35  ;;  %v2142_v22 = vadd.f32 %v2141_v63, %v4434_v26  ;;  %v2379_v40 = vpop.f32.mrf.mxu0 }
 0x4d9   :  { %3459 = vst.msk [vmem:[%s6839_s9 + $0x118] sm:$0x7] %vm789_vm9, %v2077_v2  ;;  %v2380_v4 = vadd.f32 %v2379_v40, %v4434_v26  ;;  %v2623_v2 = vsel %vm2622_vm10, %v2621_v17, %v2620_v48 }
 0x4da   :  { %3480 = vst.msk [vmem:[%s6838_s8 + $0x600] sm:$0xff] %vm113_vm1, %v2142_v22  ;;  %3477 = vmatmul.msk.f32.gmra.mxu1 %vm636_vm8, %v5665_v57  ;;  %3516 = vmatmul.msk.f32.gmra.mxu3 %vm636_vm8, %v5665_v57  ;;  %v2626_v23 = vsel %vm2625_vm11, %v2624_v34, %v2623_v2 }
 0x4db   :  { %3558 = vst.msk [vmem:[%s6838_s8 + $0x700] sm:$0xff] %vm113_vm1, %v2380_v4  ;;  %3555 = vmatmul.msk.f32.gmra.mxu0 %vm636_vm8, %v5665_v57  ;;  %3594 = vmatmul.msk.f32.gmra.mxu2 %vm636_vm8, %v5665_v57 }
 0x4dd   :  { %v2260_v1 = vpop.f32.mrf.mxu3 }
 0x4de   :  { %v2261_v38 = vadd.f32 %v2260_v1, %v4434_v26  ;;  %v2498_v6 = vpop.f32.mrf.mxu2 }
 0x4df   :  { %v2499_v39 = vadd.f32 %v2498_v6, %v4434_v26  ;;  %v2144_v36 = vpop.f32.mrf.mxu1 }
 0x4e0   :  { %3519 = vst.msk [vmem:[%s6838_s8 + $0x680] sm:$0xff] %vm113_vm1, %v2261_v38  ;;  %v2145_v57 = vadd.f32 %v2144_v36, %v4459_v29  ;;  %v2382_v56 = vpop.f32.mrf.mxu0 }
 0x4e1   :  { %3597 = vst.msk [vmem:[%s6838_s8 + $0x780] sm:$0xff] %vm113_vm1, %v2499_v39  ;;  %v2383_v26 = vadd.f32 %v2382_v56, %v4459_v29 }
 0x4e2   :  { %3481 = vst.msk [vmem:[%s6838_s8 + $0x608] sm:$0xff] %vm113_vm1, %v2145_v57  ;;  %3478 = vmatmul.msk.f32.gmra.mxu1 %vm636_vm8, %v5698_v16  ;;  %3517 = vmatmul.msk.f32.gmra.mxu3 %vm636_vm8, %v5698_v16 }
 0x4e3   :  { %3559 = vst.msk [vmem:[%s6838_s8 + $0x708] sm:$0xff] %vm113_vm1, %v2383_v26  ;;  %3556 = vmatmul.msk.f32.gmra.mxu0 %vm636_vm8, %v5698_v16  ;;  %3595 = vmatmul.msk.f32.gmra.mxu2 %vm636_vm8, %v5698_v16 }
 0x4e5   :  { %v2263_v18 = vpop.f32.mrf.mxu3 }
 0x4e6   :  { %v2264_v59 = vadd.f32 %v2263_v18, %v4459_v29  ;;  %v2501_v5 = vpop.f32.mrf.mxu2 }
 0x4e7   :  { %v2502_v16 = vadd.f32 %v2501_v5, %v4459_v29  ;;  %v2147_v13 = vpop.f32.mrf.mxu1 }
 0x4e8   :  { %3520 = vst.msk [vmem:[%s6838_s8 + $0x688] sm:$0xff] %vm113_vm1, %v2264_v59  ;;  %v2148_v46 = vadd.f32 %v2147_v13, %v4497_v44  ;;  %v2385_v55 = vpop.f32.mrf.mxu0 }
 0x4e9   :  { %3598 = vst.msk [vmem:[%s6838_s8 + $0x788] sm:$0xff] %vm113_vm1, %v2502_v16  ;;  %v2386_v29 = vadd.f32 %v2385_v55, %v4497_v44 }
 0x4ea   :  { %3482 = vst.msk [vmem:[%s6838_s8 + $0x610] sm:$0xff] %vm113_vm1, %v2148_v46  ;;  %3479 = vmatmul.msk.f32.gmra.mxu1 %vm636_vm8, %v5731_v31  ;;  %3518 = vmatmul.msk.f32.gmra.mxu3 %vm636_vm8, %v5731_v31 }
 0x4eb   :  { %3560 = vst.msk [vmem:[%s6838_s8 + $0x710] sm:$0xff] %vm113_vm1, %v2386_v29  ;;  %3557 = vmatmul.msk.f32.gmra.mxu0 %vm636_vm8, %v5731_v31  ;;  %3596 = vmatmul.msk.f32.gmra.mxu2 %vm636_vm8, %v5731_v31 }
 0x4ed   :  { %v2266_v0 = vpop.f32.mrf.mxu3 }
 0x4ee   :  { %v2267_v35 = vadd.f32 %v2266_v0, %v4497_v44  ;;  %v2504_v49 = vpop.f32.mrf.mxu2 }
 0x4ef   :  { %v2505_v63 = vadd.f32 %v2504_v49, %v4497_v44  ;;  %v2150_v22 = vpop.f32.mrf.mxu1 }
 0x4f0   :  { %3521 = vst.msk [vmem:[%s6838_s8 + $0x690] sm:$0xff] %vm113_vm1, %v2267_v35  ;;  %v2151_v31 = vadd.f32 %v2150_v22, %v4540_v42  ;;  %v2388_v40 = vpop.f32.mrf.mxu0 }
 0x4f1   :  { %3599 = vst.msk [vmem:[%s6838_s8 + $0x790] sm:$0xff] %vm113_vm1, %v2505_v63  ;;  %v2389_v4 = vadd.f32 %v2388_v40, %v4540_v42 }
 0x4f2   :  { %3483 = vst.msk [vmem:[%s6838_s8 + $0x618] sm:$0xff] %vm113_vm1, %v2151_v31  ;;  %3616 = vmatmul.msk.f32.vlgmr.msrb.gmra.mxu1 %vm113_vm1, %v2626_v23 }
 0x4f3   :  { %3561 = vst.msk [vmem:[%s6838_s8 + $0x718] sm:$0xff] %vm113_vm1, %v2389_v4 }
 0x4f5   :  { %v2269_v44 = vpop.f32.mrf.mxu3 }
 0x4f6   :  { %v2270_v1 = vadd.f32 %v2269_v44, %v4540_v42  ;;  %v2507_v38 = vpop.f32.mrf.mxu2 }
 0x4f7   :  { %v2508_v6 = vadd.f32 %v2507_v38, %v4540_v42  ;;  %v2153_v39 = vpop.f32.mrf.mxu1 }
 0x4f8   :  { %3522 = vst.msk [vmem:[%s6838_s8 + $0x698] sm:$0xff] %vm113_vm1, %v2270_v1  ;;  %v2154_v36 = vadd.f32 %v2153_v39, %v4586_v19  ;;  %v2391_v7 = vpop.f32.mrf.mxu0 }
 0x4f9   :  { %3600 = vst.msk [vmem:[%s6838_s8 + $0x798] sm:$0xff] %vm113_vm1, %v2508_v6  ;;  %v2392_v54 = vadd.f32 %v2391_v7, %v4586_v19 }
 0x4fa   :  { %3484 = vst.msk [vmem:[%s6838_s8 + $0x620] sm:$0xff] %vm113_vm1, %v2154_v36 }
 0x4fb   :  { %3562 = vst.msk [vmem:[%s6838_s8 + $0x720] sm:$0xff] %vm113_vm1, %v2392_v54 }
 0x4fd   :  { %v2272_v42 = vpop.f32.mrf.mxu3 }
 0x4fe   :  { %v2273_v57 = vadd.f32 %v2272_v42, %v4586_v19  ;;  %v2510_v56 = vpop.f32.mrf.mxu2 }
 0x4ff   :  { %v2511_v26 = vadd.f32 %v2510_v56, %v4586_v19  ;;  %v2156_v27 = vpop.f32.mrf.mxu1 }
 0x500   :  { %3523 = vst.msk [vmem:[%s6838_s8 + $0x6a0] sm:$0xff] %vm113_vm1, %v2273_v57  ;;  %v2157_v60 = vadd.f32 %v2156_v27, %v4616_v43  ;;  %v2394_v33 = vpop.f32.mrf.mxu0 }
 0x501   :  { %3601 = vst.msk [vmem:[%s6838_s8 + $0x7a0] sm:$0xff] %vm113_vm1, %v2511_v26  ;;  %v2395_v37 = vadd.f32 %v2394_v33, %v4616_v43 }
 0x502   :  { %3485 = vst.msk [vmem:[%s6838_s8 + $0x628] sm:$0xff] %vm113_vm1, %v2157_v60 }
 0x503   :  { %3563 = vst.msk [vmem:[%s6838_s8 + $0x728] sm:$0xff] %vm113_vm1, %v2395_v37 }
 0x505   :  { %v2275_v19 = vpop.f32.mrf.mxu3 }
 0x506   :  { %v2276_v10 = vadd.f32 %v2275_v19, %v4616_v43  ;;  %v2513_v47 = vpop.f32.mrf.mxu2 }
 0x507   :  { %v2514_v18 = vadd.f32 %v2513_v47, %v4616_v43  ;;  %v2159_v53 = vpop.f32.mrf.mxu1 }
 0x508   :  { %3524 = vst.msk [vmem:[%s6838_s8 + $0x6a8] sm:$0xff] %vm113_vm1, %v2276_v10  ;;  %v2160_v59 = vadd.f32 %v2159_v53, %v4646_v25  ;;  %v2397_v5 = vpop.f32.mrf.mxu0 }
 0x509   :  { %3602 = vst.msk [vmem:[%s6838_s8 + $0x7a8] sm:$0xff] %vm113_vm1, %v2514_v18  ;;  %v2398_v51 = vadd.f32 %v2397_v5, %v4646_v25 }
 0x50a   :  { %3486 = vst.msk [vmem:[%s6838_s8 + $0x630] sm:$0xff] %vm113_vm1, %v2160_v59 }
 0x50b   :  { %3564 = vst.msk [vmem:[%s6838_s8 + $0x730] sm:$0xff] %vm113_vm1, %v2398_v51 }
 0x50d   :  { %v2278_v43 = vpop.f32.mrf.mxu3 }
 0x50e   :  { %v2279_v41 = vadd.f32 %v2278_v43, %v4646_v25  ;;  %v2516_v16 = vpop.f32.mrf.mxu2 }
 0x50f   :  { %v2517_v13 = vadd.f32 %v2516_v16, %v4646_v25  ;;  %v2162_v24 = vpop.f32.mrf.mxu1 }
 0x510   :  { %3525 = vst.msk [vmem:[%s6838_s8 + $0x6b0] sm:$0xff] %vm113_vm1, %v2279_v41  ;;  %v2163_v15 = vadd.f32 %v2162_v24, %v4676_v62  ;;  %v2400_v46 = vpop.f32.mrf.mxu0 }
 0x511   :  { %3603 = vst.msk [vmem:[%s6838_s8 + $0x7b0] sm:$0xff] %vm113_vm1, %v2517_v13  ;;  %v2401_v55 = vadd.f32 %v2400_v46, %v4676_v62 }
 0x512   :  { %3487 = vst.msk [vmem:[%s6838_s8 + $0x638] sm:$0xff] %vm113_vm1, %v2163_v15 }
 0x513   :  { %3565 = vst.msk [vmem:[%s6838_s8 + $0x738] sm:$0xff] %vm113_vm1, %v2401_v55 }
 0x515   :  { %v2281_v25 = vpop.f32.mrf.mxu3 }
 0x516   :  { %v2282_v29 = vadd.f32 %v2281_v25, %v4676_v62  ;;  %v2519_v12 = vpop.f32.mrf.mxu2 }
 0x517   :  { %v2520_v61 = vadd.f32 %v2519_v12, %v4676_v62  ;;  %v2165_v28 = vpop.f32.mrf.mxu1 }
 0x518   :  { %3526 = vst.msk [vmem:[%s6838_s8 + $0x6b8] sm:$0xff] %vm113_vm1, %v2282_v29  ;;  %v2166_v17 = vadd.f32 %v2165_v28, %v4706_v30  ;;  %v2403_v48 = vpop.f32.mrf.mxu0 }
 0x519   :  { %3604 = vst.msk [vmem:[%s6838_s8 + $0x7b8] sm:$0xff] %vm113_vm1, %v2520_v61  ;;  %v2404_v0 = vadd.f32 %v2403_v48, %v4706_v30 }
 0x51a   :  { %3488 = vst.msk [vmem:[%s6838_s8 + $0x640] sm:$0xff] %vm113_vm1, %v2166_v17 }
 0x51b   :  { %3566 = vst.msk [vmem:[%s6838_s8 + $0x740] sm:$0xff] %vm113_vm1, %v2404_v0 }
 0x51d   :  { %v2284_v62 = vpop.f32.mrf.mxu3 }
 0x51e   :  { %v2285_v34 = vadd.f32 %v2284_v62, %v4706_v30  ;;  %v2522_v35 = vpop.f32.mrf.mxu2 }
 0x51f   :  { %v2523_v49 = vadd.f32 %v2522_v35, %v4706_v30  ;;  %v2168_v2 = vpop.f32.mrf.mxu1 }
 0x520   :  { %3527 = vst.msk [vmem:[%s6838_s8 + $0x6c0] sm:$0xff] %vm113_vm1, %v2285_v34  ;;  %v2169_v63 = vadd.f32 %v2168_v2, %v4736_v20  ;;  %v2406_v22 = vpop.f32.mrf.mxu0 }
 0x521   :  { %3605 = vst.msk [vmem:[%s6838_s8 + $0x7c0] sm:$0xff] %vm113_vm1, %v2523_v49  ;;  %v2407_v31 = vadd.f32 %v2406_v22, %v4736_v20 }
 0x522   :  { %3489 = vst.msk [vmem:[%s6838_s8 + $0x648] sm:$0xff] %vm113_vm1, %v2169_v63 }
 0x523   :  { %3567 = vst.msk [vmem:[%s6838_s8 + $0x748] sm:$0xff] %vm113_vm1, %v2407_v31 }
 0x525   :  { %v2287_v30 = vpop.f32.mrf.mxu3 }
 0x526   :  { %v2288_v40 = vadd.f32 %v2287_v30, %v4736_v20  ;;  %v2525_v4 = vpop.f32.mrf.mxu2 }
 0x527   :  { %v2526_v23 = vadd.f32 %v2525_v4, %v4736_v20  ;;  %v2171_v44 = vpop.f32.mrf.mxu1 }
 0x528   :  { %3528 = vst.msk [vmem:[%s6838_s8 + $0x6c8] sm:$0xff] %vm113_vm1, %v2288_v40  ;;  %v2172_v1 = vadd.f32 %v2171_v44, %v4766_v3  ;;  %v2409_v38 = vpop.f32.mrf.mxu0 }
 0x529   :  { %3606 = vst.msk [vmem:[%s6838_s8 + $0x7c8] sm:$0xff] %vm113_vm1, %v2526_v23  ;;  %v2410_v6 = vadd.f32 %v2409_v38, %v4766_v3 }
 0x52a   :  { %3490 = vst.msk [vmem:[%s6838_s8 + $0x650] sm:$0xff] %vm113_vm1, %v2172_v1 }
 0x52b   :  { %3568 = vst.msk [vmem:[%s6838_s8 + $0x750] sm:$0xff] %vm113_vm1, %v2410_v6 }
 0x52d   :  { %v2290_v20 = vpop.f32.mrf.mxu3 }
 0x52e   :  { %v2291_v39 = vadd.f32 %v2290_v20, %v4766_v3  ;;  %v2528_v36 = vpop.f32.mrf.mxu2 }
 0x52f   :  { %v2529_v7 = vadd.f32 %v2528_v36, %v4766_v3  ;;  %v2174_v54 = vpop.f32.mrf.mxu1 }
 0x530   :  { %3529 = vst.msk [vmem:[%s6838_s8 + $0x6d0] sm:$0xff] %vm113_vm1, %v2291_v39  ;;  %v2175_v42 = vadd.f32 %v2174_v54, %v4796_v50  ;;  %v2412_v57 = vpop.f32.mrf.mxu0 }
 0x531   :  { %3607 = vst.msk [vmem:[%s6838_s8 + $0x7d0] sm:$0xff] %vm113_vm1, %v2529_v7  ;;  %v2413_v56 = vadd.f32 %v2412_v57, %v4796_v50 }
 0x532   :  { %3491 = vst.msk [vmem:[%s6838_s8 + $0x658] sm:$0xff] %vm113_vm1, %v2175_v42 }
 0x533   :  { %3569 = vst.msk [vmem:[%s6838_s8 + $0x758] sm:$0xff] %vm113_vm1, %v2413_v56  ;;  %v2589_v56 = vld [vmem:[%s6839_s9 + $0x100] sm:$0x1] }
 0x535   :  { %v2293_v3 = vpop.f32.mrf.mxu3 }
 0x536   :  { %v2294_v26 = vadd.f32 %v2293_v3, %v4796_v50  ;;  %v2531_v27 = vpop.f32.mrf.mxu2 }
 0x537   :  { %v2532_v60 = vadd.f32 %v2531_v27, %v4796_v50  ;;  %v2177_v33 = vpop.f32.mrf.mxu1  ;;  %v2803_v27 = vld [vmem:[%s6839_s9 + $0x2a] sm:$0x1] }
 0x538   :  { %3530 = vst.msk [vmem:[%s6838_s8 + $0x6d8] sm:$0xff] %vm113_vm1, %v2294_v26  ;;  %v2178_v37 = vadd.f32 %v2177_v33, %v4826_v8  ;;  %v2415_v19 = vpop.f32.mrf.mxu0  ;;  %v2629_v33 = vrot.slane %v2589_v56, 6 }
 0x539   :  { %3608 = vst.msk [vmem:[%s6838_s8 + $0x7d8] sm:$0xff] %vm113_vm1, %v2532_v60  ;;  %v2416_v10 = vadd.f32 %v2415_v19, %v4826_v8  ;;  %v2587_v60 = vld [vmem:[%s6839_s9 + $0xd0] sm:$0x1] }
 0x53a   :  { %3492 = vst.msk [vmem:[%s6838_s8 + $0x660] sm:$0xff] %vm113_vm1, %v2178_v37 }
 0x53b   :  { %3570 = vst.msk [vmem:[%s6838_s8 + $0x760] sm:$0xff] %vm113_vm1, %v2416_v10  ;;  %v2804_v10 = vld [vmem:[%s6839_s9 + $0x42] sm:$0x1] }
 0x53d   :  { %v2296_v50 = vpop.f32.mrf.mxu3 }
 0x53e   :  { %v2297_v47 = vadd.f32 %v2296_v50, %v4826_v8  ;;  %v2534_v18 = vpop.f32.mrf.mxu2  ;;  %v2834_v50 = vrot.slane %v2803_v27, 7 }
 0x53f   :  { %v2535_v53 = vadd.f32 %v2534_v18, %v4826_v8  ;;  %v2180_v59 = vpop.f32.mrf.mxu1 }
 0x540   :  { %3531 = vst.msk [vmem:[%s6838_s8 + $0x6e0] sm:$0xff] %vm113_vm1, %v2297_v47  ;;  %v2181_v5 = vadd.f32 %v2180_v59, %v4856_v32  ;;  %v2418_v51 = vpop.f32.mrf.mxu0  ;;  %v2802_v59 = vld [vmem:[%s6839_s9 + $0x12] sm:$0x1] }
 0x541   :  { %3609 = vst.msk [vmem:[%s6838_s8 + $0x7e0] sm:$0xff] %vm113_vm1, %v2535_v53  ;;  %v2419_v43 = vadd.f32 %v2418_v51, %v4856_v32  ;;  %v2836_v51 = vrot.slane %v2804_v10, 6  ;;  %v2696_v10 = vld [vmem:[%s6839_s9 + $0x59] sm:$0x1] }
 0x542   :  { %3493 = vst.msk [vmem:[%s6838_s8 + $0x668] sm:$0xff] %vm113_vm1, %v2181_v5  ;;  %v2805_v5 = vld [vmem:[%s6839_s9 + $0x5a] sm:$0x1] }
 0x543   :  { %3571 = vst.msk [vmem:[%s6838_s8 + $0x768] sm:$0xff] %vm113_vm1, %v2419_v43 }
 0x545   :  { %v2299_v8 = vpop.f32.mrf.mxu3 }
 0x546   :  { %v2300_v41 = vadd.f32 %v2299_v8, %v4856_v32  ;;  %v2537_v16 = vpop.f32.mrf.mxu2  ;;  %v2806_v8 = vld [vmem:[%s6839_s9 + $0x72] sm:$0x1] }
 0x547   :  { %v2538_v13 = vadd.f32 %v2537_v16, %v4856_v32  ;;  %v2183_v24 = vpop.f32.mrf.mxu1 }
 0x548   :  { %3532 = vst.msk [vmem:[%s6838_s8 + $0x6e8] sm:$0xff] %vm113_vm1, %v2300_v41  ;;  %v2184_v15 = vadd.f32 %v2183_v24, %v4886_v21  ;;  %v2421_v46 = vpop.f32.mrf.mxu0  ;;  %v2835_v41 = vsel %vm622_vm2, %v2834_v50, %v2802_v59  ;;  %v2811_v24 = vld [vmem:[%s6839_s9 + $0xea] sm:$0x1]  ;;  %v2702_v59 = vld [vmem:[%s6839_s9 + $0xe9] sm:$0x1] }
 0x549   :  { %3610 = vst.msk [vmem:[%s6838_s8 + $0x7e8] sm:$0xff] %vm113_vm1, %v2538_v13  ;;  %v2422_v55 = vadd.f32 %v2421_v46, %v4886_v21  ;;  %v2807_v13 = vld [vmem:[%s6839_s9 + $0x8a] sm:$0x1] }
 0x54a   :  { %3494 = vst.msk [vmem:[%s6838_s8 + $0x670] sm:$0xff] %vm113_vm1, %v2184_v15 }
 0x54b   :  { %3572 = vst.msk [vmem:[%s6838_s8 + $0x770] sm:$0xff] %vm113_vm1, %v2422_v55 }
 0x54d   :  { %v2302_v32 = vpop.f32.mrf.mxu3 }
 0x54e   :  { %v2303_v25 = vadd.f32 %v2302_v32, %v4886_v21  ;;  %v2540_v29 = vpop.f32.mrf.mxu2  ;;  %v2838_v32 = vrot.slane %v2805_v5, 5  ;;  %v2729_v5 = vrot.slane %v2696_v10, 5 }
 0x54f   :  { %v2541_v12 = vadd.f32 %v2540_v29, %v4886_v21  ;;  %v2186_v61 = vpop.f32.mrf.mxu1 }
 0x550   :  { %3533 = vst.msk [vmem:[%s6838_s8 + $0x6f0] sm:$0xff] %vm113_vm1, %v2303_v25  ;;  %v2187_v28 = vadd.f32 %v2186_v61, %v4916_v45  ;;  %v2424_v17 = vpop.f32.mrf.mxu0  ;;  %v2837_v61 = vsel %vm625_vm3, %v2836_v51, %v2835_v41 }
 0x551   :  { %3611 = vst.msk [vmem:[%s6838_s8 + $0x7f0] sm:$0xff] %vm113_vm1, %v2541_v12  ;;  %v2425_v48 = vadd.f32 %v2424_v17, %v4916_v45  ;;  %v2808_v12 = vld [vmem:[%s6839_s9 + $0xa2] sm:$0x1] }
 0x552   :  { %3495 = vst.msk [vmem:[%s6838_s8 + $0x678] sm:$0xff] %vm113_vm1, %v2187_v28  ;;  %v2840_v28 = vrot.slane %v2806_v8, 4 }
 0x553   :  { %3573 = vst.msk [vmem:[%s6838_s8 + $0x778] sm:$0xff] %vm113_vm1, %v2425_v48 }
 0x555   :  { %v2305_v21 = vpop.f32.mrf.mxu3 }
 0x556   :  { %v2306_v0 = vadd.f32 %v2305_v21, %v4916_v45  ;;  %v2543_v62 = vpop.f32.mrf.mxu2  ;;  %v2842_v21 = vrot.slane %v2807_v13, 3 }
 0x557   :  { %v2544_v34 = vadd.f32 %v2543_v62, %v4916_v45  ;;  %v2189_v35 = vpop.f32.mrf.mxu1  ;;  %v2848_v62 = vrot.slane %v2811_v24, 7  ;;  %v2703_v24 = vld [vmem:[%s6839_s9 + $0x101] sm:$0x1] }
 0x558   :  { %3534 = vst.msk [vmem:[%s6838_s8 + $0x6f8] sm:$0xff] %vm113_vm1, %v2306_v0  ;;  %v2190_v49 = vadd.f32 %v2189_v35, %v4946_v52  ;;  %v2427_v2 = vpop.f32.mrf.mxu0  ;;  %v2812_v0 = vld [vmem:[%s6839_s9 + $0x102] sm:$0x1] }
 0x559   :  { %3612 = vst.msk [vmem:[%s6838_s8 + $0x7f8] sm:$0xff] %vm113_vm1, %v2544_v34  ;;  %v2428_v63 = vadd.f32 %v2427_v2, %v4946_v52  ;;  %v2839_v2 = vsel %vm628_vm4, %v2838_v32, %v2837_v61  ;;  %v2741_v61 = vrot.slane %v2703_v24, 6  ;;  %s2932_s8 = sshll.u32 %s3708_s17, 4  ;;  %s2933_s8 = int_to_ptr.vmem [resolvable:$true] %s2932_s8 }
 0x55a   :  { %3496 = vst.msk [vmem:[%s6839_s9 + $0x120] sm:$0xff] %vm113_vm1, %v2190_v49  ;;  %v2809_v49 = vld [vmem:[%s6839_s9 + $0xba] sm:$0x1] }
 0x55b   :  { %3574 = vst.msk [vmem:[%s6839_s9 + $0x150] sm:$0xff] %vm113_vm1, %v2428_v63  ;;  %v2841_v63 = vsel %vm631_vm5, %v2840_v28, %v2839_v2 }
 0x55d   :  { %v2308_v45 = vpop.f32.mrf.mxu3 }
 0x55e   :  { %v2309_v22 = vadd.f32 %v2308_v45, %v4946_v52  ;;  %v2546_v31 = vpop.f32.mrf.mxu2  ;;  %v2844_v45 = vrot.slane %v2808_v12, 2  ;;  %v2704_v12 = vld [vmem:[%s6839_s9 + $0x119] sm:$0x1] }
 0x55f   :  { %v2547_v30 = vadd.f32 %v2546_v31, %v4946_v52  ;;  %v2192_v40 = vpop.f32.mrf.mxu1  ;;  %v2813_v31 = vld [vmem:[%s6839_s9 + $0x11a] sm:$0x1] }
 0x560   :  { %3535 = vst.msk [vmem:[%s6839_s9 + $0x138] sm:$0xff] %vm113_vm1, %v2309_v22  ;;  %v2193_v4 = vadd.f32 %v2192_v40, %v4976_v14  ;;  %v2430_v23 = vpop.f32.mrf.mxu0  ;;  %v2810_v22 = vld [vmem:[%s6839_s9 + $0xd2] sm:$0x1]  ;;  %v2843_v40 = vsel %vm634_vm6, %v2842_v21, %v2841_v63 }
 0x561   :  { %3613 = vst.msk [vmem:[%s6839_s9 + $0x168] sm:$0xff] %vm113_vm1, %v2547_v30  ;;  %v2431_v44 = vadd.f32 %v2430_v23, %v4976_v14  ;;  %v2850_v30 = vrot.slane %v2812_v0, 6  ;;  %v2849_v23 = vsel %vm622_vm2, %v2848_v62, %v2810_v22  ;;  %v2743_v62 = vrot.slane %v2704_v12, 5 }
 0x562   :  { %3497 = vst.msk [vmem:[%s6839_s9 + $0x128] sm:$0xff] %vm113_vm1, %v2193_v4 }
 0x563   :  { %3575 = vst.msk [vmem:[%s6839_s9 + $0x158] sm:$0xff] %vm113_vm1, %v2431_v44 }
 0x565   :  { %v2311_v52 = vpop.f32.mrf.mxu3 }
 0x566   :  { %v2312_v1 = vadd.f32 %v2311_v52, %v4976_v14  ;;  %v2549_v38 = vpop.f32.mrf.mxu2  ;;  %v2846_v52 = vrot.slane %v2809_v49, 1 }
 0x567   :  { %v2550_v6 = vadd.f32 %v2549_v38, %v4976_v14  ;;  %v2195_v20 = vpop.f32.mrf.mxu1  ;;  %v2588_v14 = vld [vmem:[%s6839_s9 + $0xe8] sm:$0x1]  ;;  %v2845_v38 = vsel %vm2622_vm10, %v2844_v45, %v2843_v40 }
 0x568   :  { %3536 = vst.msk [vmem:[%s6839_s9 + $0x140] sm:$0xff] %vm113_vm1, %v2312_v1  ;;  %v2196_v39 = vadd.f32 %v2195_v20, %v4416_v9  ;;  %v2433_v36 = vpop.f32.mrf.mxu0  ;;  %v2627_v3 = vrot.slane %v2588_v14, 7  ;;  %v2852_v1 = vrot.slane %v2813_v31, 5 }
 0x569   :  { %3614 = vst.msk [vmem:[%s6839_s9 + $0x170] sm:$0xff] %vm113_vm1, %v2550_v6  ;;  %v2434_v7 = vadd.f32 %v2433_v36, %v4416_v9  ;;  %v2851_v6 = vsel %vm625_vm3, %v2850_v30, %v2849_v23  ;;  %v2847_v36 = vsel %vm2625_vm11, %v2846_v52, %v2845_v38 }
 0x56a   :  { %3498 = vst.msk [vmem:[%s6839_s9 + $0x130] sm:$0x7] %vm789_vm9, %v2196_v39  ;;  %v2628_v19 = vsel %vm622_vm2, %v2627_v3, %v2587_v60  ;;  %v2853_v14 = vsel %vm628_vm4, %v2852_v1, %v2851_v6  ;;  %v2694_v60 = vld [vmem:[%s6839_s9 + $0x29] sm:$0x1] }
 0x56b   :  { %3576 = vst.msk [vmem:[%s6839_s9 + $0x160] sm:$0x7] %vm789_vm9, %v2434_v7  ;;  %v2630_v18 = vsel %vm625_vm3, %v2629_v33, %v2628_v19  ;;  %v2695_v33 = vld [vmem:[%s6839_s9 + $0x41] sm:$0x1]  ;;  %v2693_v19 = vld [vmem:[%s6839_s9 + $0x11] sm:$0x1] }
 0x56c   :  { %v2727_v50 = vrot.slane %v2695_v33, 6 }
 0x56d   :  { %v2314_v54 = vpop.f32.mrf.mxu3 }
 0x56e   :  { %v2315_v42 = vadd.f32 %v2314_v54, %v4416_v9  ;;  %v2552_v57 = vpop.f32.mrf.mxu2 }
 0x56f   :  { %v2553_v26 = vadd.f32 %v2552_v57, %v4416_v9  ;;  %v2590_v9 = vld [vmem:[%s6839_s9 + $0x118] sm:$0x1] }
 0x570   :  { %3537 = vst.msk [vmem:[%s6839_s9 + $0x148] sm:$0x7] %vm789_vm9, %v2315_v42  ;;  %v2631_v47 = vrot.slane %v2590_v9, 5  ;;  %v2662_v9 = vpop.f32.mrf.mxu1 }
 0x571   :  { %3615 = vst.msk [vmem:[%s6839_s9 + $0x178] sm:$0x7] %vm789_vm9, %v2553_v26  ;;  %v2591_v37 = vld [vmem:[%s6839_s9 + $0x130] sm:$0x1]  ;;  %v2814_v4 = vld [vmem:[%s6839_s9 + $0x132] sm:$0x1] }
 0x572   :  { %v2633_v53 = vrot.slane %v2591_v37, 4  ;;  %v2593_v43 = vld [vmem:[%s6839_s9 + $0x160] sm:$0x1]  ;;  %v2632_v46 = vsel %vm628_vm4, %v2631_v47, %v2630_v18  ;;  %v2854_v20 = vrot.slane %v2814_v4, 4  ;;  %v2816_v7 = vld [vmem:[%s6839_s9 + $0x162] sm:$0x1] }
 0x573   :  { %v2637_v29 = vrot.slane %v2593_v43, 2  ;;  %v2858_v56 = vrot.slane %v2816_v7, 2  ;;  %v2725_v37 = vrot.slane %v2694_v60, 7  ;;  %v2697_v47 = vld [vmem:[%s6839_s9 + $0x71] sm:$0x1] }
 0x574   :  { %v2634_v25 = vsel %vm631_vm5, %v2633_v53, %v2632_v46  ;;  %v2855_v54 = vsel %vm631_vm5, %v2854_v20, %v2853_v14  ;;  %v2698_v53 = vld [vmem:[%s6839_s9 + $0x89] sm:$0x1]  ;;  %v2699_v43 = vld [vmem:[%s6839_s9 + $0xa1] sm:$0x1]  ;;  %v2731_v41 = vrot.slane %v2697_v47, 4 }
 0x575   :  { %v2726_v18 = vsel %vm622_vm2, %v2725_v37, %v2693_v19  ;;  %v2733_v13 = vrot.slane %v2698_v53, 3  ;;  %v2700_v46 = vld [vmem:[%s6839_s9 + $0xb9] sm:$0x1]  ;;  %v2707_v45 = vld [vmem:[%s6839_s9 + $0x161] sm:$0x1] }
 0x576   :  { %v2728_v8 = vsel %vm625_vm3, %v2727_v50, %v2726_v18  ;;  %v2737_v0 = vrot.slane %v2700_v46, 1  ;;  %v2749_v40 = vrot.slane %v2707_v45, 2 }
 0x577   :  { %v2592_v16 = vld [vmem:[%s6839_s9 + $0x148] sm:$0x1]  ;;  %v2815_v44 = vld [vmem:[%s6839_s9 + $0x14a] sm:$0x1]  ;;  %v2706_v21 = vld [vmem:[%s6839_s9 + $0x149] sm:$0x1] }
 0x578   :  { %v2594_v15 = vld [vmem:[%s6839_s9 + $0x178] sm:$0x1]  ;;  %v2635_v55 = vrot.slane %v2592_v16, 3  ;;  %v2856_v39 = vrot.slane %v2815_v44, 3  ;;  %v2817_v57 = vld [vmem:[%s6839_s9 + $0x17a] sm:$0x1] }
 0x579   :  { %v2639_v48 = vrot.slane %v2594_v15, 1  ;;  %v2860_v26 = vrot.slane %v2817_v57, 1  ;;  %v2578_v16 = vld [vmem:[%s6836_s6] sm:$0xff]  ;;  %v2739_v15 = vrot.slane %v2702_v59, 7  ;;  %v2747_v2 = vrot.slane %v2706_v21, 3 }
 0x57a   :  { %v2636_v17 = vsel %vm634_vm6, %v2635_v55, %v2634_v25  ;;  %v2857_v42 = vsel %vm634_vm6, %v2856_v39, %v2855_v54  ;;  %v2730_v55 = vsel %vm628_vm4, %v2729_v5, %v2728_v8  ;;  %v2735_v25 = vrot.slane %v2699_v43, 2  ;;  %v2708_v30 = vld [vmem:[%s6839_s9 + $0x179] sm:$0x1] }
 0x57b   :  { %v2638_v34 = vsel %vm2622_vm10, %v2637_v29, %v2636_v17  ;;  %v2859_v3 = vsel %vm2622_vm10, %v2858_v56, %v2857_v42  ;;  %v2732_v32 = vsel %vm631_vm5, %v2731_v41, %v2730_v55  ;;  %v2701_v29 = vld [vmem:[%s6839_s9 + $0xd1] sm:$0x1]  ;;  %v2751_v44 = vrot.slane %v2708_v30, 1 }
 0x57c   :  { %v2640_v35 = vsel %vm2625_vm11, %v2639_v48, %v2638_v34  ;;  %v2861_v27 = vsel %vm2625_vm11, %v2860_v26, %v2859_v3  ;;  %v2734_v28 = vsel %vm634_vm6, %v2733_v13, %v2732_v32  ;;  %v2705_v17 = vld [vmem:[%s6839_s9 + $0x131] sm:$0x1]  ;;  %v2740_v48 = vsel %vm622_vm2, %v2739_v15, %v2701_v29 }
 0x57d   :  { %3617 = vmatmul.msk.f32.gmra.mxu1 %vm113_vm1, %v2640_v35  ;;  %v2736_v35 = vsel %vm2622_vm10, %v2735_v25, %v2734_v28  ;;  %v2745_v49 = vrot.slane %v2705_v17, 4 }
 0x57e   :  { %v2738_v63 = vsel %vm2625_vm11, %v2737_v0, %v2736_v35 }
 0x585   :  { %3622 = vmatmul.msk.f32.vlgmr.msra.gmra.mxu1 %vm113_vm1, %v2847_v36 }
 0x58d   :  { %3623 = vmatmul.msk.f32.gmra.mxu1 %vm113_vm1, %v2861_v27 }
 0x5fa   :  { %v2665_v51 = vpop.f32.mrf.mxu1 }
 0x5fb   :  { %2685 = vmatpush.msrb.mxu3 %v2665_v51 }
 0x5fd   :  { %2686 = vmatpush.msrb.mxu3 %v2662_v9 }
 0x5fe   :  { %3618 = vmatmul.msk.f32.vlgmr.msrb.gmra.mxu3 %vm113_vm1, %v2578_v16 }
 0x5ff   :  { %2771 = vmatpush.msra.mxu3 %v6188_v58  ;;  %v2742_v58 = vsel %vm625_vm3, %v2741_v61, %v2740_v48 }
 0x600   :  { %v2744_v22 = vsel %vm628_vm4, %v2743_v62, %v2742_v58 }
 0x601   :  { %2772 = vmatpush.msra.mxu3 %v6201_v11  ;;  %v2746_v11 = vsel %vm631_vm5, %v2745_v49, %v2744_v22 }
 0x602   :  { %v2883_v34 = vpop.f32.mrf.mxu1  ;;  %v2748_v31 = vsel %vm634_vm6, %v2747_v2, %v2746_v11 }
 0x603   :  { %v2750_v23 = vsel %vm2622_vm10, %v2749_v40, %v2748_v31 }
 0x604   :  { %v2752_v52 = vsel %vm2625_vm11, %v2751_v44, %v2750_v23 }
 0x606   :  { %3619 = vmatmul.msk.f32.vlgmr.msra.gmra.mxu3 %vm113_vm1, %v2738_v63 }
 0x60a   :  { %v2886_v4 = vpop.f32.mrf.mxu1 }
 0x60b   :  { %2903 = vmatpush.msrb.mxu2 %v2886_v4 }
 0x60d   :  { %2904 = vmatpush.msrb.mxu2 %v2883_v34 }
 0x60e   :  { %3620 = vmatmul.msk.f32.gmra.mxu3 %vm113_vm1, %v2752_v52  ;;  %3624 = vmatmul.msk.f32.vlgmr.msrb.gmra.mxu2 %vm113_vm1, %v2578_v16 }
 0x681   :  { %v2688_v1 = vpop.f32.mrf.mxu3 }
 0x682   :  { %2692 = vst.msk [vmem:[#allocation4] sm:$0xff] %vm2691_vm12, %v2688_v1 }
 0x689   :  { %v2774_v38 = vpop.f32.mrf.mxu3 }
 0x691   :  { %v2777_v6 = vpop.f32.mrf.mxu3  ;;  %v2906_v20 = vpop.f32.mrf.mxu2 }
 0x692   :  { %2794 = vmatpush.msrb.mxu0 %v2777_v6  ;;  %2910 = vst.msk [vmem:[#allocation4 + $0x10] sm:$0xff] %vm2691_vm12, %v2906_v20 }
 0x694   :  { %2795 = vmatpush.msrb.mxu0 %v2774_v38 }
 0x695   :  { %3621 = vmatmul.msk.f32.vlgmr.msrb.gmra.mxu0 %vm113_vm1, %v2578_v16 }
 0x712   :  { %v2797_v39 = vpop.f32.mrf.mxu0 }
 0x713   :  { %2801 = vst.msk [vmem:[#allocation4 + $0x8] sm:$0xff] %vm2691_vm12, %v2797_v39 }
 0x714   :  { %2940 = dma.vmem_to_hbm [thread:$0]  %s2933_s8, 384, %s2935_s20, [#allocation5], %s3706_s3, %s3706_s3, %s3707_s16  }
 0x715   :  { %3700 = dma.done.wait [#allocation3], 1536  }
 0x716   :  { %3701 = vsyncadd [#allocation3], 4294965760 }
 0x717   :  { %3702 = dma.done.wait [#allocation5], 384  }
 0x718   :  { %3703 = vsyncadd [#allocation5], 4294966912 }
 0x719   :  { %2953 = vsyncpa [#allocation3], 1 }
 0x71a   :  { %2954 = vsyncpa [#allocation5], 1 }

</bundles_post_ra>
